<compile_context>
chip_gen: v6e
topology: v6e:2x2x1
jax: 0.10.0
libtpu: 0.0.40
codegen_flags: <defaults>
</compile_context>

<pallas_src>
import jax
import jax.numpy as jnp
from jax import lax
from jax.experimental import pallas as pl
from jax.experimental.pallas import tpu as pltpu


def gru_classifier_kernel(x_ref, wih_ref, bih_ref,
                          whh_f_ref, bhh_f_ref, whh_b_ref, bhh_b_ref,
                          w1_ref, b1_ref, w2t_ref, b2_ref,
                          out_ref, gi_ref):
    """Fused bidirectional GRU + pooling + MLP head for one batch tile.

    x_ref:   (L, Bt, E) time-major embeddings
    wih_ref: (E, 6H)  = [Wih_fwd (3H) | Wih_bwd (3H)], PyTorch gate order (r,z,n)
    bih_ref: (1, 6H)  = [bih_fwd | bih_bwd]
    whh_*:   (H, 3H), bhh_*: (1, 3H)
    w1_ref:  (6H, 3H), b1_ref: (1, 3H)
    w2t_ref: (1, 3H)  (linear2 weight, transposed), b2_ref: (1, 1)
    out_ref: (Bt, 1)
    gi_ref:  VMEM scratch (L*Bt, 6H) for the hoisted input projection.
    """
    L, Bt, E = x_ref.shape
    H = whh_f_ref.shape[0]
    H3 = 3 * H

    # ---- hoisted input projection: one big MXU matmul for both directions ----
    x2 = x_ref[...].reshape(L * Bt, E)
    gi_ref[...] = (jnp.dot(x2, wih_ref[...], preferred_element_type=jnp.float32)
                   + bih_ref[...])                                   # (L*Bt, 6H)

    # ---- hoisted weight loads / bias broadcasts (not per-iteration) ----
    whh_f = whh_f_ref[...]
    whh_b = whh_b_ref[...]
    bhh_f = jnp.broadcast_to(bhh_f_ref[...], (Bt, H3))
    bhh_b = jnp.broadcast_to(bhh_b_ref[...], (Bt, H3))

    def cell(gi_t, h_prev, whh, bhh):
        # PyTorch GRU: r,z use (gi + gh); n uses gi_n + r * gh_n.
        gh = jnp.dot(h_prev, whh, preferred_element_type=jnp.float32) + bhh
        r = jax.nn.sigmoid(gi_t[:, 0:H] + gh[:, 0:H])
        z = jax.nn.sigmoid(gi_t[:, H:2 * H] + gh[:, H:2 * H])
        n = jnp.tanh(gi_t[:, 2 * H:3 * H] + r * gh[:, 2 * H:3 * H])
        return (1.0 - z) * n + z * h_prev

    h_f = jnp.zeros((Bt, H), jnp.float32)
    h_b = jnp.zeros((Bt, H), jnp.float32)
    mx_f = mx_b = sm_f = sm_b = None

    # ---- fully unrolled, interleaved fwd/bwd recurrence over static L ----
    for t in range(L):
        rf = t * Bt                       # static, sublane-aligned row offsets
        rb = (L - 1 - t) * Bt
        gi_f_t = gi_ref[rf:rf + Bt, 0:H3]           # fwd gates at time t
        gi_b_t = gi_ref[rb:rb + Bt, H3:2 * H3]      # bwd gates at time L-1-t
        h_f = cell(gi_f_t, h_f, whh_f, bhh_f)
        h_b = cell(gi_b_t, h_b, whh_b, bhh_b)
        if t == 0:
            mx_f, mx_b, sm_f, sm_b = h_f, h_b, h_f, h_b
        else:
            mx_f = jnp.maximum(mx_f, h_f)
            mx_b = jnp.maximum(mx_b, h_b)
            sm_f = sm_f + h_f
            sm_b = sm_b + h_b

    inv_l = 1.0 / L
    # Matches torch.cat([out_max, out_avg, hidden], dim=1) with
    # out_max/out_avg = [fwd | bwd] and hidden = [h_n[fwd] | h_n[bwd]];
    # h_f is out_f[L-1], h_b is out_b[0] (final hidden of the reversed pass).
    agg = jnp.concatenate(
        [mx_f, mx_b, sm_f * inv_l, sm_b * inv_l, h_f, h_b], axis=-1)  # (Bt, 6H)

    h1 = jnp.dot(agg, w1_ref[...], preferred_element_type=jnp.float32) + b1_ref[...]
    h1 = jnp.maximum(h1, 0.0)
    # N=1 output column: do it as a VPU reduction instead of wasting MXU lanes.
    logit = jnp.sum(h1 * w2t_ref[...], axis=-1, keepdims=True) + b2_ref[...]
    out_ref[...] = jax.nn.sigmoid(logit)


def gru_classifier_forward(question, params, *, b_tile=8):
    # Embedding lookup (gather) stays in plain JAX (glue), like nn.Embedding.
    emb = params["embedding"][question]            # (B, L, E)
    x = jnp.transpose(emb, (1, 0, 2))              # (L, B, E) time-major
    L, B, E = x.shape
    H = params["whh_f"].shape[0]
    H3 = 3 * H

    # Combine the per-direction input-projection weights so the hoisted GI
    # matmul handles both directions at once.
    wih = jnp.concatenate([params["wih_f"], params["wih_b"]], axis=1)   # (E, 6H)
    bih = jnp.concatenate([params["bih_f"], params["bih_b"]], axis=1)   # (1, 6H)
    w2t = params["w2"].T                                                # (1, 3H)

    bt = min(b_tile, B)
    assert B % bt == 0, "batch must be divisible by the batch tile"
    grid = (B // bt,)

    def rep(shape):  # weight tiles replicated across the batch grid
        return pl.BlockSpec(shape, lambda b: tuple(0 for _ in shape))

    in_specs = [
        pl.BlockSpec((L, bt, E), lambda b: (0, b, 0)),   # x, batch-tiled
        rep((E, 2 * H3)),                                # wih
        rep((1, 2 * H3)),                                # bih
        rep((H, H3)), rep((1, H3)),                      # whh_f, bhh_f
        rep((H, H3)), rep((1, H3)),                      # whh_b, bhh_b
        rep((6 * H, H3)), rep((1, H3)),                  # w1, b1
        rep((1, H3)), rep((1, 1)),                       # w2^T, b2
    ]
    out_specs = pl.BlockSpec((bt, 1), lambda b: (b, 0))

    return pl.pallas_call(
        gru_classifier_kernel,
        out_shape=jax.ShapeDtypeStruct((B, 1), jnp.float32),
        grid=grid,
        in_specs=in_specs,
        out_specs=out_specs,
        scratch_shapes=[pltpu.VMEM((L * bt, 2 * H3), jnp.float32)],
        compiler_params=pltpu.CompilerParams(
            dimension_semantics=("parallel",)),
    )(x, wih, bih,
      params["whh_f"], params["bhh_f"], params["whh_b"], params["bhh_b"],
      params["w1"], params["b1"], w2t, params["b2"])


def reference_forward(question, params):
    """Pure-JAX reference mirroring the PyTorch module (eval mode)."""
    emb = params["embedding"][question]            # (B, L, E)
    B, L, _ = emb.shape
    H = params["whh_f"].shape[0]
    hi = lax.Precision.HIGHEST

    def run_dir(x_seq, wih, whh, bih, bhh):
        def step(h, x_t):
            gi = jnp.dot(x_t, wih, precision=hi) + bih[0]
            gh = jnp.dot(h, whh, precision=hi) + bhh[0]
            r = jax.nn.sigmoid(gi[:, :H] + gh[:, :H])
            z = jax.nn.sigmoid(gi[:, H:2 * H] + gh[:, H:2 * H])
            n = jnp.tanh(gi[:, 2 * H:] + r * gh[:, 2 * H:])
            h_new = (1.0 - z) * n + z * h
            return h_new, h_new
        _, outs = lax.scan(step, jnp.zeros((B, H), jnp.float32), x_seq)
        return outs                                  # (L, B, H)

    x = jnp.transpose(emb, (1, 0, 2))                # (L, B, E)
    out_f = run_dir(x, params["wih_f"], params["whh_f"],
                    params["bih_f"], params["bhh_f"])
    out_b = run_dir(x[::-1], params["wih_b"], params["whh_b"],
                    params["bih_b"], params["bhh_b"])[::-1]
    agg = jnp.concatenate(
        [out_f.max(0), out_b.max(0), out_f.mean(0), out_b.mean(0),
         out_f[-1], out_b[0]], axis=1)
    h1 = jnp.maximum(jnp.dot(agg, params["w1"], precision=hi) + params["b1"], 0.0)
    return jax.nn.sigmoid(jnp.dot(h1, params["w2"], precision=hi) + params["b2"])


def make_params(key, vocab, E, H):
    ks = jax.random.split(key, 13)
    s = 0.1
    return {
        "embedding": s * jax.random.normal(ks[0], (vocab, E), jnp.float32),
        # GRU weights stored pre-transposed for x @ W: (E, 3H) / (H, 3H),
        # PyTorch gate order (r, z, n).
        "wih_f": s * jax.random.normal(ks[1], (E, 3 * H), jnp.float32),
        "whh_f": s * jax.random.normal(ks[2], (H, 3 * H), jnp.float32),
        "bih_f": s * jax.random.normal(ks[3], (1, 3 * H), jnp.float32),
        "bhh_f": s * jax.random.normal(ks[4], (1, 3 * H), jnp.float32),
        "wih_b": s * jax.random.normal(ks[5], (E, 3 * H), jnp.float32),
        "whh_b": s * jax.random.normal(ks[6], (H, 3 * H), jnp.float32),
        "bih_b": s * jax.random.normal(ks[7], (1, 3 * H), jnp.float32),
        "bhh_b": s * jax.random.normal(ks[8], (1, 3 * H), jnp.float32),
        # Linear layers stored pre-transposed: y = x @ W + b
        "w1": s * jax.random.normal(ks[9], (6 * H, 3 * H), jnp.float32),
        "b1": s * jax.random.normal(ks[10], (1, 3 * H), jnp.float32),
        "w2": s * jax.random.normal(ks[11], (3 * H, 1), jnp.float32),
        "b2": s * jax.random.normal(ks[12], (1, 1), jnp.float32),
    }


if __name__ == "__main__":
    # Small but lane-aligned synthetic config: seq length L doubles as max_len
    # (the pooling kernel size), E/H multiples of 128 keep gate slices aligned.
    vocab, E, H, L, B = 64, 128, 128, 8, 16

    key = jax.random.PRNGKey(0)
    k_params, k_q = jax.random.split(key)
    params = make_params(k_params, vocab, E, H)
    question = jax.random.randint(k_q, (B, L), 0, vocab, dtype=jnp.int32)

    out = jax.jit(gru_classifier_forward)(question, params)
    out = jax.block_until_ready(out)

    assert out.shape == (B, 1)
    assert bool(jnp.all((out >= 0.0) & (out <= 1.0)))

    ref = reference_forward(question, params)
    assert bool(jnp.all(jnp.abs(out - ref) < 2e-3)), "mismatch vs JAX reference"

    print("KERNEL_OK")
</pallas_src>

<mosaic_0001>
module attributes {stable_mosaic.version = 11 : i64} {
  func.func @gru_classifier_kernel(%arg0: i32, %arg1: memref<8x8x128xf32, #tpu.memory_space<vmem>>, %arg2: memref<128x768xf32, #tpu.memory_space<vmem>>, %arg3: memref<1x768xf32, #tpu.memory_space<vmem>>, %arg4: memref<128x384xf32, #tpu.memory_space<vmem>>, %arg5: memref<1x384xf32, #tpu.memory_space<vmem>>, %arg6: memref<128x384xf32, #tpu.memory_space<vmem>>, %arg7: memref<1x384xf32, #tpu.memory_space<vmem>>, %arg8: memref<768x384xf32, #tpu.memory_space<vmem>>, %arg9: memref<1x384xf32, #tpu.memory_space<vmem>>, %arg10: memref<1x384xf32, #tpu.memory_space<vmem>>, %arg11: memref<1x1xf32, #tpu.memory_space<vmem>>, %arg12: memref<8x1xf32, #tpu.memory_space<vmem>>, %arg13: memref<64x768xf32, #tpu.memory_space<vmem>>) attributes {dimension_semantics = [#tpu.dimension_semantics<parallel>], iteration_bounds = array<i64: 2>, scalar_prefetch = 0 : i64, scratch_operands = 1 : i64, tpu.core_type = #tpu.core_type<tc>, window_params = [{transform_indices = @transform_0, window_bounds = array<i64: 8, 8, 128>}, {pipeline_mode = #tpu.pipeline_mode<synchronous>, transform_indices = @transform_1, window_bounds = array<i64: 128, 768>}, {pipeline_mode = #tpu.pipeline_mode<synchronous>, transform_indices = @transform_2, window_bounds = array<i64: 1, 768>}, {pipeline_mode = #tpu.pipeline_mode<synchronous>, transform_indices = @transform_3, window_bounds = array<i64: 128, 384>}, {pipeline_mode = #tpu.pipeline_mode<synchronous>, transform_indices = @transform_4, window_bounds = array<i64: 1, 384>}, {pipeline_mode = #tpu.pipeline_mode<synchronous>, transform_indices = @transform_5, window_bounds = array<i64: 128, 384>}, {pipeline_mode = #tpu.pipeline_mode<synchronous>, transform_indices = @transform_6, window_bounds = array<i64: 1, 384>}, {pipeline_mode = #tpu.pipeline_mode<synchronous>, transform_indices = @transform_7, window_bounds = array<i64: 768, 384>}, {pipeline_mode = #tpu.pipeline_mode<synchronous>, transform_indices = @transform_8, window_bounds = array<i64: 1, 384>}, {pipeline_mode = #tpu.pipeline_mode<synchronous>, transform_indices = @transform_9, window_bounds = array<i64: 1, 384>}, {pipeline_mode = #tpu.pipeline_mode<synchronous>, transform_indices = @transform_10, window_bounds = array<i64: 1, 1>}, {transform_indices = @transform_11, window_bounds = array<i64: 8, 1>}]} {
    %c0 = arith.constant 0 : index
    %c0_0 = arith.constant 0 : index
    %c0_1 = arith.constant 0 : index
    %0 = vector.load %arg1[%c0, %c0_0, %c0_1] : memref<8x8x128xf32, #tpu.memory_space<vmem>>, vector<8x8x128xf32>
    %1 = vector.shape_cast %0 : vector<8x8x128xf32> to vector<64x128xf32>
    %c0_2 = arith.constant 0 : index
    %c0_3 = arith.constant 0 : index
    %2 = vector.load %arg2[%c0_2, %c0_3] : memref<128x768xf32, #tpu.memory_space<vmem>>, vector<128x768xf32>
    %cst = arith.constant dense<0.000000e+00> : vector<64x768xf32>
    %3 = tpu.matmul %1, %2, %cst {dimension_numbers = #tpu.dot_dimension_numbers<[1], [0], [0], [1], [0, 0, 1, 1], [], []>} : vector<64x128xf32>, vector<128x768xf32>, vector<64x768xf32> -> vector<64x768xf32>
    %c0_4 = arith.constant 0 : index
    %c0_5 = arith.constant 0 : index
    %4 = vector.load %arg3[%c0_4, %c0_5] : memref<1x768xf32, #tpu.memory_space<vmem>>, vector<1x768xf32>
    %5 = vector.broadcast %4 : vector<1x768xf32> to vector<64x768xf32>
    %6 = arith.addf %3, %5 : vector<64x768xf32>
    %c0_6 = arith.constant 0 : index
    %c0_7 = arith.constant 0 : index
    %7 = vector.load %arg13[%c0_6, %c0_7] : memref<64x768xf32, #tpu.memory_space<vmem>>, vector<64x768xf32>
    tpu.vector_store %arg13[%c0_6, %c0_7], %6 {strides = array<i32>} : memref<64x768xf32, #tpu.memory_space<vmem>>, vector<64x768xf32>,
    %c0_8 = arith.constant 0 : index
    %c0_9 = arith.constant 0 : index
    %8 = vector.load %arg4[%c0_8, %c0_9] : memref<128x384xf32, #tpu.memory_space<vmem>>, vector<128x384xf32>
    %c0_10 = arith.constant 0 : index
    %c0_11 = arith.constant 0 : index
    %9 = vector.load %arg6[%c0_10, %c0_11] : memref<128x384xf32, #tpu.memory_space<vmem>>, vector<128x384xf32>
    %c0_12 = arith.constant 0 : index
    %c0_13 = arith.constant 0 : index
    %10 = vector.load %arg5[%c0_12, %c0_13] : memref<1x384xf32, #tpu.memory_space<vmem>>, vector<1x384xf32>
    %11 = vector.shape_cast %10 : vector<1x384xf32> to vector<1x384xf32>
    %12 = vector.broadcast %11 : vector<1x384xf32> to vector<8x384xf32>
    %c0_14 = arith.constant 0 : index
    %c0_15 = arith.constant 0 : index
    %13 = vector.load %arg7[%c0_14, %c0_15] : memref<1x384xf32, #tpu.memory_space<vmem>>, vector<1x384xf32>
    %14 = vector.shape_cast %13 : vector<1x384xf32> to vector<1x384xf32>
    %15 = vector.broadcast %14 : vector<1x384xf32> to vector<8x384xf32>
    %cst_16 = arith.constant 0.000000e+00 : f32
    %16 = vector.broadcast %cst_16 : f32 to vector<8x128xf32>
    %cst_17 = arith.constant 0.000000e+00 : f32
    %17 = vector.broadcast %cst_17 : f32 to vector<8x128xf32>
    %c0_18 = arith.constant 0 : index
    %c0_19 = arith.constant 0 : index
    %18 = vector.load %arg13[%c0_18, %c0_19] : memref<64x768xf32, #tpu.memory_space<vmem>>, vector<8x384xf32>
    %c56 = arith.constant 56 : index
    %c384 = arith.constant 384 : index
    %19 = vector.load %arg13[%c56, %c384] : memref<64x768xf32, #tpu.memory_space<vmem>>, vector<8x384xf32>
    %cst_20 = arith.constant dense<0.000000e+00> : vector<8x384xf32>
    %20 = tpu.matmul %16, %8, %cst_20 {dimension_numbers = #tpu.dot_dimension_numbers<[1], [0], [0], [1], [0, 0, 1, 1], [], []>} : vector<8x128xf32>, vector<128x384xf32>, vector<8x384xf32> -> vector<8x384xf32>
    %21 = arith.addf %20, %12 : vector<8x384xf32>
    %22 = vector.extract_strided_slice %18 {offsets = [0, 0], sizes = [8, 128], strides = [1, 1]} : vector<8x384xf32> to vector<8x128xf32>
    %23 = vector.extract_strided_slice %21 {offsets = [0, 0], sizes = [8, 128], strides = [1, 1]} : vector<8x384xf32> to vector<8x128xf32>
    %24 = arith.addf %22, %23 : vector<8x128xf32>
    %25 = arith.negf %24 : vector<8x128xf32>
    %26 = math.exp %25 : vector<8x128xf32>
    %cst_21 = arith.constant 1.000000e+00 : f32
    %27 = vector.broadcast %cst_21 : f32 to vector<8x128xf32>
    %28 = arith.addf %27, %26 : vector<8x128xf32>
    %29 = arith.divf %27, %28 : vector<8x128xf32>
    %30 = vector.extract_strided_slice %18 {offsets = [0, 128], sizes = [8, 128], strides = [1, 1]} : vector<8x384xf32> to vector<8x128xf32>
    %31 = vector.extract_strided_slice %21 {offsets = [0, 128], sizes = [8, 128], strides = [1, 1]} : vector<8x384xf32> to vector<8x128xf32>
    %32 = arith.addf %30, %31 : vector<8x128xf32>
    %33 = arith.negf %32 : vector<8x128xf32>
    %34 = math.exp %33 : vector<8x128xf32>
    %cst_22 = arith.constant 1.000000e+00 : f32
    %35 = vector.broadcast %cst_22 : f32 to vector<8x128xf32>
    %36 = arith.addf %35, %34 : vector<8x128xf32>
    %37 = arith.divf %35, %36 : vector<8x128xf32>
    %38 = vector.extract_strided_slice %18 {offsets = [0, 256], sizes = [8, 128], strides = [1, 1]} : vector<8x384xf32> to vector<8x128xf32>
    %39 = vector.extract_strided_slice %21 {offsets = [0, 256], sizes = [8, 128], strides = [1, 1]} : vector<8x384xf32> to vector<8x128xf32>
    %40 = arith.mulf %29, %39 : vector<8x128xf32>
    %41 = arith.addf %38, %40 : vector<8x128xf32>
    %42 = math.tanh %41 : vector<8x128xf32>
    %cst_23 = arith.constant 1.000000e+00 : f32
    %43 = vector.broadcast %cst_23 : f32 to vector<8x128xf32>
    %44 = arith.subf %43, %37 : vector<8x128xf32>
    %45 = arith.mulf %44, %42 : vector<8x128xf32>
    %46 = arith.mulf %37, %16 : vector<8x128xf32>
    %47 = arith.addf %45, %46 : vector<8x128xf32>
    %cst_24 = arith.constant dense<0.000000e+00> : vector<8x384xf32>
    %48 = tpu.matmul %17, %9, %cst_24 {dimension_numbers = #tpu.dot_dimension_numbers<[1], [0], [0], [1], [0, 0, 1, 1], [], []>} : vector<8x128xf32>, vector<128x384xf32>, vector<8x384xf32> -> vector<8x384xf32>
    %49 = arith.addf %48, %15 : vector<8x384xf32>
    %50 = vector.extract_strided_slice %19 {offsets = [0, 0], sizes = [8, 128], strides = [1, 1]} : vector<8x384xf32> to vector<8x128xf32>
    %51 = vector.extract_strided_slice %49 {offsets = [0, 0], sizes = [8, 128], strides = [1, 1]} : vector<8x384xf32> to vector<8x128xf32>
    %52 = arith.addf %50, %51 : vector<8x128xf32>
    %53 = arith.negf %52 : vector<8x128xf32>
    %54 = math.exp %53 : vector<8x128xf32>
    %cst_25 = arith.constant 1.000000e+00 : f32
    %55 = vector.broadcast %cst_25 : f32 to vector<8x128xf32>
    %56 = arith.addf %55, %54 : vector<8x128xf32>
    %57 = arith.divf %55, %56 : vector<8x128xf32>
    %58 = vector.extract_strided_slice %19 {offsets = [0, 128], sizes = [8, 128], strides = [1, 1]} : vector<8x384xf32> to vector<8x128xf32>
    %59 = vector.extract_strided_slice %49 {offsets = [0, 128], sizes = [8, 128], strides = [1, 1]} : vector<8x384xf32> to vector<8x128xf32>
    %60 = arith.addf %58, %59 : vector<8x128xf32>
    %61 = arith.negf %60 : vector<8x128xf32>
    %62 = math.exp %61 : vector<8x128xf32>
    %cst_26 = arith.constant 1.000000e+00 : f32
    %63 = vector.broadcast %cst_26 : f32 to vector<8x128xf32>
    %64 = arith.addf %63, %62 : vector<8x128xf32>
    %65 = arith.divf %63, %64 : vector<8x128xf32>
    %66 = vector.extract_strided_slice %19 {offsets = [0, 256], sizes = [8, 128], strides = [1, 1]} : vector<8x384xf32> to vector<8x128xf32>
    %67 = vector.extract_strided_slice %49 {offsets = [0, 256], sizes = [8, 128], strides = [1, 1]} : vector<8x384xf32> to vector<8x128xf32>
    %68 = arith.mulf %57, %67 : vector<8x128xf32>
    %69 = arith.addf %66, %68 : vector<8x128xf32>
    %70 = math.tanh %69 : vector<8x128xf32>
    %cst_27 = arith.constant 1.000000e+00 : f32
    %71 = vector.broadcast %cst_27 : f32 to vector<8x128xf32>
    %72 = arith.subf %71, %65 : vector<8x128xf32>
    %73 = arith.mulf %72, %70 : vector<8x128xf32>
    %74 = arith.mulf %65, %17 : vector<8x128xf32>
    %75 = arith.addf %73, %74 : vector<8x128xf32>
    %c8 = arith.constant 8 : index
    %c0_28 = arith.constant 0 : index
    %76 = vector.load %arg13[%c8, %c0_28] : memref<64x768xf32, #tpu.memory_space<vmem>>, vector<8x384xf32>
    %c48 = arith.constant 48 : index
    %c384_29 = arith.constant 384 : index
    %77 = vector.load %arg13[%c48, %c384_29] : memref<64x768xf32, #tpu.memory_space<vmem>>, vector<8x384xf32>
    %cst_30 = arith.constant dense<0.000000e+00> : vector<8x384xf32>
    %78 = tpu.matmul %47, %8, %cst_30 {dimension_numbers = #tpu.dot_dimension_numbers<[1], [0], [0], [1], [0, 0, 1, 1], [], []>} : vector<8x128xf32>, vector<128x384xf32>, vector<8x384xf32> -> vector<8x384xf32>
    %79 = arith.addf %78, %12 : vector<8x384xf32>
    %80 = vector.extract_strided_slice %76 {offsets = [0, 0], sizes = [8, 128], strides = [1, 1]} : vector<8x384xf32> to vector<8x128xf32>
    %81 = vector.extract_strided_slice %79 {offsets = [0, 0], sizes = [8, 128], strides = [1, 1]} : vector<8x384xf32> to vector<8x128xf32>
    %82 = arith.addf %80, %81 : vector<8x128xf32>
    %83 = arith.negf %82 : vector<8x128xf32>
    %84 = math.exp %83 : vector<8x128xf32>
    %cst_31 = arith.constant 1.000000e+00 : f32
    %85 = vector.broadcast %cst_31 : f32 to vector<8x128xf32>
    %86 = arith.addf %85, %84 : vector<8x128xf32>
    %87 = arith.divf %85, %86 : vector<8x128xf32>
    %88 = vector.extract_strided_slice %76 {offsets = [0, 128], sizes = [8, 128], strides = [1, 1]} : vector<8x384xf32> to vector<8x128xf32>
    %89 = vector.extract_strided_slice %79 {offsets = [0, 128], sizes = [8, 128], strides = [1, 1]} : vector<8x384xf32> to vector<8x128xf32>
    %90 = arith.addf %88, %89 : vector<8x128xf32>
    %91 = arith.negf %90 : vector<8x128xf32>
    %92 = math.exp %91 : vector<8x128xf32>
    %cst_32 = arith.constant 1.000000e+00 : f32
    %93 = vector.broadcast %cst_32 : f32 to vector<8x128xf32>
    %94 = arith.addf %93, %92 : vector<8x128xf32>
    %95 = arith.divf %93, %94 : vector<8x128xf32>
    %96 = vector.extract_strided_slice %76 {offsets = [0, 256], sizes = [8, 128], strides = [1, 1]} : vector<8x384xf32> to vector<8x128xf32>
    %97 = vector.extract_strided_slice %79 {offsets = [0, 256], sizes = [8, 128], strides = [1, 1]} : vector<8x384xf32> to vector<8x128xf32>
    %98 = arith.mulf %87, %97 : vector<8x128xf32>
    %99 = arith.addf %96, %98 : vector<8x128xf32>
    %100 = math.tanh %99 : vector<8x128xf32>
    %cst_33 = arith.constant 1.000000e+00 : f32
    %101 = vector.broadcast %cst_33 : f32 to vector<8x128xf32>
    %102 = arith.subf %101, %95 : vector<8x128xf32>
    %103 = arith.mulf %102, %100 : vector<8x128xf32>
    %104 = arith.mulf %95, %47 : vector<8x128xf32>
    %105 = arith.addf %103, %104 : vector<8x128xf32>
    %cst_34 = arith.constant dense<0.000000e+00> : vector<8x384xf32>
    %106 = tpu.matmul %75, %9, %cst_34 {dimension_numbers = #tpu.dot_dimension_numbers<[1], [0], [0], [1], [0, 0, 1, 1], [], []>} : vector<8x128xf32>, vector<128x384xf32>, vector<8x384xf32> -> vector<8x384xf32>
    %107 = arith.addf %106, %15 : vector<8x384xf32>
    %108 = vector.extract_strided_slice %77 {offsets = [0, 0], sizes = [8, 128], strides = [1, 1]} : vector<8x384xf32> to vector<8x128xf32>
    %109 = vector.extract_strided_slice %107 {offsets = [0, 0], sizes = [8, 128], strides = [1, 1]} : vector<8x384xf32> to vector<8x128xf32>
    %110 = arith.addf %108, %109 : vector<8x128xf32>
    %111 = arith.negf %110 : vector<8x128xf32>
    %112 = math.exp %111 : vector<8x128xf32>
    %cst_35 = arith.constant 1.000000e+00 : f32
    %113 = vector.broadcast %cst_35 : f32 to vector<8x128xf32>
    %114 = arith.addf %113, %112 : vector<8x128xf32>
    %115 = arith.divf %113, %114 : vector<8x128xf32>
    %116 = vector.extract_strided_slice %77 {offsets = [0, 128], sizes = [8, 128], strides = [1, 1]} : vector<8x384xf32> to vector<8x128xf32>
    %117 = vector.extract_strided_slice %107 {offsets = [0, 128], sizes = [8, 128], strides = [1, 1]} : vector<8x384xf32> to vector<8x128xf32>
    %118 = arith.addf %116, %117 : vector<8x128xf32>
    %119 = arith.negf %118 : vector<8x128xf32>
    %120 = math.exp %119 : vector<8x128xf32>
    %cst_36 = arith.constant 1.000000e+00 : f32
    %121 = vector.broadcast %cst_36 : f32 to vector<8x128xf32>
    %122 = arith.addf %121, %120 : vector<8x128xf32>
    %123 = arith.divf %121, %122 : vector<8x128xf32>
    %124 = vector.extract_strided_slice %77 {offsets = [0, 256], sizes = [8, 128], strides = [1, 1]} : vector<8x384xf32> to vector<8x128xf32>
    %125 = vector.extract_strided_slice %107 {offsets = [0, 256], sizes = [8, 128], strides = [1, 1]} : vector<8x384xf32> to vector<8x128xf32>
    %126 = arith.mulf %115, %125 : vector<8x128xf32>
    %127 = arith.addf %124, %126 : vector<8x128xf32>
    %128 = math.tanh %127 : vector<8x128xf32>
    %cst_37 = arith.constant 1.000000e+00 : f32
    %129 = vector.broadcast %cst_37 : f32 to vector<8x128xf32>
    %130 = arith.subf %129, %123 : vector<8x128xf32>
    %131 = arith.mulf %130, %128 : vector<8x128xf32>
    %132 = arith.mulf %123, %75 : vector<8x128xf32>
    %133 = arith.addf %131, %132 : vector<8x128xf32>
    %134 = arith.maximumf %47, %105 : vector<8x128xf32>
    %135 = arith.maximumf %75, %133 : vector<8x128xf32>
    %136 = arith.addf %47, %105 : vector<8x128xf32>
    %137 = arith.addf %75, %133 : vector<8x128xf32>
    %c16 = arith.constant 16 : index
    %c0_38 = arith.constant 0 : index
    %138 = vector.load %arg13[%c16, %c0_38] : memref<64x768xf32, #tpu.memory_space<vmem>>, vector<8x384xf32>
    %c40 = arith.constant 40 : index
    %c384_39 = arith.constant 384 : index
    %139 = vector.load %arg13[%c40, %c384_39] : memref<64x768xf32, #tpu.memory_space<vmem>>, vector<8x384xf32>
    %cst_40 = arith.constant dense<0.000000e+00> : vector<8x384xf32>
    %140 = tpu.matmul %105, %8, %cst_40 {dimension_numbers = #tpu.dot_dimension_numbers<[1], [0], [0], [1], [0, 0, 1, 1], [], []>} : vector<8x128xf32>, vector<128x384xf32>, vector<8x384xf32> -> vector<8x384xf32>
    %141 = arith.addf %140, %12 : vector<8x384xf32>
    %142 = vector.extract_strided_slice %138 {offsets = [0, 0], sizes = [8, 128], strides = [1, 1]} : vector<8x384xf32> to vector<8x128xf32>
    %143 = vector.extract_strided_slice %141 {offsets = [0, 0], sizes = [8, 128], strides = [1, 1]} : vector<8x384xf32> to vector<8x128xf32>
    %144 = arith.addf %142, %143 : vector<8x128xf32>
    %145 = arith.negf %144 : vector<8x128xf32>
    %146 = math.exp %145 : vector<8x128xf32>
    %cst_41 = arith.constant 1.000000e+00 : f32
    %147 = vector.broadcast %cst_41 : f32 to vector<8x128xf32>
    %148 = arith.addf %147, %146 : vector<8x128xf32>
    %149 = arith.divf %147, %148 : vector<8x128xf32>
    %150 = vector.extract_strided_slice %138 {offsets = [0, 128], sizes = [8, 128], strides = [1, 1]} : vector<8x384xf32> to vector<8x128xf32>
    %151 = vector.extract_strided_slice %141 {offsets = [0, 128], sizes = [8, 128], strides = [1, 1]} : vector<8x384xf32> to vector<8x128xf32>
    %152 = arith.addf %150, %151 : vector<8x128xf32>
    %153 = arith.negf %152 : vector<8x128xf32>
    %154 = math.exp %153 : vector<8x128xf32>
    %cst_42 = arith.constant 1.000000e+00 : f32
    %155 = vector.broadcast %cst_42 : f32 to vector<8x128xf32>
    %156 = arith.addf %155, %154 : vector<8x128xf32>
    %157 = arith.divf %155, %156 : vector<8x128xf32>
    %158 = vector.extract_strided_slice %138 {offsets = [0, 256], sizes = [8, 128], strides = [1, 1]} : vector<8x384xf32> to vector<8x128xf32>
    %159 = vector.extract_strided_slice %141 {offsets = [0, 256], sizes = [8, 128], strides = [1, 1]} : vector<8x384xf32> to vector<8x128xf32>
    %160 = arith.mulf %149, %159 : vector<8x128xf32>
    %161 = arith.addf %158, %160 : vector<8x128xf32>
    %162 = math.tanh %161 : vector<8x128xf32>
    %cst_43 = arith.constant 1.000000e+00 : f32
    %163 = vector.broadcast %cst_43 : f32 to vector<8x128xf32>
    %164 = arith.subf %163, %157 : vector<8x128xf32>
    %165 = arith.mulf %164, %162 : vector<8x128xf32>
    %166 = arith.mulf %157, %105 : vector<8x128xf32>
    %167 = arith.addf %165, %166 : vector<8x128xf32>
    %cst_44 = arith.constant dense<0.000000e+00> : vector<8x384xf32>
    %168 = tpu.matmul %133, %9, %cst_44 {dimension_numbers = #tpu.dot_dimension_numbers<[1], [0], [0], [1], [0, 0, 1, 1], [], []>} : vector<8x128xf32>, vector<128x384xf32>, vector<8x384xf32> -> vector<8x384xf32>
    %169 = arith.addf %168, %15 : vector<8x384xf32>
    %170 = vector.extract_strided_slice %139 {offsets = [0, 0], sizes = [8, 128], strides = [1, 1]} : vector<8x384xf32> to vector<8x128xf32>
    %171 = vector.extract_strided_slice %169 {offsets = [0, 0], sizes = [8, 128], strides = [1, 1]} : vector<8x384xf32> to vector<8x128xf32>
    %172 = arith.addf %170, %171 : vector<8x128xf32>
    %173 = arith.negf %172 : vector<8x128xf32>
    %174 = math.exp %173 : vector<8x128xf32>
    %cst_45 = arith.constant 1.000000e+00 : f32
    %175 = vector.broadcast %cst_45 : f32 to vector<8x128xf32>
    %176 = arith.addf %175, %174 : vector<8x128xf32>
    %177 = arith.divf %175, %176 : vector<8x128xf32>
    %178 = vector.extract_strided_slice %139 {offsets = [0, 128], sizes = [8, 128], strides = [1, 1]} : vector<8x384xf32> to vector<8x128xf32>
    %179 = vector.extract_strided_slice %169 {offsets = [0, 128], sizes = [8, 128], strides = [1, 1]} : vector<8x384xf32> to vector<8x128xf32>
    %180 = arith.addf %178, %179 : vector<8x128xf32>
    %181 = arith.negf %180 : vector<8x128xf32>
    %182 = math.exp %181 : vector<8x128xf32>
    %cst_46 = arith.constant 1.000000e+00 : f32
    %183 = vector.broadcast %cst_46 : f32 to vector<8x128xf32>
    %184 = arith.addf %183, %182 : vector<8x128xf32>
    %185 = arith.divf %183, %184 : vector<8x128xf32>
    %186 = vector.extract_strided_slice %139 {offsets = [0, 256], sizes = [8, 128], strides = [1, 1]} : vector<8x384xf32> to vector<8x128xf32>
    %187 = vector.extract_strided_slice %169 {offsets = [0, 256], sizes = [8, 128], strides = [1, 1]} : vector<8x384xf32> to vector<8x128xf32>
    %188 = arith.mulf %177, %187 : vector<8x128xf32>
    %189 = arith.addf %186, %188 : vector<8x128xf32>
    %190 = math.tanh %189 : vector<8x128xf32>
    %cst_47 = arith.constant 1.000000e+00 : f32
    %191 = vector.broadcast %cst_47 : f32 to vector<8x128xf32>
    %192 = arith.subf %191, %185 : vector<8x128xf32>
    %193 = arith.mulf %192, %190 : vector<8x128xf32>
    %194 = arith.mulf %185, %133 : vector<8x128xf32>
    %195 = arith.addf %193, %194 : vector<8x128xf32>
    %196 = arith.maximumf %134, %167 : vector<8x128xf32>
    %197 = arith.maximumf %135, %195 : vector<8x128xf32>
    %198 = arith.addf %136, %167 : vector<8x128xf32>
    %199 = arith.addf %137, %195 : vector<8x128xf32>
    %c24 = arith.constant 24 : index
    %c0_48 = arith.constant 0 : index
    %200 = vector.load %arg13[%c24, %c0_48] : memref<64x768xf32, #tpu.memory_space<vmem>>, vector<8x384xf32>
    %c32 = arith.constant 32 : index
    %c384_49 = arith.constant 384 : index
    %201 = vector.load %arg13[%c32, %c384_49] : memref<64x768xf32, #tpu.memory_space<vmem>>, vector<8x384xf32>
    %cst_50 = arith.constant dense<0.000000e+00> : vector<8x384xf32>
    %202 = tpu.matmul %167, %8, %cst_50 {dimension_numbers = #tpu.dot_dimension_numbers<[1], [0], [0], [1], [0, 0, 1, 1], [], []>} : vector<8x128xf32>, vector<128x384xf32>, vector<8x384xf32> -> vector<8x384xf32>
    %203 = arith.addf %202, %12 : vector<8x384xf32>
    %204 = vector.extract_strided_slice %200 {offsets = [0, 0], sizes = [8, 128], strides = [1, 1]} : vector<8x384xf32> to vector<8x128xf32>
    %205 = vector.extract_strided_slice %203 {offsets = [0, 0], sizes = [8, 128], strides = [1, 1]} : vector<8x384xf32> to vector<8x128xf32>
    %206 = arith.addf %204, %205 : vector<8x128xf32>
    %207 = arith.negf %206 : vector<8x128xf32>
    %208 = math.exp %207 : vector<8x128xf32>
    %cst_51 = arith.constant 1.000000e+00 : f32
    %209 = vector.broadcast %cst_51 : f32 to vector<8x128xf32>
    %210 = arith.addf %209, %208 : vector<8x128xf32>
    %211 = arith.divf %209, %210 : vector<8x128xf32>
    %212 = vector.extract_strided_slice %200 {offsets = [0, 128], sizes = [8, 128], strides = [1, 1]} : vector<8x384xf32> to vector<8x128xf32>
    %213 = vector.extract_strided_slice %203 {offsets = [0, 128], sizes = [8, 128], strides = [1, 1]} : vector<8x384xf32> to vector<8x128xf32>
    %214 = arith.addf %212, %213 : vector<8x128xf32>
    %215 = arith.negf %214 : vector<8x128xf32>
    %216 = math.exp %215 : vector<8x128xf32>
    %cst_52 = arith.constant 1.000000e+00 : f32
    %217 = vector.broadcast %cst_52 : f32 to vector<8x128xf32>
    %218 = arith.addf %217, %216 : vector<8x128xf32>
    %219 = arith.divf %217, %218 : vector<8x128xf32>
    %220 = vector.extract_strided_slice %200 {offsets = [0, 256], sizes = [8, 128], strides = [1, 1]} : vector<8x384xf32> to vector<8x128xf32>
    %221 = vector.extract_strided_slice %203 {offsets = [0, 256], sizes = [8, 128], strides = [1, 1]} : vector<8x384xf32> to vector<8x128xf32>
    %222 = arith.mulf %211, %221 : vector<8x128xf32>
    %223 = arith.addf %220, %222 : vector<8x128xf32>
    %224 = math.tanh %223 : vector<8x128xf32>
    %cst_53 = arith.constant 1.000000e+00 : f32
    %225 = vector.broadcast %cst_53 : f32 to vector<8x128xf32>
    %226 = arith.subf %225, %219 : vector<8x128xf32>
    %227 = arith.mulf %226, %224 : vector<8x128xf32>
    %228 = arith.mulf %219, %167 : vector<8x128xf32>
    %229 = arith.addf %227, %228 : vector<8x128xf32>
    %cst_54 = arith.constant dense<0.000000e+00> : vector<8x384xf32>
    %230 = tpu.matmul %195, %9, %cst_54 {dimension_numbers = #tpu.dot_dimension_numbers<[1], [0], [0], [1], [0, 0, 1, 1], [], []>} : vector<8x128xf32>, vector<128x384xf32>, vector<8x384xf32> -> vector<8x384xf32>
    %231 = arith.addf %230, %15 : vector<8x384xf32>
    %232 = vector.extract_strided_slice %201 {offsets = [0, 0], sizes = [8, 128], strides = [1, 1]} : vector<8x384xf32> to vector<8x128xf32>
    %233 = vector.extract_strided_slice %231 {offsets = [0, 0], sizes = [8, 128], strides = [1, 1]} : vector<8x384xf32> to vector<8x128xf32>
    %234 = arith.addf %232, %233 : vector<8x128xf32>
    %235 = arith.negf %234 : vector<8x128xf32>
    %236 = math.exp %235 : vector<8x128xf32>
    %cst_55 = arith.constant 1.000000e+00 : f32
    %237 = vector.broadcast %cst_55 : f32 to vector<8x128xf32>
    %238 = arith.addf %237, %236 : vector<8x128xf32>
    %239 = arith.divf %237, %238 : vector<8x128xf32>
    %240 = vector.extract_strided_slice %201 {offsets = [0, 128], sizes = [8, 128], strides = [1, 1]} : vector<8x384xf32> to vector<8x128xf32>
    %241 = vector.extract_strided_slice %231 {offsets = [0, 128], sizes = [8, 128], strides = [1, 1]} : vector<8x384xf32> to vector<8x128xf32>
    %242 = arith.addf %240, %241 : vector<8x128xf32>
    %243 = arith.negf %242 : vector<8x128xf32>
    %244 = math.exp %243 : vector<8x128xf32>
    %cst_56 = arith.constant 1.000000e+00 : f32
    %245 = vector.broadcast %cst_56 : f32 to vector<8x128xf32>
    %246 = arith.addf %245, %244 : vector<8x128xf32>
    %247 = arith.divf %245, %246 : vector<8x128xf32>
    %248 = vector.extract_strided_slice %201 {offsets = [0, 256], sizes = [8, 128], strides = [1, 1]} : vector<8x384xf32> to vector<8x128xf32>
    %249 = vector.extract_strided_slice %231 {offsets = [0, 256], sizes = [8, 128], strides = [1, 1]} : vector<8x384xf32> to vector<8x128xf32>
    %250 = arith.mulf %239, %249 : vector<8x128xf32>
    %251 = arith.addf %248, %250 : vector<8x128xf32>
    %252 = math.tanh %251 : vector<8x128xf32>
    %cst_57 = arith.constant 1.000000e+00 : f32
    %253 = vector.broadcast %cst_57 : f32 to vector<8x128xf32>
    %254 = arith.subf %253, %247 : vector<8x128xf32>
    %255 = arith.mulf %254, %252 : vector<8x128xf32>
    %256 = arith.mulf %247, %195 : vector<8x128xf32>
    %257 = arith.addf %255, %256 : vector<8x128xf32>
    %258 = arith.maximumf %196, %229 : vector<8x128xf32>
    %259 = arith.maximumf %197, %257 : vector<8x128xf32>
    %260 = arith.addf %198, %229 : vector<8x128xf32>
    %261 = arith.addf %199, %257 : vector<8x128xf32>
    %c32_58 = arith.constant 32 : index
    %c0_59 = arith.constant 0 : index
    %262 = vector.load %arg13[%c32_58, %c0_59] : memref<64x768xf32, #tpu.memory_space<vmem>>, vector<8x384xf32>
    %c24_60 = arith.constant 24 : index
    %c384_61 = arith.constant 384 : index
    %263 = vector.load %arg13[%c24_60, %c384_61] : memref<64x768xf32, #tpu.memory_space<vmem>>, vector<8x384xf32>
    %cst_62 = arith.constant dense<0.000000e+00> : vector<8x384xf32>
    %264 = tpu.matmul %229, %8, %cst_62 {dimension_numbers = #tpu.dot_dimension_numbers<[1], [0], [0], [1], [0, 0, 1, 1], [], []>} : vector<8x128xf32>, vector<128x384xf32>, vector<8x384xf32> -> vector<8x384xf32>
    %265 = arith.addf %264, %12 : vector<8x384xf32>
    %266 = vector.extract_strided_slice %262 {offsets = [0, 0], sizes = [8, 128], strides = [1, 1]} : vector<8x384xf32> to vector<8x128xf32>
    %267 = vector.extract_strided_slice %265 {offsets = [0, 0], sizes = [8, 128], strides = [1, 1]} : vector<8x384xf32> to vector<8x128xf32>
    %268 = arith.addf %266, %267 : vector<8x128xf32>
    %269 = arith.negf %268 : vector<8x128xf32>
    %270 = math.exp %269 : vector<8x128xf32>
    %cst_63 = arith.constant 1.000000e+00 : f32
    %271 = vector.broadcast %cst_63 : f32 to vector<8x128xf32>
    %272 = arith.addf %271, %270 : vector<8x128xf32>
    %273 = arith.divf %271, %272 : vector<8x128xf32>
    %274 = vector.extract_strided_slice %262 {offsets = [0, 128], sizes = [8, 128], strides = [1, 1]} : vector<8x384xf32> to vector<8x128xf32>
    %275 = vector.extract_strided_slice %265 {offsets = [0, 128], sizes = [8, 128], strides = [1, 1]} : vector<8x384xf32> to vector<8x128xf32>
    %276 = arith.addf %274, %275 : vector<8x128xf32>
    %277 = arith.negf %276 : vector<8x128xf32>
    %278 = math.exp %277 : vector<8x128xf32>
    %cst_64 = arith.constant 1.000000e+00 : f32
    %279 = vector.broadcast %cst_64 : f32 to vector<8x128xf32>
    %280 = arith.addf %279, %278 : vector<8x128xf32>
    %281 = arith.divf %279, %280 : vector<8x128xf32>
    %282 = vector.extract_strided_slice %262 {offsets = [0, 256], sizes = [8, 128], strides = [1, 1]} : vector<8x384xf32> to vector<8x128xf32>
    %283 = vector.extract_strided_slice %265 {offsets = [0, 256], sizes = [8, 128], strides = [1, 1]} : vector<8x384xf32> to vector<8x128xf32>
    %284 = arith.mulf %273, %283 : vector<8x128xf32>
    %285 = arith.addf %282, %284 : vector<8x128xf32>
    %286 = math.tanh %285 : vector<8x128xf32>
    %cst_65 = arith.constant 1.000000e+00 : f32
    %287 = vector.broadcast %cst_65 : f32 to vector<8x128xf32>
    %288 = arith.subf %287, %281 : vector<8x128xf32>
    %289 = arith.mulf %288, %286 : vector<8x128xf32>
    %290 = arith.mulf %281, %229 : vector<8x128xf32>
    %291 = arith.addf %289, %290 : vector<8x128xf32>
    %cst_66 = arith.constant dense<0.000000e+00> : vector<8x384xf32>
    %292 = tpu.matmul %257, %9, %cst_66 {dimension_numbers = #tpu.dot_dimension_numbers<[1], [0], [0], [1], [0, 0, 1, 1], [], []>} : vector<8x128xf32>, vector<128x384xf32>, vector<8x384xf32> -> vector<8x384xf32>
    %293 = arith.addf %292, %15 : vector<8x384xf32>
    %294 = vector.extract_strided_slice %263 {offsets = [0, 0], sizes = [8, 128], strides = [1, 1]} : vector<8x384xf32> to vector<8x128xf32>
    %295 = vector.extract_strided_slice %293 {offsets = [0, 0], sizes = [8, 128], strides = [1, 1]} : vector<8x384xf32> to vector<8x128xf32>
    %296 = arith.addf %294, %295 : vector<8x128xf32>
    %297 = arith.negf %296 : vector<8x128xf32>
    %298 = math.exp %297 : vector<8x128xf32>
    %cst_67 = arith.constant 1.000000e+00 : f32
    %299 = vector.broadcast %cst_67 : f32 to vector<8x128xf32>
    %300 = arith.addf %299, %298 : vector<8x128xf32>
    %301 = arith.divf %299, %300 : vector<8x128xf32>
    %302 = vector.extract_strided_slice %263 {offsets = [0, 128], sizes = [8, 128], strides = [1, 1]} : vector<8x384xf32> to vector<8x128xf32>
    %303 = vector.extract_strided_slice %293 {offsets = [0, 128], sizes = [8, 128], strides = [1, 1]} : vector<8x384xf32> to vector<8x128xf32>
    %304 = arith.addf %302, %303 : vector<8x128xf32>
    %305 = arith.negf %304 : vector<8x128xf32>
    %306 = math.exp %305 : vector<8x128xf32>
    %cst_68 = arith.constant 1.000000e+00 : f32
    %307 = vector.broadcast %cst_68 : f32 to vector<8x128xf32>
    %308 = arith.addf %307, %306 : vector<8x128xf32>
    %309 = arith.divf %307, %308 : vector<8x128xf32>
    %310 = vector.extract_strided_slice %263 {offsets = [0, 256], sizes = [8, 128], strides = [1, 1]} : vector<8x384xf32> to vector<8x128xf32>
    %311 = vector.extract_strided_slice %293 {offsets = [0, 256], sizes = [8, 128], strides = [1, 1]} : vector<8x384xf32> to vector<8x128xf32>
    %312 = arith.mulf %301, %311 : vector<8x128xf32>
    %313 = arith.addf %310, %312 : vector<8x128xf32>
    %314 = math.tanh %313 : vector<8x128xf32>
    %cst_69 = arith.constant 1.000000e+00 : f32
    %315 = vector.broadcast %cst_69 : f32 to vector<8x128xf32>
    %316 = arith.subf %315, %309 : vector<8x128xf32>
    %317 = arith.mulf %316, %314 : vector<8x128xf32>
    %318 = arith.mulf %309, %257 : vector<8x128xf32>
    %319 = arith.addf %317, %318 : vector<8x128xf32>
    %320 = arith.maximumf %258, %291 : vector<8x128xf32>
    %321 = arith.maximumf %259, %319 : vector<8x128xf32>
    %322 = arith.addf %260, %291 : vector<8x128xf32>
    %323 = arith.addf %261, %319 : vector<8x128xf32>
    %c40_70 = arith.constant 40 : index
    %c0_71 = arith.constant 0 : index
    %324 = vector.load %arg13[%c40_70, %c0_71] : memref<64x768xf32, #tpu.memory_space<vmem>>, vector<8x384xf32>
    %c16_72 = arith.constant 16 : index
    %c384_73 = arith.constant 384 : index
    %325 = vector.load %arg13[%c16_72, %c384_73] : memref<64x768xf32, #tpu.memory_space<vmem>>, vector<8x384xf32>
    %cst_74 = arith.constant dense<0.000000e+00> : vector<8x384xf32>
    %326 = tpu.matmul %291, %8, %cst_74 {dimension_numbers = #tpu.dot_dimension_numbers<[1], [0], [0], [1], [0, 0, 1, 1], [], []>} : vector<8x128xf32>, vector<128x384xf32>, vector<8x384xf32> -> vector<8x384xf32>
    %327 = arith.addf %326, %12 : vector<8x384xf32>
    %328 = vector.extract_strided_slice %324 {offsets = [0, 0], sizes = [8, 128], strides = [1, 1]} : vector<8x384xf32> to vector<8x128xf32>
    %329 = vector.extract_strided_slice %327 {offsets = [0, 0], sizes = [8, 128], strides = [1, 1]} : vector<8x384xf32> to vector<8x128xf32>
    %330 = arith.addf %328, %329 : vector<8x128xf32>
    %331 = arith.negf %330 : vector<8x128xf32>
    %332 = math.exp %331 : vector<8x128xf32>
    %cst_75 = arith.constant 1.000000e+00 : f32
    %333 = vector.broadcast %cst_75 : f32 to vector<8x128xf32>
    %334 = arith.addf %333, %332 : vector<8x128xf32>
    %335 = arith.divf %333, %334 : vector<8x128xf32>
    %336 = vector.extract_strided_slice %324 {offsets = [0, 128], sizes = [8, 128], strides = [1, 1]} : vector<8x384xf32> to vector<8x128xf32>
    %337 = vector.extract_strided_slice %327 {offsets = [0, 128], sizes = [8, 128], strides = [1, 1]} : vector<8x384xf32> to vector<8x128xf32>
    %338 = arith.addf %336, %337 : vector<8x128xf32>
    %339 = arith.negf %338 : vector<8x128xf32>
    %340 = math.exp %339 : vector<8x128xf32>
    %cst_76 = arith.constant 1.000000e+00 : f32
    %341 = vector.broadcast %cst_76 : f32 to vector<8x128xf32>
    %342 = arith.addf %341, %340 : vector<8x128xf32>
    %343 = arith.divf %341, %342 : vector<8x128xf32>
    %344 = vector.extract_strided_slice %324 {offsets = [0, 256], sizes = [8, 128], strides = [1, 1]} : vector<8x384xf32> to vector<8x128xf32>
    %345 = vector.extract_strided_slice %327 {offsets = [0, 256], sizes = [8, 128], strides = [1, 1]} : vector<8x384xf32> to vector<8x128xf32>
    %346 = arith.mulf %335, %345 : vector<8x128xf32>
    %347 = arith.addf %344, %346 : vector<8x128xf32>
    %348 = math.tanh %347 : vector<8x128xf32>
    %cst_77 = arith.constant 1.000000e+00 : f32
    %349 = vector.broadcast %cst_77 : f32 to vector<8x128xf32>
    %350 = arith.subf %349, %343 : vector<8x128xf32>
    %351 = arith.mulf %350, %348 : vector<8x128xf32>
    %352 = arith.mulf %343, %291 : vector<8x128xf32>
    %353 = arith.addf %351, %352 : vector<8x128xf32>
    %cst_78 = arith.constant dense<0.000000e+00> : vector<8x384xf32>
    %354 = tpu.matmul %319, %9, %cst_78 {dimension_numbers = #tpu.dot_dimension_numbers<[1], [0], [0], [1], [0, 0, 1, 1], [], []>} : vector<8x128xf32>, vector<128x384xf32>, vector<8x384xf32> -> vector<8x384xf32>
    %355 = arith.addf %354, %15 : vector<8x384xf32>
    %356 = vector.extract_strided_slice %325 {offsets = [0, 0], sizes = [8, 128], strides = [1, 1]} : vector<8x384xf32> to vector<8x128xf32>
    %357 = vector.extract_strided_slice %355 {offsets = [0, 0], sizes = [8, 128], strides = [1, 1]} : vector<8x384xf32> to vector<8x128xf32>
    %358 = arith.addf %356, %357 : vector<8x128xf32>
    %359 = arith.negf %358 : vector<8x128xf32>
    %360 = math.exp %359 : vector<8x128xf32>
    %cst_79 = arith.constant 1.000000e+00 : f32
    %361 = vector.broadcast %cst_79 : f32 to vector<8x128xf32>
    %362 = arith.addf %361, %360 : vector<8x128xf32>
    %363 = arith.divf %361, %362 : vector<8x128xf32>
    %364 = vector.extract_strided_slice %325 {offsets = [0, 128], sizes = [8, 128], strides = [1, 1]} : vector<8x384xf32> to vector<8x128xf32>
    %365 = vector.extract_strided_slice %355 {offsets = [0, 128], sizes = [8, 128], strides = [1, 1]} : vector<8x384xf32> to vector<8x128xf32>
    %366 = arith.addf %364, %365 : vector<8x128xf32>
    %367 = arith.negf %366 : vector<8x128xf32>
    %368 = math.exp %367 : vector<8x128xf32>
    %cst_80 = arith.constant 1.000000e+00 : f32
    %369 = vector.broadcast %cst_80 : f32 to vector<8x128xf32>
    %370 = arith.addf %369, %368 : vector<8x128xf32>
    %371 = arith.divf %369, %370 : vector<8x128xf32>
    %372 = vector.extract_strided_slice %325 {offsets = [0, 256], sizes = [8, 128], strides = [1, 1]} : vector<8x384xf32> to vector<8x128xf32>
    %373 = vector.extract_strided_slice %355 {offsets = [0, 256], sizes = [8, 128], strides = [1, 1]} : vector<8x384xf32> to vector<8x128xf32>
    %374 = arith.mulf %363, %373 : vector<8x128xf32>
    %375 = arith.addf %372, %374 : vector<8x128xf32>
    %376 = math.tanh %375 : vector<8x128xf32>
    %cst_81 = arith.constant 1.000000e+00 : f32
    %377 = vector.broadcast %cst_81 : f32 to vector<8x128xf32>
    %378 = arith.subf %377, %371 : vector<8x128xf32>
    %379 = arith.mulf %378, %376 : vector<8x128xf32>
    %380 = arith.mulf %371, %319 : vector<8x128xf32>
    %381 = arith.addf %379, %380 : vector<8x128xf32>
    %382 = arith.maximumf %320, %353 : vector<8x128xf32>
    %383 = arith.maximumf %321, %381 : vector<8x128xf32>
    %384 = arith.addf %322, %353 : vector<8x128xf32>
    %385 = arith.addf %323, %381 : vector<8x128xf32>
    %c48_82 = arith.constant 48 : index
    %c0_83 = arith.constant 0 : index
    %386 = vector.load %arg13[%c48_82, %c0_83] : memref<64x768xf32, #tpu.memory_space<vmem>>, vector<8x384xf32>
    %c8_84 = arith.constant 8 : index
    %c384_85 = arith.constant 384 : index
    %387 = vector.load %arg13[%c8_84, %c384_85] : memref<64x768xf32, #tpu.memory_space<vmem>>, vector<8x384xf32>
    %cst_86 = arith.constant dense<0.000000e+00> : vector<8x384xf32>
    %388 = tpu.matmul %353, %8, %cst_86 {dimension_numbers = #tpu.dot_dimension_numbers<[1], [0], [0], [1], [0, 0, 1, 1], [], []>} : vector<8x128xf32>, vector<128x384xf32>, vector<8x384xf32> -> vector<8x384xf32>
    %389 = arith.addf %388, %12 : vector<8x384xf32>
    %390 = vector.extract_strided_slice %386 {offsets = [0, 0], sizes = [8, 128], strides = [1, 1]} : vector<8x384xf32> to vector<8x128xf32>
    %391 = vector.extract_strided_slice %389 {offsets = [0, 0], sizes = [8, 128], strides = [1, 1]} : vector<8x384xf32> to vector<8x128xf32>
    %392 = arith.addf %390, %391 : vector<8x128xf32>
    %393 = arith.negf %392 : vector<8x128xf32>
    %394 = math.exp %393 : vector<8x128xf32>
    %cst_87 = arith.constant 1.000000e+00 : f32
    %395 = vector.broadcast %cst_87 : f32 to vector<8x128xf32>
    %396 = arith.addf %395, %394 : vector<8x128xf32>
    %397 = arith.divf %395, %396 : vector<8x128xf32>
    %398 = vector.extract_strided_slice %386 {offsets = [0, 128], sizes = [8, 128], strides = [1, 1]} : vector<8x384xf32> to vector<8x128xf32>
    %399 = vector.extract_strided_slice %389 {offsets = [0, 128], sizes = [8, 128], strides = [1, 1]} : vector<8x384xf32> to vector<8x128xf32>
    %400 = arith.addf %398, %399 : vector<8x128xf32>
    %401 = arith.negf %400 : vector<8x128xf32>
    %402 = math.exp %401 : vector<8x128xf32>
    %cst_88 = arith.constant 1.000000e+00 : f32
    %403 = vector.broadcast %cst_88 : f32 to vector<8x128xf32>
    %404 = arith.addf %403, %402 : vector<8x128xf32>
    %405 = arith.divf %403, %404 : vector<8x128xf32>
    %406 = vector.extract_strided_slice %386 {offsets = [0, 256], sizes = [8, 128], strides = [1, 1]} : vector<8x384xf32> to vector<8x128xf32>
    %407 = vector.extract_strided_slice %389 {offsets = [0, 256], sizes = [8, 128], strides = [1, 1]} : vector<8x384xf32> to vector<8x128xf32>
    %408 = arith.mulf %397, %407 : vector<8x128xf32>
    %409 = arith.addf %406, %408 : vector<8x128xf32>
    %410 = math.tanh %409 : vector<8x128xf32>
    %cst_89 = arith.constant 1.000000e+00 : f32
    %411 = vector.broadcast %cst_89 : f32 to vector<8x128xf32>
    %412 = arith.subf %411, %405 : vector<8x128xf32>
    %413 = arith.mulf %412, %410 : vector<8x128xf32>
    %414 = arith.mulf %405, %353 : vector<8x128xf32>
    %415 = arith.addf %413, %414 : vector<8x128xf32>
    %cst_90 = arith.constant dense<0.000000e+00> : vector<8x384xf32>
    %416 = tpu.matmul %381, %9, %cst_90 {dimension_numbers = #tpu.dot_dimension_numbers<[1], [0], [0], [1], [0, 0, 1, 1], [], []>} : vector<8x128xf32>, vector<128x384xf32>, vector<8x384xf32> -> vector<8x384xf32>
    %417 = arith.addf %416, %15 : vector<8x384xf32>
    %418 = vector.extract_strided_slice %387 {offsets = [0, 0], sizes = [8, 128], strides = [1, 1]} : vector<8x384xf32> to vector<8x128xf32>
    %419 = vector.extract_strided_slice %417 {offsets = [0, 0], sizes = [8, 128], strides = [1, 1]} : vector<8x384xf32> to vector<8x128xf32>
    %420 = arith.addf %418, %419 : vector<8x128xf32>
    %421 = arith.negf %420 : vector<8x128xf32>
    %422 = math.exp %421 : vector<8x128xf32>
    %cst_91 = arith.constant 1.000000e+00 : f32
    %423 = vector.broadcast %cst_91 : f32 to vector<8x128xf32>
    %424 = arith.addf %423, %422 : vector<8x128xf32>
    %425 = arith.divf %423, %424 : vector<8x128xf32>
    %426 = vector.extract_strided_slice %387 {offsets = [0, 128], sizes = [8, 128], strides = [1, 1]} : vector<8x384xf32> to vector<8x128xf32>
    %427 = vector.extract_strided_slice %417 {offsets = [0, 128], sizes = [8, 128], strides = [1, 1]} : vector<8x384xf32> to vector<8x128xf32>
    %428 = arith.addf %426, %427 : vector<8x128xf32>
    %429 = arith.negf %428 : vector<8x128xf32>
    %430 = math.exp %429 : vector<8x128xf32>
    %cst_92 = arith.constant 1.000000e+00 : f32
    %431 = vector.broadcast %cst_92 : f32 to vector<8x128xf32>
    %432 = arith.addf %431, %430 : vector<8x128xf32>
    %433 = arith.divf %431, %432 : vector<8x128xf32>
    %434 = vector.extract_strided_slice %387 {offsets = [0, 256], sizes = [8, 128], strides = [1, 1]} : vector<8x384xf32> to vector<8x128xf32>
    %435 = vector.extract_strided_slice %417 {offsets = [0, 256], sizes = [8, 128], strides = [1, 1]} : vector<8x384xf32> to vector<8x128xf32>
    %436 = arith.mulf %425, %435 : vector<8x128xf32>
    %437 = arith.addf %434, %436 : vector<8x128xf32>
    %438 = math.tanh %437 : vector<8x128xf32>
    %cst_93 = arith.constant 1.000000e+00 : f32
    %439 = vector.broadcast %cst_93 : f32 to vector<8x128xf32>
    %440 = arith.subf %439, %433 : vector<8x128xf32>
    %441 = arith.mulf %440, %438 : vector<8x128xf32>
    %442 = arith.mulf %433, %381 : vector<8x128xf32>
    %443 = arith.addf %441, %442 : vector<8x128xf32>
    %444 = arith.maximumf %382, %415 : vector<8x128xf32>
    %445 = arith.maximumf %383, %443 : vector<8x128xf32>
    %446 = arith.addf %384, %415 : vector<8x128xf32>
    %447 = arith.addf %385, %443 : vector<8x128xf32>
    %c56_94 = arith.constant 56 : index
    %c0_95 = arith.constant 0 : index
    %448 = vector.load %arg13[%c56_94, %c0_95] : memref<64x768xf32, #tpu.memory_space<vmem>>, vector<8x384xf32>
    %c0_96 = arith.constant 0 : index
    %c384_97 = arith.constant 384 : index
    %449 = vector.load %arg13[%c0_96, %c384_97] : memref<64x768xf32, #tpu.memory_space<vmem>>, vector<8x384xf32>
    %cst_98 = arith.constant dense<0.000000e+00> : vector<8x384xf32>
    %450 = tpu.matmul %415, %8, %cst_98 {dimension_numbers = #tpu.dot_dimension_numbers<[1], [0], [0], [1], [0, 0, 1, 1], [], []>} : vector<8x128xf32>, vector<128x384xf32>, vector<8x384xf32> -> vector<8x384xf32>
    %451 = arith.addf %450, %12 : vector<8x384xf32>
    %452 = vector.extract_strided_slice %448 {offsets = [0, 0], sizes = [8, 128], strides = [1, 1]} : vector<8x384xf32> to vector<8x128xf32>
    %453 = vector.extract_strided_slice %451 {offsets = [0, 0], sizes = [8, 128], strides = [1, 1]} : vector<8x384xf32> to vector<8x128xf32>
    %454 = arith.addf %452, %453 : vector<8x128xf32>
    %455 = arith.negf %454 : vector<8x128xf32>
    %456 = math.exp %455 : vector<8x128xf32>
    %cst_99 = arith.constant 1.000000e+00 : f32
    %457 = vector.broadcast %cst_99 : f32 to vector<8x128xf32>
    %458 = arith.addf %457, %456 : vector<8x128xf32>
    %459 = arith.divf %457, %458 : vector<8x128xf32>
    %460 = vector.extract_strided_slice %448 {offsets = [0, 128], sizes = [8, 128], strides = [1, 1]} : vector<8x384xf32> to vector<8x128xf32>
    %461 = vector.extract_strided_slice %451 {offsets = [0, 128], sizes = [8, 128], strides = [1, 1]} : vector<8x384xf32> to vector<8x128xf32>
    %462 = arith.addf %460, %461 : vector<8x128xf32>
    %463 = arith.negf %462 : vector<8x128xf32>
    %464 = math.exp %463 : vector<8x128xf32>
    %cst_100 = arith.constant 1.000000e+00 : f32
    %465 = vector.broadcast %cst_100 : f32 to vector<8x128xf32>
    %466 = arith.addf %465, %464 : vector<8x128xf32>
    %467 = arith.divf %465, %466 : vector<8x128xf32>
    %468 = vector.extract_strided_slice %448 {offsets = [0, 256], sizes = [8, 128], strides = [1, 1]} : vector<8x384xf32> to vector<8x128xf32>
    %469 = vector.extract_strided_slice %451 {offsets = [0, 256], sizes = [8, 128], strides = [1, 1]} : vector<8x384xf32> to vector<8x128xf32>
    %470 = arith.mulf %459, %469 : vector<8x128xf32>
    %471 = arith.addf %468, %470 : vector<8x128xf32>
    %472 = math.tanh %471 : vector<8x128xf32>
    %cst_101 = arith.constant 1.000000e+00 : f32
    %473 = vector.broadcast %cst_101 : f32 to vector<8x128xf32>
    %474 = arith.subf %473, %467 : vector<8x128xf32>
    %475 = arith.mulf %474, %472 : vector<8x128xf32>
    %476 = arith.mulf %467, %415 : vector<8x128xf32>
    %477 = arith.addf %475, %476 : vector<8x128xf32>
    %cst_102 = arith.constant dense<0.000000e+00> : vector<8x384xf32>
    %478 = tpu.matmul %443, %9, %cst_102 {dimension_numbers = #tpu.dot_dimension_numbers<[1], [0], [0], [1], [0, 0, 1, 1], [], []>} : vector<8x128xf32>, vector<128x384xf32>, vector<8x384xf32> -> vector<8x384xf32>
    %479 = arith.addf %478, %15 : vector<8x384xf32>
    %480 = vector.extract_strided_slice %449 {offsets = [0, 0], sizes = [8, 128], strides = [1, 1]} : vector<8x384xf32> to vector<8x128xf32>
    %481 = vector.extract_strided_slice %479 {offsets = [0, 0], sizes = [8, 128], strides = [1, 1]} : vector<8x384xf32> to vector<8x128xf32>
    %482 = arith.addf %480, %481 : vector<8x128xf32>
    %483 = arith.negf %482 : vector<8x128xf32>
    %484 = math.exp %483 : vector<8x128xf32>
    %cst_103 = arith.constant 1.000000e+00 : f32
    %485 = vector.broadcast %cst_103 : f32 to vector<8x128xf32>
    %486 = arith.addf %485, %484 : vector<8x128xf32>
    %487 = arith.divf %485, %486 : vector<8x128xf32>
    %488 = vector.extract_strided_slice %449 {offsets = [0, 128], sizes = [8, 128], strides = [1, 1]} : vector<8x384xf32> to vector<8x128xf32>
    %489 = vector.extract_strided_slice %479 {offsets = [0, 128], sizes = [8, 128], strides = [1, 1]} : vector<8x384xf32> to vector<8x128xf32>
    %490 = arith.addf %488, %489 : vector<8x128xf32>
    %491 = arith.negf %490 : vector<8x128xf32>
    %492 = math.exp %491 : vector<8x128xf32>
    %cst_104 = arith.constant 1.000000e+00 : f32
    %493 = vector.broadcast %cst_104 : f32 to vector<8x128xf32>
    %494 = arith.addf %493, %492 : vector<8x128xf32>
    %495 = arith.divf %493, %494 : vector<8x128xf32>
    %496 = vector.extract_strided_slice %449 {offsets = [0, 256], sizes = [8, 128], strides = [1, 1]} : vector<8x384xf32> to vector<8x128xf32>
    %497 = vector.extract_strided_slice %479 {offsets = [0, 256], sizes = [8, 128], strides = [1, 1]} : vector<8x384xf32> to vector<8x128xf32>
    %498 = arith.mulf %487, %497 : vector<8x128xf32>
    %499 = arith.addf %496, %498 : vector<8x128xf32>
    %500 = math.tanh %499 : vector<8x128xf32>
    %cst_105 = arith.constant 1.000000e+00 : f32
    %501 = vector.broadcast %cst_105 : f32 to vector<8x128xf32>
    %502 = arith.subf %501, %495 : vector<8x128xf32>
    %503 = arith.mulf %502, %500 : vector<8x128xf32>
    %504 = arith.mulf %495, %443 : vector<8x128xf32>
    %505 = arith.addf %503, %504 : vector<8x128xf32>
    %506 = arith.maximumf %444, %477 : vector<8x128xf32>
    %507 = arith.maximumf %445, %505 : vector<8x128xf32>
    %508 = arith.addf %446, %477 : vector<8x128xf32>
    %509 = arith.addf %447, %505 : vector<8x128xf32>
    %cst_106 = arith.constant 1.250000e-01 : f32
    %510 = vector.broadcast %cst_106 : f32 to vector<8x128xf32>
    %511 = arith.mulf %508, %510 : vector<8x128xf32>
    %cst_107 = arith.constant 1.250000e-01 : f32
    %512 = vector.broadcast %cst_107 : f32 to vector<8x128xf32>
    %513 = arith.mulf %509, %512 : vector<8x128xf32>
    %514 = tpu.concatenate %506, %507, %511, %513, %477, %505 in 1 : vector<8x128xf32>, vector<8x128xf32>, vector<8x128xf32>, vector<8x128xf32>, vector<8x128xf32>, vector<8x128xf32> -> vector<8x768xf32>
    %c0_108 = arith.constant 0 : index
    %c0_109 = arith.constant 0 : index
    %515 = vector.load %arg8[%c0_108, %c0_109] : memref<768x384xf32, #tpu.memory_space<vmem>>, vector<768x384xf32>
    %cst_110 = arith.constant dense<0.000000e+00> : vector<8x384xf32>
    %516 = tpu.matmul %514, %515, %cst_110 {dimension_numbers = #tpu.dot_dimension_numbers<[1], [0], [0], [1], [0, 0, 1, 1], [], []>} : vector<8x768xf32>, vector<768x384xf32>, vector<8x384xf32> -> vector<8x384xf32>
    %c0_111 = arith.constant 0 : index
    %c0_112 = arith.constant 0 : index
    %517 = vector.load %arg9[%c0_111, %c0_112] : memref<1x384xf32, #tpu.memory_space<vmem>>, vector<1x384xf32>
    %518 = vector.broadcast %517 : vector<1x384xf32> to vector<8x384xf32>
    %519 = arith.addf %516, %518 : vector<8x384xf32>
    %cst_113 = arith.constant 0.000000e+00 : f32
    %520 = vector.broadcast %cst_113 : f32 to vector<8x384xf32>
    %521 = arith.maximumf %519, %520 : vector<8x384xf32>
    %c0_114 = arith.constant 0 : index
    %c0_115 = arith.constant 0 : index
    %522 = vector.load %arg10[%c0_114, %c0_115] : memref<1x384xf32, #tpu.memory_space<vmem>>, vector<1x384xf32>
    %523 = vector.broadcast %522 : vector<1x384xf32> to vector<8x384xf32>
    %524 = arith.mulf %521, %523 : vector<8x384xf32>
    %cst_116 = arith.constant dense<0.000000e+00> : vector<8xf32>
    %525 = vector.multi_reduction <add>, %524, %cst_116 [1] : vector<8x384xf32> to vector<8xf32>
    %526 = vector.shape_cast %525 : vector<8xf32> to vector<8x1xf32>
    %c0_117 = arith.constant 0 : index
    %c0_118 = arith.constant 0 : index
    %527 = vector.load %arg11[%c0_117, %c0_118] : memref<1x1xf32, #tpu.memory_space<vmem>>, vector<1x1xf32>
    %528 = vector.broadcast %527 : vector<1x1xf32> to vector<8x1xf32>
    %529 = arith.addf %526, %528 : vector<8x1xf32>
    %530 = arith.negf %529 : vector<8x1xf32>
    %531 = math.exp %530 : vector<8x1xf32>
    %cst_119 = arith.constant 1.000000e+00 : f32
    %532 = vector.broadcast %cst_119 : f32 to vector<8x1xf32>
    %533 = arith.addf %532, %531 : vector<8x1xf32>
    %534 = arith.divf %532, %533 : vector<8x1xf32>
    %c0_120 = arith.constant 0 : index
    %c0_121 = arith.constant 0 : index
    %535 = vector.load %arg12[%c0_120, %c0_121] : memref<8x1xf32, #tpu.memory_space<vmem>>, vector<8x1xf32>
    tpu.vector_store %arg12[%c0_120, %c0_121], %534 {strides = array<i32>} : memref<8x1xf32, #tpu.memory_space<vmem>>, vector<8x1xf32>,
    return
  }
  func.func @transform_0(%arg0: i32) -> (i32, i32, i32) {
    %c0_i32 = arith.constant 0 : i32
    %c0_i32_0 = arith.constant 0 : i32
    %c0_i32_1 = arith.constant 0 : i32
    return %c0_i32, %arg0, %c0_i32_0 : i32, i32, i32
  }
  func.func @transform_1(%arg0: i32) -> (i32, i32) {
    %c0_i32 = arith.constant 0 : i32
    %c0_i32_0 = arith.constant 0 : i32
    %c0_i32_1 = arith.constant 0 : i32
    return %c0_i32, %c0_i32_0 : i32, i32
  }
  func.func @transform_2(%arg0: i32) -> (i32, i32) {
    %c0_i32 = arith.constant 0 : i32
    %c0_i32_0 = arith.constant 0 : i32
    %c0_i32_1 = arith.constant 0 : i32
    return %c0_i32, %c0_i32_0 : i32, i32
  }
  func.func @transform_3(%arg0: i32) -> (i32, i32) {
    %c0_i32 = arith.constant 0 : i32
    %c0_i32_0 = arith.constant 0 : i32
    %c0_i32_1 = arith.constant 0 : i32
    return %c0_i32, %c0_i32_0 : i32, i32
  }
  func.func @transform_4(%arg0: i32) -> (i32, i32) {
    %c0_i32 = arith.constant 0 : i32
    %c0_i32_0 = arith.constant 0 : i32
    %c0_i32_1 = arith.constant 0 : i32
    return %c0_i32, %c0_i32_0 : i32, i32
  }
  func.func @transform_5(%arg0: i32) -> (i32, i32) {
    %c0_i32 = arith.constant 0 : i32
    %c0_i32_0 = arith.constant 0 : i32
    %c0_i32_1 = arith.constant 0 : i32
    return %c0_i32, %c0_i32_0 : i32, i32
  }
  func.func @transform_6(%arg0: i32) -> (i32, i32) {
    %c0_i32 = arith.constant 0 : i32
    %c0_i32_0 = arith.constant 0 : i32
    %c0_i32_1 = arith.constant 0 : i32
    return %c0_i32, %c0_i32_0 : i32, i32
  }
  func.func @transform_7(%arg0: i32) -> (i32, i32) {
    %c0_i32 = arith.constant 0 : i32
    %c0_i32_0 = arith.constant 0 : i32
    %c0_i32_1 = arith.constant 0 : i32
    return %c0_i32, %c0_i32_0 : i32, i32
  }
  func.func @transform_8(%arg0: i32) -> (i32, i32) {
    %c0_i32 = arith.constant 0 : i32
    %c0_i32_0 = arith.constant 0 : i32
    %c0_i32_1 = arith.constant 0 : i32
    return %c0_i32, %c0_i32_0 : i32, i32
  }
  func.func @transform_9(%arg0: i32) -> (i32, i32) {
    %c0_i32 = arith.constant 0 : i32
    %c0_i32_0 = arith.constant 0 : i32
    %c0_i32_1 = arith.constant 0 : i32
    return %c0_i32, %c0_i32_0 : i32, i32
  }
  func.func @transform_10(%arg0: i32) -> (i32, i32) {
    %c0_i32 = arith.constant 0 : i32
    %c0_i32_0 = arith.constant 0 : i32
    %c0_i32_1 = arith.constant 0 : i32
    return %c0_i32, %c0_i32_0 : i32, i32
  }
  func.func @transform_11(%arg0: i32) -> (i32, i32) {
    %c0_i32 = arith.constant 0 : i32
    %c0_i32_0 = arith.constant 0 : i32
    return %arg0, %c0_i32 : i32, i32
  }
}

</mosaic_0001>

<bundles_post_ra>
// kernel: gru_classifier_forward.1
= control target key start
LH: loop header
LB: loop body
LE: loop exit
PB: predicated region body
PF: predicated region fallthrough
CT: control target
= control target key end

     0   :  { %s9951_s0 = inlined_call_operand.vmem [shape: f32[8,16,128], index: 0, kind: input, shape index: {}]   ;;  %s9952_s1 = inlined_call_operand.vmem [shape: f32[128,768], index: 1, kind: input, shape index: {}]   ;;  %s9953_s2 = inlined_call_operand.vmem [shape: f32[1,768], index: 2, kind: input, shape index: {}]   ;;  %s9954_s3 = inlined_call_operand.vmem [shape: f32[128,384], index: 3, kind: input, shape index: {}]   ;;  %s9955_s4 = inlined_call_operand.vmem [shape: f32[1,384], index: 4, kind: input, shape index: {}]   ;;  %s9956_s5 = inlined_call_operand.hbm [shape: f32[128,384], index: 5, kind: input, shape index: {}]   ;;  %s9957_s6 = inlined_call_operand.vmem [shape: f32[1,384], index: 6, kind: input, shape index: {}]   ;;  %s9958_s7 = inlined_call_operand.vmem [shape: f32[768,384], index: 7, kind: input, shape index: {}]   ;;  %s9959_s8 = inlined_call_operand.vmem [shape: f32[1,384], index: 8, kind: input, shape index: {}]   ;;  %s9960_s9 = inlined_call_operand.vmem [shape: f32[1,384], index: 9, kind: input, shape index: {}]   ;;  %s9961_s10 = inlined_call_operand.<no memory space> [shape: f32[1,1], index: 10, kind: input, shape index: {}]   ;;  %s9962_s11 = inlined_call_operand.vmem [shape: f32[16,1], index: 11, kind: output, shape index: {}]  }
   0x1   :  { %v16_v0 = vstv %s9961_s10 }
   0x2   :  { %17 = vst [vmem:[#allocation3] sm:$0x1] %v16_v0 }
   0x3   :  { %18 = vsyncpa [#allocation6], 0  ;;  %s6131_s19 = smov 0   ;;  %s6133_s20 = smov 0  }
   0x4   :  { %s6135_s21 = smov 0  }
   0x5 LB: > { %s6147_s10 = sadd.s32 4294967295, %s6061_s21   ;;  %s6150_s22 = sadd.s32 1, %s6061_s21   ;;  %s6061_s21 = sphi %s6135_s21, %s10627_s21   ;;  %s6057_s20 = sphi %s6133_s20, %s10626_s20   ;;  %s6053_s19 = sphi %s6131_s19, %s10625_s19  }
   0x6   : > { %s28_s23 = ssub.s32 %s6061_s21, %s6150_s22  ;;  %s31_s24 = sadd.s32 1, %s6057_s20 }
   0x7   : > { %p29_p0 = scmp.eq.s32.totalorder %s28_s23, 0  ;;  %p38_p1 = scmp.ne.s32.totalorder %s6057_s20, %s6053_s19 }
   0x8   : > { %p39_p2 = scmp.eq.s32.totalorder %s6061_s21, 0  ;;  %p4632_p3 = scmp.ge.s32.totalorder %s6061_s21, 1 }
   0x9   : > { %s6160_s25 = scalar_select %p29_p0, %s6057_s20, %s31_s24  }
   0xa   : > { %p6162_p4 = por %p39_p2, %p38_p1  ;;  %p291_p5 = scmp.lt.s32.totalorder %s6061_s21, 3 }
   0xb   : > { %p5622_p6 = scmp.eq.s32.totalorder %s6147_s10, 0  ;;  %s6063_s28 = smov [#allocation5]  }
   0xc   : > { %p6168_p7 = pnand %p4632_p3, %p291_p5  ;;  %s315_s29 = sshll.u32 %s6063_s28, 4  ;;  %s316_s29 = int_to_ptr.vmem [resolvable:$true] %s315_s29 }
   0xd   : > { %s6020_s30 = scalar_lea.vmem %s316_s29, 6144  ;;  %p6028_p0 = scmp.lt.s32.totalorder %s316_s29, %s316_s29 }
   0xe   : > { %p5618_p8 = pneg %p6168_p7  ;;  %p6021_p11 = scmp.ne.s32.totalorder %s316_s29, %s6020_s30 }
   0xf   : > { %p6029_p1 = scmp.lt.s32.totalorder %s6020_s30, %s6020_s30 }
  0x10   : > { %p5619_p9 = pnand %p5622_p6, %p5618_p8 }
  0x11   : > { %p6030_p2 = por %p6029_p1, %p6028_p0 }
  0x12   : > { %p6011_p10 = pneg %p5619_p9 }
  0x14   : > { %p6023_p12 = pnand %p6021_p11, %p6011_p10 }
  0x16   : > { %p6024_p13 = pneg %p6023_p12 }
  0x18   : > { %p6031_p3 = pnand %p6030_p2, %p6024_p13 }
  0x1a   : > { %6034 = shalt.err (!%p6031_p3)
}
  0x1b   : > { %s6064_s12 = smov 384   ;;  %s6065_s13 = smov 24  }
  0x1c   : > { %5621 = dma.hbm_to_vmem [thread:$0]  (!%p5619_p9), %s9956_s5, 6144, %s316_s29, [#allocation6], %s6064_s12, %s6064_s12, %s6065_s13  }
  0x1d   : > { %p4634_p5 = scmp.ge.s32.totalorder %s6061_s21, 2 }
  0x1f   : > { %340 = sbr.rel (%p4634_p5) target bundleno = 44 (0x2c), region = 56 }
  0x24   : > { %343 = sbr.rel (!%p6162_p4) target bundleno = 44 (0x2c), region = 60  ;;  %s345_s16 = sand.u32 (%p6162_p4), 1, %s6057_s20  }
  0x25   : > { %s4636_s17 = sshll.u32 (%p6162_p4), %s6061_s21, 3  ;;  %s4635_s18 = sshll.u32 (%p6162_p4), %s345_s16, 6 }
  0x26   : > { %s349_s28 = scalar_lea.vmem (%p6162_p4), %s9951_s0, %s4636_s17  ;;  %s347_s30 = scalar_lea.vmem (%p6162_p4), [#allocation4], %s4635_s18 }
  0x27   : > { %v392_v1 = vld [vmem:[%s349_s28] sm:$0xff] (%p6162_p4)  ;;  %v394_v2 = vld [vmem:[%s349_s28 + $0x10] sm:$0xff] (%p6162_p4) }
  0x28   : > { %v396_v3 = vld [vmem:[%s349_s28 + $0x20] sm:$0xff] (%p6162_p4)  ;;  %393 = vst [vmem:[%s347_s30] sm:$0xff] (%p6162_p4), %v392_v1  ;;  %395 = vst [vmem:[%s347_s30 + $0x8] sm:$0xff] (%p6162_p4), %v394_v2  ;;  %v398_v4 = vld [vmem:[%s349_s28 + $0x30] sm:$0xff] (%p6162_p4) }
  0x29   : > { %397 = vst [vmem:[%s347_s30 + $0x10] sm:$0xff] %v396_v3  ;;  %v400_v5 = vld [vmem:[%s349_s28 + $0x40] sm:$0xff]  ;;  %v402_v6 = vld [vmem:[%s349_s28 + $0x50] sm:$0xff]  ;;  %399 = vst [vmem:[%s347_s30 + $0x18] sm:$0xff] %v398_v4 }
  0x2a   : > { %401 = vst [vmem:[%s347_s30 + $0x20] sm:$0xff] %v400_v5  ;;  %403 = vst [vmem:[%s347_s30 + $0x28] sm:$0xff] %v402_v6  ;;  %v404_v7 = vld [vmem:[%s349_s28 + $0x60] sm:$0xff]  ;;  %v406_v8 = vld [vmem:[%s349_s28 + $0x70] sm:$0xff] }
  0x2b   : > { %405 = vst [vmem:[%s347_s30 + $0x30] sm:$0xff] %v404_v7  ;;  %407 = vst [vmem:[%s347_s30 + $0x38] sm:$0xff] %v406_v8 }
  0x2c PF: > { %416 = sbr.rel (%p6168_p7) target bundleno = 2664 (0xa68), region = 98 }
  0x31   : > { %s419_s21 = sand.u32 1, %s6053_s19  }
  0x32   : > { %s4638_s26 = sshll.u32 %s419_s21, 6 }
  0x33   : > { %s6190_s29 = scalar_lea.vmem [#allocation4], %s4638_s26 }
  0x34   : > { %6048 = dma.done.wait (%p5622_p6), [#allocation6], 6144  }
  0x35   : > { %6050 = vsyncadd (%p5622_p6), [#allocation6], 4294961152  ;;  %v9984_v9 = vmov 0.0   ;;  %v564_v10 = vld [vmem:[%s9952_s1 + $0x2d8] sm:$0xff]  ;;  %v566_v11 = vld [vmem:[%s9952_s1 + $0x2e8] sm:$0xff]  ;;  %vm6067_vm0 = vmmov 0  }
  0x36   : > { %778 = vmatprep.mubr.f32.mxu1 %v9984_v9  ;;  %665 = vmatprep.mubr.f32.mxu0 %v9984_v9  ;;  %v563_v12 = vld [vmem:[%s9952_s1 + $0x2d0] sm:$0xff]  ;;  %v565_v13 = vld [vmem:[%s9952_s1 + $0x2e0] sm:$0xff]  ;;  %v558_v14 = vld [vmem:[%s9952_s1 + $0x2a8] sm:$0xff]  ;;  %p461_p4 = scmp.lt.s32.totalorder %s6147_s10, 1  ;;  %vm4557_vm1 = vcmask 7168  }
  0x37   : > { %601 = vmatprep.subr.mxu0 %v564_v10  ;;  %714 = vmatprep.subr.mxu1 %v566_v11  ;;  %v560_v15 = vld [vmem:[%s9952_s1 + $0x2b8] sm:$0xff]  ;;  %v557_v16 = vld [vmem:[%s9952_s1 + $0x2a0] sm:$0xff]  ;;  %v559_v17 = vld [vmem:[%s9952_s1 + $0x2b0] sm:$0xff] }
  0x38   : > { %602 = vmatpush1.msra.mxu0 %v563_v12  ;;  %715 = vmatpush1.msra.mxu1 %v565_v13  ;;  %v552_v18 = vld [vmem:[%s9952_s1 + $0x278] sm:$0xff]  ;;  %v554_v19 = vld [vmem:[%s9952_s1 + $0x288] sm:$0xff]  ;;  %v551_v20 = vld [vmem:[%s9952_s1 + $0x270] sm:$0xff]  ;;  %s10629_s10 = smov (!%p461_p4, %s6147_s10), 1 }
  0x39   : > { %603 = vmatprep.subr.mxu0 %v558_v14  ;;  %716 = vmatprep.subr.mxu1 %v560_v15  ;;  %v553_v21 = vld [vmem:[%s9952_s1 + $0x280] sm:$0xff]  ;;  %v546_v22 = vld [vmem:[%s9952_s1 + $0x248] sm:$0xff]  ;;  %v548_v23 = vld [vmem:[%s9952_s1 + $0x258] sm:$0xff]  ;;  %s4640_s23 = sshll.u32 %s10629_s10, 3 }
  0x3a   : > { %604 = vmatpush1.msra.mxu0 %v557_v16  ;;  %717 = vmatpush1.msra.mxu1 %v559_v17  ;;  %v545_v24 = vld [vmem:[%s9952_s1 + $0x240] sm:$0xff]  ;;  %v547_v25 = vld [vmem:[%s9952_s1 + $0x250] sm:$0xff]  ;;  %v540_v26 = vld [vmem:[%s9952_s1 + $0x218] sm:$0xff]  ;;  %s464_s30 = scalar_lea.vmem %s9962_s11, %s4640_s23 }
  0x3b   : > { %605 = vmatprep.subr.mxu0 %v552_v18  ;;  %718 = vmatprep.subr.mxu1 %v554_v19  ;;  %v542_v27 = vld [vmem:[%s9952_s1 + $0x228] sm:$0xff]  ;;  %v539_v28 = vld [vmem:[%s9952_s1 + $0x210] sm:$0xff]  ;;  %v541_v29 = vld [vmem:[%s9952_s1 + $0x220] sm:$0xff] }
  0x3c   : > { %606 = vmatpush1.msra.mxu0 %v551_v20  ;;  %719 = vmatpush1.msra.mxu1 %v553_v21  ;;  %v534_v30 = vld [vmem:[%s9952_s1 + $0x1e8] sm:$0xff]  ;;  %v536_v31 = vld [vmem:[%s9952_s1 + $0x1f8] sm:$0xff]  ;;  %v533_v32 = vld [vmem:[%s9952_s1 + $0x1e0] sm:$0xff] }
  0x3d   : > { %607 = vmatprep.subr.mxu0 %v546_v22  ;;  %720 = vmatprep.subr.mxu1 %v548_v23  ;;  %v535_v33 = vld [vmem:[%s9952_s1 + $0x1f0] sm:$0xff]  ;;  %v528_v34 = vld [vmem:[%s9952_s1 + $0x1b8] sm:$0xff]  ;;  %v530_v35 = vld [vmem:[%s9952_s1 + $0x1c8] sm:$0xff] }
  0x3e   : > { %608 = vmatpush1.msra.mxu0 %v545_v24  ;;  %721 = vmatpush1.msra.mxu1 %v547_v25  ;;  %v527_v36 = vld [vmem:[%s9952_s1 + $0x1b0] sm:$0xff]  ;;  %v529_v37 = vld [vmem:[%s9952_s1 + $0x1c0] sm:$0xff]  ;;  %v522_v38 = vld [vmem:[%s9952_s1 + $0x188] sm:$0xff] }
  0x3f   : > { %609 = vmatprep.subr.mxu0 %v540_v26  ;;  %722 = vmatprep.subr.mxu1 %v542_v27  ;;  %v524_v39 = vld [vmem:[%s9952_s1 + $0x198] sm:$0xff]  ;;  %v521_v40 = vld [vmem:[%s9952_s1 + $0x180] sm:$0xff]  ;;  %v523_v41 = vld [vmem:[%s9952_s1 + $0x190] sm:$0xff] }
  0x40   : > { %610 = vmatpush1.msra.mxu0 %v539_v28  ;;  %723 = vmatpush1.msra.mxu1 %v541_v29  ;;  %v516_v42 = vld [vmem:[%s9952_s1 + $0x158] sm:$0xff]  ;;  %v518_v43 = vld [vmem:[%s9952_s1 + $0x168] sm:$0xff]  ;;  %v515_v44 = vld [vmem:[%s9952_s1 + $0x150] sm:$0xff] }
  0x41   : > { %611 = vmatprep.subr.mxu0 %v534_v30  ;;  %724 = vmatprep.subr.mxu1 %v536_v31  ;;  %v517_v45 = vld [vmem:[%s9952_s1 + $0x160] sm:$0xff]  ;;  %v510_v46 = vld [vmem:[%s9952_s1 + $0x128] sm:$0xff]  ;;  %v512_v47 = vld [vmem:[%s9952_s1 + $0x138] sm:$0xff] }
  0x42   : > { %612 = vmatpush1.msra.mxu0 %v533_v32  ;;  %725 = vmatpush1.msra.mxu1 %v535_v33  ;;  %v509_v48 = vld [vmem:[%s9952_s1 + $0x120] sm:$0xff]  ;;  %v511_v49 = vld [vmem:[%s9952_s1 + $0x130] sm:$0xff]  ;;  %v504_v50 = vld [vmem:[%s9952_s1 + $0xf8] sm:$0xff] }
  0x43   : > { %613 = vmatprep.subr.mxu0 %v528_v34  ;;  %726 = vmatprep.subr.mxu1 %v530_v35  ;;  %v506_v51 = vld [vmem:[%s9952_s1 + $0x108] sm:$0xff]  ;;  %v503_v52 = vld [vmem:[%s9952_s1 + $0xf0] sm:$0xff]  ;;  %v505_v53 = vld [vmem:[%s9952_s1 + $0x100] sm:$0xff] }
  0x44   : > { %614 = vmatpush1.msra.mxu0 %v527_v36  ;;  %727 = vmatpush1.msra.mxu1 %v529_v37  ;;  %v498_v54 = vld [vmem:[%s9952_s1 + $0xc8] sm:$0xff]  ;;  %v500_v55 = vld [vmem:[%s9952_s1 + $0xd8] sm:$0xff]  ;;  %v497_v56 = vld [vmem:[%s9952_s1 + $0xc0] sm:$0xff] }
  0x45   : > { %615 = vmatprep.subr.mxu0 %v522_v38  ;;  %728 = vmatprep.subr.mxu1 %v524_v39  ;;  %v499_v57 = vld [vmem:[%s9952_s1 + $0xd0] sm:$0xff]  ;;  %v492_v58 = vld [vmem:[%s9952_s1 + $0x98] sm:$0xff]  ;;  %v494_v59 = vld [vmem:[%s9952_s1 + $0xa8] sm:$0xff] }
  0x46   : > { %616 = vmatpush1.msra.mxu0 %v521_v40  ;;  %729 = vmatpush1.msra.mxu1 %v523_v41  ;;  %v491_v60 = vld [vmem:[%s9952_s1 + $0x90] sm:$0xff]  ;;  %v493_v61 = vld [vmem:[%s9952_s1 + $0xa0] sm:$0xff]  ;;  %v486_v62 = vld [vmem:[%s9952_s1 + $0x68] sm:$0xff] }
  0x47   : > { %617 = vmatprep.subr.mxu0 %v516_v42  ;;  %730 = vmatprep.subr.mxu1 %v518_v43  ;;  %v488_v63 = vld [vmem:[%s9952_s1 + $0x78] sm:$0xff]  ;;  %v485_v0 = vld [vmem:[%s9952_s1 + $0x60] sm:$0xff]  ;;  %v487_v1 = vld [vmem:[%s9952_s1 + $0x70] sm:$0xff] }
  0x48   : > { %618 = vmatpush1.msra.mxu0 %v515_v44  ;;  %731 = vmatpush1.msra.mxu1 %v517_v45  ;;  %v480_v2 = vld [vmem:[%s9952_s1 + $0x38] sm:$0xff]  ;;  %v482_v3 = vld [vmem:[%s9952_s1 + $0x48] sm:$0xff]  ;;  %v479_v4 = vld [vmem:[%s9952_s1 + $0x30] sm:$0xff] }
  0x49   : > { %619 = vmatprep.subr.mxu0 %v510_v46  ;;  %732 = vmatprep.subr.mxu1 %v512_v47  ;;  %v481_v5 = vld [vmem:[%s9952_s1 + $0x40] sm:$0xff]  ;;  %v474_v6 = vld [vmem:[%s9952_s1 + $0x8] sm:$0xff]  ;;  %v476_v7 = vld [vmem:[%s9952_s1 + $0x18] sm:$0xff] }
  0x4a   : > { %620 = vmatpush1.msra.mxu0 %v509_v48  ;;  %733 = vmatpush1.msra.mxu1 %v511_v49  ;;  %v473_v8 = vld [vmem:[%s9952_s1] sm:$0xff]  ;;  %v475_v10 = vld [vmem:[%s9952_s1 + $0x10] sm:$0xff]  ;;  %v568_v12 = vld [vmem:[%s9952_s1 + $0x2f8] sm:$0xff] }
  0x4b   : > { %621 = vmatprep.subr.mxu0 %v504_v50  ;;  %734 = vmatprep.subr.mxu1 %v506_v51  ;;  %v6391_v11 = vld [vmem:[%s6190_s29] sm:$0xff]  ;;  %v6399_v13 = vld [vmem:[%s9954_s3 + $0x170] sm:$0xff]  ;;  %v6416_v17 = vld [vmem:[%s9954_s3 + $0x158] sm:$0xff] }
  0x4c   : > { %622 = vmatpush1.msra.mxu0 %v503_v52  ;;  %735 = vmatpush1.msra.mxu1 %v505_v53  ;;  %v567_v14 = vld [vmem:[%s9952_s1 + $0x2f0] sm:$0xff]  ;;  %v6407_v15 = vld [vmem:[%s9954_s3 + $0x168] sm:$0xff]  ;;  %v561_v18 = vld [vmem:[%s9952_s1 + $0x2c0] sm:$0xff] }
  0x4d   : > { %623 = vmatprep.subr.mxu0 %v498_v54  ;;  %736 = vmatprep.subr.mxu1 %v500_v55  ;;  %v562_v16 = vld [vmem:[%s9952_s1 + $0x2c8] sm:$0xff]  ;;  %v6427_v19 = vld [vmem:[%s9954_s3 + $0x150] sm:$0xff]  ;;  %v556_v21 = vld [vmem:[%s9952_s1 + $0x298] sm:$0xff] }
  0x4e   : > { %624 = vmatpush1.msra.mxu0 %v497_v56  ;;  %737 = vmatpush1.msra.mxu1 %v499_v57  ;;  %v6431_v20 = vld [vmem:[%s6190_s29 + $0x8] sm:$0xff]  ;;  %v6440_v22 = vld [vmem:[%s9954_s3 + $0x140] sm:$0xff]  ;;  %v6450_v24 = vld [vmem:[%s9954_s3 + $0x138] sm:$0xff] }
  0x4f   : > { %625 = vmatprep.subr.mxu0 %v492_v58  ;;  %738 = vmatprep.subr.mxu1 %v494_v59  ;;  %v555_v23 = vld [vmem:[%s9952_s1 + $0x290] sm:$0xff]  ;;  %v550_v25 = vld [vmem:[%s9952_s1 + $0x268] sm:$0xff]  ;;  %v549_v27 = vld [vmem:[%s9952_s1 + $0x260] sm:$0xff] }
  0x50   : > { %626 = vmatpush1.msra.mxu0 %v491_v60  ;;  %739 = vmatpush1.msra.mxu1 %v493_v61  ;;  %v6459_v26 = vld [vmem:[%s9954_s3 + $0x128] sm:$0xff]  ;;  %v6470_v28 = vld [vmem:[%s9954_s3 + $0x120] sm:$0xff]  ;;  %v6474_v29 = vld [vmem:[%s6190_s29 + $0x10] sm:$0xff] }
  0x51   : > { %627 = vmatprep.subr.mxu0 %v486_v62  ;;  %740 = vmatprep.subr.mxu1 %v488_v63  ;;  %v544_v30 = vld [vmem:[%s9952_s1 + $0x238] sm:$0xff]  ;;  %v6483_v31 = vld [vmem:[%s9954_s3 + $0x110] sm:$0xff]  ;;  %v6493_v33 = vld [vmem:[%s9954_s3 + $0x108] sm:$0xff] }
  0x52   : > { %628 = vmatpush1.msra.mxu0 %v485_v0  ;;  %741 = vmatpush1.msra.mxu1 %v487_v1  ;;  %v543_v32 = vld [vmem:[%s9952_s1 + $0x230] sm:$0xff]  ;;  %v538_v34 = vld [vmem:[%s9952_s1 + $0x208] sm:$0xff]  ;;  %v6502_v35 = vld [vmem:[%s9954_s3 + $0xf8] sm:$0xff] }
  0x53   : > { %629 = vmatprep.subr.mxu0 %v480_v2  ;;  %742 = vmatprep.subr.mxu1 %v482_v3  ;;  %v537_v36 = vld [vmem:[%s9952_s1 + $0x200] sm:$0xff]  ;;  %v6513_v37 = vld [vmem:[%s9954_s3 + $0xf0] sm:$0xff]  ;;  %v532_v39 = vld [vmem:[%s9952_s1 + $0x1d8] sm:$0xff] }
  0x54   : > { %630 = vmatpush1.msra.mxu0 %v479_v4  ;;  %743 = vmatpush1.msra.mxu1 %v481_v5  ;;  %v6517_v38 = vld [vmem:[%s6190_s29 + $0x18] sm:$0xff]  ;;  %v531_v41 = vld [vmem:[%s9952_s1 + $0x1d0] sm:$0xff]  ;;  %v526_v43 = vld [vmem:[%s9952_s1 + $0x1a8] sm:$0xff] }
  0x55   : > { %631 = vmatprep.subr.mxu0 %v474_v6  ;;  %744 = vmatprep.subr.mxu1 %v476_v7  ;;  %v6526_v40 = vld [vmem:[%s9954_s3 + $0xe0] sm:$0xff]  ;;  %v6536_v42 = vld [vmem:[%s9954_s3 + $0xd8] sm:$0xff]  ;;  %v6545_v44 = vld [vmem:[%s9954_s3 + $0xc8] sm:$0xff] }
  0x56   : > { %632 = vmatpush1.msra.mxu0 %v473_v8  ;;  %745 = vmatpush1.msra.mxu1 %v475_v10  ;;  %v525_v45 = vld [vmem:[%s9952_s1 + $0x1a0] sm:$0xff]  ;;  %v520_v48 = vld [vmem:[%s9952_s1 + $0x178] sm:$0xff]  ;;  %v6569_v49 = vld [vmem:[%s9954_s3 + $0xb0] sm:$0xff] }
  0x57   : > { %779 = vmatmul.mubr.f32.vlgmr.msra.gmra.mxu1 %v6391_v11  ;;  %827 = vmatprep.subr.mxu0 %v568_v12  ;;  %v6556_v46 = vld [vmem:[%s9954_s3 + $0xc0] sm:$0xff]  ;;  %v519_v50 = vld [vmem:[%s9952_s1 + $0x170] sm:$0xff]  ;;  %v6579_v51 = vld [vmem:[%s9954_s3 + $0xa8] sm:$0xff] }
  0x58   : > { %1124 = vmatprep.subr.mxu1 %v6399_v13  ;;  %666 = vmatmul.mubr.f32.vlgmr.msra.gmra.mxu0 %v6391_v11  ;;  %v6560_v47 = vld [vmem:[%s6190_s29 + $0x20] sm:$0xff]  ;;  %v6588_v53 = vld [vmem:[%s9954_s3 + $0x98] sm:$0xff]  ;;  %v6599_v55 = vld [vmem:[%s9954_s3 + $0x90] sm:$0xff] }
  0x59   : > { %828 = vmatpush1.msra.mxu0 %v567_v14  ;;  %1125 = vmatpush1.msra.mxu1 %v6407_v15  ;;  %v514_v52 = vld [vmem:[%s9952_s1 + $0x148] sm:$0xff]  ;;  %v513_v54 = vld [vmem:[%s9952_s1 + $0x140] sm:$0xff]  ;;  %v508_v57 = vld [vmem:[%s9952_s1 + $0x118] sm:$0xff] }
  0x5a   : > { %829 = vmatprep.subr.mxu0 %v562_v16  ;;  %1126 = vmatprep.subr.mxu1 %v6416_v17  ;;  %v6603_v56 = vld [vmem:[%s6190_s29 + $0x28] sm:$0xff]  ;;  %v6612_v58 = vld [vmem:[%s9954_s3 + $0x80] sm:$0xff]  ;;  %v6622_v60 = vld [vmem:[%s9954_s3 + $0x78] sm:$0xff] }
  0x5b   : > { %784 = vmatprep.mubr.f32.mxu1 %v9984_v9  ;;  %830 = vmatpush1.msra.mxu0 %v561_v18  ;;  %v507_v59 = vld [vmem:[%s9952_s1 + $0x110] sm:$0xff]  ;;  %v502_v61 = vld [vmem:[%s9952_s1 + $0xe8] sm:$0xff]  ;;  %v501_v63 = vld [vmem:[%s9952_s1 + $0xe0] sm:$0xff] }
  0x5c   : > { %1127 = vmatpush1.msra.mxu1 %v6427_v19  ;;  %671 = vmatprep.mubr.f32.mxu0 %v9984_v9  ;;  %v6631_v62 = vld [vmem:[%s9954_s3 + $0x68] sm:$0xff]  ;;  %v6642_v0 = vld [vmem:[%s9954_s3 + $0x60] sm:$0xff]  ;;  %v6646_v1 = vld [vmem:[%s6190_s29 + $0x30] sm:$0xff] }
  0x5d   : > { %785 = vmatmul.mubr.f32.gmra.mxu1 %v6431_v20  ;;  %831 = vmatprep.subr.mxu0 %v556_v21  ;;  %v496_v2 = vld [vmem:[%s9952_s1 + $0xb8] sm:$0xff]  ;;  %v6655_v3 = vld [vmem:[%s9954_s3 + $0x50] sm:$0xff]  ;;  %v6665_v5 = vld [vmem:[%s9954_s3 + $0x48] sm:$0xff] }
  0x5e   : > { %1128 = vmatprep.subr.mxu1 %v6440_v22  ;;  %672 = vmatmul.mubr.f32.gmra.mxu0 %v6431_v20  ;;  %v495_v4 = vld [vmem:[%s9952_s1 + $0xb0] sm:$0xff]  ;;  %v490_v6 = vld [vmem:[%s9952_s1 + $0x88] sm:$0xff]  ;;  %v6674_v7 = vld [vmem:[%s9954_s3 + $0x38] sm:$0xff] }
  0x5f   : > { %832 = vmatpush1.msra.mxu0 %v555_v23  ;;  %1129 = vmatpush1.msra.mxu1 %v6450_v24  ;;  %v489_v8 = vld [vmem:[%s9952_s1 + $0x80] sm:$0xff]  ;;  %v6685_v10 = vld [vmem:[%s9954_s3 + $0x30] sm:$0xff]  ;;  %v484_v14 = vld [vmem:[%s9952_s1 + $0x58] sm:$0xff] }
  0x60   : > { %833 = vmatprep.subr.mxu0 %v550_v25  ;;  %1130 = vmatprep.subr.mxu1 %v6459_v26  ;;  %v6689_v12 = vld [vmem:[%s6190_s29 + $0x38] sm:$0xff]  ;;  %v483_v18 = vld [vmem:[%s9952_s1 + $0x50] sm:$0xff]  ;;  %v478_v23 = vld [vmem:[%s9952_s1 + $0x28] sm:$0xff] }
  0x61   : > { %790 = vmatprep.mubr.f32.mxu1 %v9984_v9  ;;  %834 = vmatpush1.msra.mxu0 %v549_v27  ;;  %v6698_v16 = vld [vmem:[%s9954_s3 + $0x20] sm:$0xff]  ;;  %v6708_v21 = vld [vmem:[%s9954_s3 + $0x18] sm:$0xff]  ;;  %v6717_v25 = vld [vmem:[%s9954_s3 + $0x8] sm:$0xff] }
  0x62   : > { %1131 = vmatpush1.msra.mxu1 %v6470_v28  ;;  %677 = vmatprep.mubr.f32.mxu0 %v9984_v9  ;;  %v477_v27 = vld [vmem:[%s9952_s1 + $0x20] sm:$0xff] }
  0x63   : > { %791 = vmatmul.mubr.f32.gmra.mxu1 %v6474_v29  ;;  %835 = vmatprep.subr.mxu0 %v544_v30  ;;  %v6727_v30 = vld [vmem:[%s9954_s3] sm:$0xff] }
  0x64   : > { %1132 = vmatprep.subr.mxu1 %v6483_v31  ;;  %678 = vmatmul.mubr.f32.gmra.mxu0 %v6474_v29 }
  0x65   : > { %836 = vmatpush1.msra.mxu0 %v543_v32  ;;  %1133 = vmatpush1.msra.mxu1 %v6493_v33  ;;  %v6732_v32 = vld [vmem:[#allocation5 + $0x170] sm:$0xff] }
  0x66   : > { %837 = vmatprep.subr.mxu0 %v538_v34  ;;  %1134 = vmatprep.subr.mxu1 %v6502_v35  ;;  %v6739_v34 = vld [vmem:[%s9954_s3 + $0x178] sm:$0xff] }
  0x67   : > { %796 = vmatprep.mubr.f32.mxu1 %v9984_v9  ;;  %838 = vmatpush1.msra.mxu0 %v537_v36  ;;  %v6741_v36 = vld [vmem:[#allocation5 + $0x168] sm:$0xff] }
  0x68   : > { %1135 = vmatpush1.msra.mxu1 %v6513_v37  ;;  %683 = vmatprep.mubr.f32.mxu0 %v9984_v9 }
  0x69   : > { %797 = vmatmul.mubr.f32.gmra.mxu1 %v6517_v38  ;;  %839 = vmatprep.subr.mxu0 %v532_v39  ;;  %v6745_v39 = vld [vmem:[#allocation5 + $0x158] sm:$0xff] }
  0x6a   : > { %1136 = vmatprep.subr.mxu1 %v6526_v40  ;;  %684 = vmatmul.mubr.f32.gmra.mxu0 %v6517_v38 }
  0x6b   : > { %840 = vmatpush1.msra.mxu0 %v531_v41  ;;  %1137 = vmatpush1.msra.mxu1 %v6536_v42  ;;  %v6752_v41 = vld [vmem:[%s9954_s3 + $0x160] sm:$0xff] }
  0x6c   : > { %841 = vmatprep.subr.mxu0 %v526_v43  ;;  %1138 = vmatprep.subr.mxu1 %v6545_v44  ;;  %v6754_v43 = vld [vmem:[#allocation5 + $0x150] sm:$0xff] }
  0x6d   : > { %802 = vmatprep.mubr.f32.mxu1 %v9984_v9  ;;  %842 = vmatpush1.msra.mxu0 %v525_v45  ;;  %v6760_v45 = vld [vmem:[#allocation5 + $0x140] sm:$0xff] }
  0x6e   : > { %1139 = vmatpush1.msra.mxu1 %v6556_v46  ;;  %689 = vmatprep.mubr.f32.mxu0 %v9984_v9 }
  0x6f   : > { %803 = vmatmul.mubr.f32.gmra.mxu1 %v6560_v47  ;;  %843 = vmatprep.subr.mxu0 %v520_v48  ;;  %v6769_v48 = vld [vmem:[#allocation5 + $0x138] sm:$0xff] }
  0x70   : > { %1140 = vmatprep.subr.mxu1 %v6569_v49  ;;  %690 = vmatmul.mubr.f32.gmra.mxu0 %v6560_v47 }
  0x71   : > { %844 = vmatpush1.msra.mxu0 %v519_v50  ;;  %1141 = vmatpush1.msra.mxu1 %v6579_v51  ;;  %v6773_v50 = vld [vmem:[#allocation5 + $0x128] sm:$0xff] }
  0x72   : > { %845 = vmatprep.subr.mxu0 %v514_v52  ;;  %1142 = vmatprep.subr.mxu1 %v6588_v53  ;;  %v6780_v52 = vld [vmem:[%s9954_s3 + $0x130] sm:$0xff] }
  0x73   : > { %808 = vmatprep.mubr.f32.mxu1 %v9984_v9  ;;  %846 = vmatpush1.msra.mxu0 %v513_v54  ;;  %v6782_v54 = vld [vmem:[#allocation5 + $0x120] sm:$0xff] }
  0x74   : > { %1143 = vmatpush1.msra.mxu1 %v6599_v55  ;;  %695 = vmatprep.mubr.f32.mxu0 %v9984_v9 }
  0x75   : > { %809 = vmatmul.mubr.f32.gmra.mxu1 %v6603_v56  ;;  %847 = vmatprep.subr.mxu0 %v508_v57  ;;  %v6788_v57 = vld [vmem:[#allocation5 + $0x110] sm:$0xff] }
  0x76   : > { %1144 = vmatprep.subr.mxu1 %v6612_v58  ;;  %696 = vmatmul.mubr.f32.gmra.mxu0 %v6603_v56 }
  0x77   : > { %848 = vmatpush1.msra.mxu0 %v507_v59  ;;  %1145 = vmatpush1.msra.mxu1 %v6622_v60  ;;  %v6797_v59 = vld [vmem:[#allocation5 + $0x108] sm:$0xff] }
  0x78   : > { %849 = vmatprep.subr.mxu0 %v502_v61  ;;  %1146 = vmatprep.subr.mxu1 %v6631_v62  ;;  %v6801_v61 = vld [vmem:[#allocation5 + $0xf8] sm:$0xff] }
  0x79   : > { %814 = vmatprep.mubr.f32.mxu1 %v9984_v9  ;;  %850 = vmatpush1.msra.mxu0 %v501_v63  ;;  %10177 = vst [vmem:[#allocation8_spill] sm:$0xff] %v6801_v61  ;;  %v6808_v63 = vld [vmem:[%s9954_s3 + $0x100] sm:$0xff] }
  0x7a   : > { %1147 = vmatpush1.msra.mxu1 %v6642_v0  ;;  %701 = vmatprep.mubr.f32.mxu0 %v9984_v9 }
  0x7b   : > { %815 = vmatmul.mubr.f32.gmra.mxu1 %v6646_v1  ;;  %851 = vmatprep.subr.mxu0 %v496_v2  ;;  %v6810_v2 = vld [vmem:[#allocation5 + $0xf0] sm:$0xff] }
  0x7c   : > { %1148 = vmatprep.subr.mxu1 %v6655_v3  ;;  %702 = vmatmul.mubr.f32.gmra.mxu0 %v6646_v1  ;;  %10178 = vst [vmem:[#allocation9_spill] sm:$0xff] %v6810_v2 }
  0x7d   : > { %852 = vmatpush1.msra.mxu0 %v495_v4  ;;  %1149 = vmatpush1.msra.mxu1 %v6665_v5  ;;  %v6816_v4 = vld [vmem:[#allocation5 + $0xe0] sm:$0xff] }
  0x7e   : > { %853 = vmatprep.subr.mxu0 %v490_v6  ;;  %1150 = vmatprep.subr.mxu1 %v6674_v7  ;;  %10179 = vst [vmem:[#allocation10_spill] sm:$0xff] %v6816_v4  ;;  %v6825_v6 = vld [vmem:[#allocation5 + $0xd8] sm:$0xff] }
  0x7f   : > { %820 = vmatprep.mubr.f32.mxu1 %v9984_v9  ;;  %854 = vmatpush1.msra.mxu0 %v489_v8  ;;  %10180 = vst [vmem:[#allocation11_spill] sm:$0xff] %v6825_v6  ;;  %v6829_v8 = vld [vmem:[#allocation5 + $0xc8] sm:$0xff] }
  0x80   : > { %1151 = vmatpush1.msra.mxu1 %v6685_v10  ;;  %707 = vmatprep.mubr.f32.mxu0 %v9984_v9  ;;  %10181 = vst [vmem:[#allocation12_spill] sm:$0xff] %v6829_v8 }
  0x81   : > { %821 = vmatmul.mubr.f32.gmra.mxu1 %v6689_v12  ;;  %855 = vmatprep.subr.mxu0 %v484_v14  ;;  %v6836_v14 = vld [vmem:[%s9954_s3 + $0xd0] sm:$0xff] }
  0x82   : > { %1152 = vmatprep.subr.mxu1 %v6698_v16  ;;  %708 = vmatmul.mubr.f32.gmra.mxu0 %v6689_v12 }
  0x83   : > { %856 = vmatpush1.msra.mxu0 %v483_v18  ;;  %1153 = vmatpush1.msra.mxu1 %v6708_v21  ;;  %v6838_v18 = vld [vmem:[#allocation5 + $0xc0] sm:$0xff] }
  0x84   : > { %857 = vmatprep.subr.mxu0 %v478_v23  ;;  %1154 = vmatprep.subr.mxu1 %v6717_v25  ;;  %10182 = vst [vmem:[#allocation13_spill] sm:$0xff] %v6838_v18  ;;  %v6844_v23 = vld [vmem:[#allocation5 + $0xb0] sm:$0xff] }
  0x85   : > { %858 = vmatpush1.msra.mxu0 %v477_v27  ;;  %1155 = vmatpush1.msra.mxu1 %v6727_v30  ;;  %10183 = vst [vmem:[#allocation14_spill] sm:$0xff] %v6844_v23  ;;  %v6853_v27 = vld [vmem:[#allocation5 + $0xa8] sm:$0xff] }
  0x86   : > { %1188 = vmatprep.mubr.f32.mxu1 %v9984_v9  ;;  %891 = vmatprep.mubr.f32.mxu0 %v9984_v9  ;;  %10184 = vst [vmem:[#allocation15_spill] sm:$0xff] %v6853_v27 }
  0x87   : > { %1189 = vmatmul.mubr.f32.vlgmr.msra.gmra.mxu1 %v9984_v9  ;;  %5054 = vmatprep.subr.mxu0 %v9984_v9 }
  0x88   : > { %1286 = vmatprep.subr.mxu1 %v6732_v32  ;;  %892 = vmatmul.mubr.f32.vlgmr.msra.gmra.mxu0 %v6391_v11  ;;  %v6767_v11 = vld [vmem:[%s9954_s3 + $0x148] sm:$0xff] }
  0x89   : > { %5055 = vmatpush3.msra.mxu0 %v6739_v34  ;;  %1287 = vmatpush1.msra.mxu1 %v6741_v36 }
  0x8a   : > { %5056 = vmatprep.subr.mxu0 %v9984_v9  ;;  %1288 = vmatprep.subr.mxu1 %v6745_v39 }
  0x8b   : > { %5057 = vmatpush3.msra.mxu0 %v6752_v41  ;;  %1289 = vmatpush1.msra.mxu1 %v6754_v43 }
  0x8c   : > { %897 = vmatprep.mubr.f32.mxu0 %v9984_v9  ;;  %5058 = vmatprep.subr.mxu0 %v9984_v9 }
  0x8d   : > { %1290 = vmatprep.subr.mxu1 %v6760_v45  ;;  %898 = vmatmul.mubr.f32.gmra.mxu0 %v6431_v20  ;;  %v6795_v20 = vld [vmem:[%s9954_s3 + $0x118] sm:$0xff] }
  0x8e   : > { %5059 = vmatpush3.msra.mxu0 %v6767_v11  ;;  %1291 = vmatpush1.msra.mxu1 %v6769_v48 }
  0x8f   : > { %5060 = vmatprep.subr.mxu0 %v9984_v9  ;;  %1292 = vmatprep.subr.mxu1 %v6773_v50 }
  0x90   : > { %5061 = vmatpush3.msra.mxu0 %v6780_v52  ;;  %1293 = vmatpush1.msra.mxu1 %v6782_v54 }
  0x91   : > { %903 = vmatprep.mubr.f32.mxu0 %v9984_v9  ;;  %5062 = vmatprep.subr.mxu0 %v9984_v9 }
  0x92   : > { %1294 = vmatprep.subr.mxu1 %v6788_v57  ;;  %904 = vmatmul.mubr.f32.gmra.mxu0 %v6474_v29  ;;  %v6823_v29 = vld [vmem:[%s9954_s3 + $0xe8] sm:$0xff] }
  0x93   : > { %5063 = vmatpush3.msra.mxu0 %v6795_v20  ;;  %1295 = vmatpush1.msra.mxu1 %v6797_v59 }
  0x94   : > { %5064 = vmatprep.subr.mxu0 %v9984_v9  ;;  %1296 = vmatprep.subr.mxu1 %v6801_v61  ;;  %v6928_v61 = vld [vmem:[#allocation5 + $0x20] sm:$0xff] }
  0x95   : > { %5065 = vmatpush3.msra.mxu0 %v6808_v63  ;;  %1297 = vmatpush1.msra.mxu1 %v6810_v2  ;;  %v6900_v2 = vld [vmem:[#allocation5 + $0x50] sm:$0xff] }
  0x96   : > { %909 = vmatprep.mubr.f32.mxu0 %v9984_v9  ;;  %5066 = vmatprep.subr.mxu0 %v9984_v9  ;;  %10193 = vst [vmem:[#allocation24_spill] sm:$0xff] %v6900_v2 }
  0x97   : > { %1298 = vmatprep.subr.mxu1 %v6816_v4  ;;  %910 = vmatmul.mubr.f32.gmra.mxu0 %v6517_v38  ;;  %v6851_v38 = vld [vmem:[%s9954_s3 + $0xb8] sm:$0xff]  ;;  %v6872_v4 = vld [vmem:[#allocation5 + $0x80] sm:$0xff] }
  0x98   : > { %5067 = vmatpush3.msra.mxu0 %v6823_v29  ;;  %1299 = vmatpush1.msra.mxu1 %v6825_v6  ;;  %v6857_v6 = vld [vmem:[#allocation5 + $0x98] sm:$0xff]  ;;  %10187 = vst [vmem:[#allocation18_spill] sm:$0xff] %v6872_v4 }
  0x99   : > { %5068 = vmatprep.subr.mxu0 %v9984_v9  ;;  %1300 = vmatprep.subr.mxu1 %v6829_v8  ;;  %10185 = vst [vmem:[#allocation16_spill] sm:$0xff] %v6857_v6  ;;  %v6866_v8 = vld [vmem:[#allocation5 + $0x90] sm:$0xff] }
  0x9a   : > { %5069 = vmatpush3.msra.mxu0 %v6836_v14  ;;  %1301 = vmatpush1.msra.mxu1 %v6838_v18  ;;  %v6864_v18 = vld [vmem:[%s9954_s3 + $0xa0] sm:$0xff]  ;;  %10186 = vst [vmem:[#allocation17_spill] sm:$0xff] %v6866_v8 }
  0x9b   : > { %915 = vmatprep.mubr.f32.mxu0 %v9984_v9  ;;  %5070 = vmatprep.subr.mxu0 %v9984_v9 }
  0x9c   : > { %1302 = vmatprep.subr.mxu1 %v6844_v23  ;;  %916 = vmatmul.mubr.f32.gmra.mxu0 %v6560_v47  ;;  %v6879_v47 = vld [vmem:[%s9954_s3 + $0x88] sm:$0xff]  ;;  %v6881_v23 = vld [vmem:[#allocation5 + $0x78] sm:$0xff] }
  0x9d   : > { %5071 = vmatpush3.msra.mxu0 %v6851_v38  ;;  %1303 = vmatpush1.msra.mxu1 %v6853_v27  ;;  %10188 = vst [vmem:[#allocation19_spill] sm:$0xff] %v6879_v47  ;;  %10189 = vst [vmem:[#allocation20_spill] sm:$0xff] %v6881_v23  ;;  %v6885_v27 = vld [vmem:[#allocation5 + $0x68] sm:$0xff] }
  0x9e   : > { %5072 = vmatprep.subr.mxu0 %v9984_v9  ;;  %1304 = vmatprep.subr.mxu1 %v6857_v6  ;;  %10190 = vst [vmem:[#allocation21_spill] sm:$0xff] %v6885_v27  ;;  %v6894_v6 = vld [vmem:[#allocation5 + $0x60] sm:$0xff] }
  0x9f   : > { %5073 = vmatpush3.msra.mxu0 %v6864_v18  ;;  %1305 = vmatpush1.msra.mxu1 %v6866_v8  ;;  %v6892_v8 = vld [vmem:[%s9954_s3 + $0x70] sm:$0xff]  ;;  %10192 = vst [vmem:[#allocation23_spill] sm:$0xff] %v6894_v6 }
  0xa0   : > { %921 = vmatprep.mubr.f32.mxu0 %v9984_v9  ;;  %5074 = vmatprep.subr.mxu0 %v9984_v9  ;;  %10191 = vst [vmem:[#allocation22_spill] sm:$0xff] %v6892_v8 }
  0xa1   : > { %1306 = vmatprep.subr.mxu1 %v6872_v4  ;;  %922 = vmatmul.mubr.f32.gmra.mxu0 %v6603_v56  ;;  %v6907_v56 = vld [vmem:[%s9954_s3 + $0x58] sm:$0xff]  ;;  %v6909_v4 = vld [vmem:[#allocation5 + $0x48] sm:$0xff] }
  0xa2   : > { %5075 = vmatpush3.msra.mxu0 %v6879_v47  ;;  %1307 = vmatpush1.msra.mxu1 %v6881_v23  ;;  %10194 = vst [vmem:[#allocation25_spill] sm:$0xff] %v6907_v56  ;;  %10195 = vst [vmem:[#allocation26_spill] sm:$0xff] %v6909_v4  ;;  %v6913_v23 = vld [vmem:[#allocation5 + $0x38] sm:$0xff] }
  0xa3   : > { %5076 = vmatprep.subr.mxu0 %v9984_v9  ;;  %1308 = vmatprep.subr.mxu1 %v6885_v27  ;;  %10196 = vst [vmem:[#allocation27_spill] sm:$0xff] %v6913_v23  ;;  %v6922_v27 = vld [vmem:[#allocation5 + $0x30] sm:$0xff] }
  0xa4   : > { %5077 = vmatpush3.msra.mxu0 %v6892_v8  ;;  %1309 = vmatpush1.msra.mxu1 %v6894_v6  ;;  %v6920_v6 = vld [vmem:[%s9954_s3 + $0x40] sm:$0xff]  ;;  %10198 = vst [vmem:[#allocation29_spill] sm:$0xff] %v6922_v27 }
  0xa5   : > { %927 = vmatprep.mubr.f32.mxu0 %v9984_v9  ;;  %5078 = vmatprep.subr.mxu0 %v9984_v9  ;;  %10197 = vst [vmem:[#allocation28_spill] sm:$0xff] %v6920_v6 }
  0xa6   : > { %1310 = vmatprep.subr.mxu1 %v6900_v2  ;;  %928 = vmatmul.mubr.f32.gmra.mxu0 %v6646_v1  ;;  %v6935_v1 = vld [vmem:[%s9954_s3 + $0x28] sm:$0xff]  ;;  %v6937_v2 = vld [vmem:[#allocation5 + $0x18] sm:$0xff] }
  0xa7   : > { %5079 = vmatpush3.msra.mxu0 %v6907_v56  ;;  %1311 = vmatpush1.msra.mxu1 %v6909_v4  ;;  %10199 = vst [vmem:[#allocation30_spill] sm:$0xff] %v6935_v1  ;;  %10200 = vst [vmem:[#allocation31_spill] sm:$0xff] %v6937_v2  ;;  %v6941_v4 = vld [vmem:[#allocation5 + $0x8] sm:$0xff] }
  0xa8   : > { %5080 = vmatprep.subr.mxu0 %v9984_v9  ;;  %1312 = vmatprep.subr.mxu1 %v6913_v23  ;;  %10201 = vst [vmem:[#allocation32_spill] sm:$0xff] %v6941_v4  ;;  %v6950_v23 = vld [vmem:[#allocation5] sm:$0xff] }
  0xa9   : > { %5081 = vmatpush3.msra.mxu0 %v6920_v6  ;;  %1313 = vmatpush1.msra.mxu1 %v6922_v27  ;;  %v6948_v27 = vld [vmem:[%s9954_s3 + $0x10] sm:$0xff]  ;;  %10203 = vst [vmem:[#allocation34_spill] sm:$0xff] %v6950_v23 }
  0xaa   : > { %933 = vmatprep.mubr.f32.mxu0 %v9984_v9  ;;  %5082 = vmatprep.subr.mxu0 %v9984_v9  ;;  %10202 = vst [vmem:[#allocation33_spill] sm:$0xff] %v6948_v27 }
  0xab   : > { %1314 = vmatprep.subr.mxu1 %v6928_v61  ;;  %934 = vmatmul.mubr.f32.gmra.mxu0 %v6689_v12  ;;  %v6961_v12 = vld [vmem:[#allocation5 + $0x178] sm:$0xff] }
  0xac   : > { %5083 = vmatpush3.msra.mxu0 %v6935_v1  ;;  %1315 = vmatpush1.msra.mxu1 %v6937_v2  ;;  %v6966_v2 = vld [vmem:[#allocation5 + $0x160] sm:$0xff] }
  0xad   : > { %5084 = vmatprep.subr.mxu0 %v9984_v9  ;;  %1316 = vmatprep.subr.mxu1 %v6941_v4  ;;  %v6979_v4 = vld [vmem:[#allocation5 + $0x130] sm:$0xff] }
  0xae   : > { %5085 = vmatpush3.msra.mxu0 %v6948_v27  ;;  %1317 = vmatpush1.msra.mxu1 %v6950_v23  ;;  %v6973_v23 = vld [vmem:[#allocation5 + $0x148] sm:$0xff] }
  0xaf   : > { %1350 = vmatprep.mubr.f32.mxu1 %v9984_v9  ;;  %5086 = vmatprep.mubr.msk.f32.mxu0 %vm6067_vm0, %v9984_v9 }
  0xb0   : > { %1351 = vmatmul.mubr.f32.vlgmr.msra.gmra.mxu1 %v9984_v9  ;;  %5089 = vmatprep.subr.mxu0 %v9984_v9 }
  0xb1   : > { %5087 = vmatmul.mubr.f32.vlgmr.msra.gmra.mxu0 %v9984_v9  ;;  %1454 = vmatprep.subr.mxu1 %v6399_v13  ;;  %v6985_v13 = vld [vmem:[#allocation5 + $0x118] sm:$0xff] }
  0xb2   : > { %5090 = vmatpush3.msra.mxu0 %v6961_v12  ;;  %5121 = vmatprep.mubr.msk.f32.mxu0 %vm6067_vm0, %v9984_v9 }
  0xb3   : > { %5091 = vmatprep.subr.mxu0 %v9984_v9  ;;  %1455 = vmatpush1.msra.mxu1 %v6407_v15  ;;  %v6991_v15 = vld [vmem:[#allocation5 + $0x100] sm:$0xff] }
  0xb4   : > { %5092 = vmatpush3.msra.mxu0 %v6966_v2  ;;  %1456 = vmatprep.subr.mxu1 %v6416_v17  ;;  %v6997_v17 = vld [vmem:[#allocation5 + $0xe8] sm:$0xff] }
  0xb5   : > { %5093 = vmatprep.subr.mxu0 %v9984_v9  ;;  %1457 = vmatpush1.msra.mxu1 %v6427_v19  ;;  %v7003_v19 = vld [vmem:[#allocation5 + $0xd0] sm:$0xff] }
  0xb6   : > { %5094 = vmatpush3.msra.mxu0 %v6973_v23  ;;  %1458 = vmatprep.subr.mxu1 %v6440_v22  ;;  %v7009_v22 = vld [vmem:[#allocation5 + $0xb8] sm:$0xff] }
  0xb7   : > { %5095 = vmatprep.subr.mxu0 %v9984_v9  ;;  %1459 = vmatpush1.msra.mxu1 %v6450_v24  ;;  %v7015_v24 = vld [vmem:[#allocation5 + $0xa0] sm:$0xff] }
  0xb8   : > { %5096 = vmatpush3.msra.mxu0 %v6979_v4  ;;  %1460 = vmatprep.subr.mxu1 %v6459_v26  ;;  %v7021_v26 = vld [vmem:[#allocation5 + $0x88] sm:$0xff] }
  0xb9   : > { %5097 = vmatprep.subr.mxu0 %v9984_v9  ;;  %1461 = vmatpush1.msra.mxu1 %v6470_v28  ;;  %v7027_v28 = vld [vmem:[#allocation5 + $0x70] sm:$0xff] }
  0xba   : > { %5098 = vmatpush3.msra.mxu0 %v6985_v13  ;;  %1462 = vmatprep.subr.mxu1 %v6483_v31  ;;  %v7033_v31 = vld [vmem:[#allocation5 + $0x58] sm:$0xff] }
  0xbb   : > { %5099 = vmatprep.subr.mxu0 %v9984_v9  ;;  %1463 = vmatpush1.msra.mxu1 %v6493_v33  ;;  %v7039_v33 = vld [vmem:[#allocation5 + $0x40] sm:$0xff] }
  0xbc   : > { %5100 = vmatpush3.msra.mxu0 %v6991_v15  ;;  %1464 = vmatprep.subr.mxu1 %v6502_v35  ;;  %v7045_v35 = vld [vmem:[#allocation5 + $0x28] sm:$0xff] }
  0xbd   : > { %5101 = vmatprep.subr.mxu0 %v9984_v9  ;;  %1465 = vmatpush1.msra.mxu1 %v6513_v37  ;;  %v7051_v37 = vld [vmem:[#allocation5 + $0x10] sm:$0xff] }
  0xbe   : > { %5102 = vmatpush3.msra.mxu0 %v6997_v17  ;;  %1466 = vmatprep.subr.mxu1 %v6526_v40  ;;  %v571_v40 = vlaneseq }
  0xbf   : > { %5103 = vmatprep.subr.mxu0 %v9984_v9  ;;  %1467 = vmatpush1.msra.mxu1 %v6536_v42 }
  0xc0   : > { %5104 = vmatpush3.msra.mxu0 %v7003_v19  ;;  %1468 = vmatprep.subr.mxu1 %v6545_v44  ;;  %v7099_v42 = vshrl.u32 %v571_v40, 7 }
  0xc1   : > { %5105 = vmatprep.subr.mxu0 %v9984_v9  ;;  %1469 = vmatpush1.msra.mxu1 %v6556_v46  ;;  %v7105_v46 = vld [vmem:[%s9953_s2] sm:$0x3f] }
  0xc2   : > { %5106 = vmatpush3.msra.mxu0 %v7009_v22  ;;  %1470 = vmatprep.subr.mxu1 %v6569_v49  ;;  %v585_v44 = vsub.s32 3, %v7099_v42 }
  0xc3   : > { %5107 = vmatprep.subr.mxu0 %v9984_v9  ;;  %1471 = vmatpush1.msra.mxu1 %v6579_v51 }
  0xc4   : > { %5108 = vmatpush3.msra.mxu0 %v7015_v24  ;;  %1472 = vmatprep.subr.mxu1 %v6588_v53  ;;  %v7108_v49 = vrot.slane %v7105_v46, %v585_v44  ;;  %v7113_v53 = vsub.s32 2, %v7099_v42 }
  0xc5   : > { %5109 = vmatprep.subr.mxu0 %v9984_v9  ;;  %1473 = vmatpush1.msra.mxu1 %v6599_v55 }
  0xc6   : > { %5110 = vmatpush3.msra.mxu0 %v7021_v26  ;;  %1474 = vmatprep.subr.mxu1 %v6612_v58  ;;  %10204 = vst [vmem:[#allocation35_spill] sm:$0xff] %v7113_v53  ;;  %v7118_v58 = vsub.s32 0, %v7099_v42 }
  0xc7   : > { %5111 = vmatprep.subr.mxu0 %v9984_v9  ;;  %1475 = vmatpush1.msra.mxu1 %v6622_v60 }
  0xc8   : > { %5112 = vmatpush3.msra.mxu0 %v7027_v28  ;;  %1476 = vmatprep.subr.mxu1 %v6631_v62  ;;  %10205 = vst [vmem:[#allocation36_spill] sm:$0xff] %v7118_v58 }
  0xc9   : > { %5113 = vmatprep.subr.mxu0 %v9984_v9  ;;  %1477 = vmatpush1.msra.mxu1 %v6642_v0 }
  0xca   : > { %5114 = vmatpush3.msra.mxu0 %v7033_v31  ;;  %1478 = vmatprep.subr.mxu1 %v6655_v3  ;;  %v7126_v3 = vsub.s32 1, %v7099_v42 }
  0xcb   : > { %5115 = vmatprep.subr.mxu0 %v9984_v9  ;;  %1479 = vmatpush1.msra.mxu1 %v6665_v5  ;;  %v7130_v5 = vrot.slane %v7105_v46, %v7113_v53 }
  0xcc   : > { %5116 = vmatpush3.msra.mxu0 %v7039_v33  ;;  %1480 = vmatprep.subr.mxu1 %v6674_v7  ;;  %10207 = vst [vmem:[#allocation38_spill] sm:$0xff] %v7126_v3  ;;  %v7134_v7 = vrot.slane %v7105_v46, %v7118_v58 }
  0xcd   : > { %5117 = vmatprep.subr.mxu0 %v9984_v9  ;;  %1481 = vmatpush1.msra.mxu1 %v6685_v10 }
  0xce   : > { %5118 = vmatpush3.msra.mxu0 %v7045_v35  ;;  %1482 = vmatprep.subr.mxu1 %v6698_v16 }
  0xcf   : > { %5119 = vmatprep.subr.mxu0 %v9984_v9  ;;  %1483 = vmatpush1.msra.mxu1 %v6708_v21 }
  0xd0   : > { %5120 = vmatpush3.msra.mxu0 %v7051_v37  ;;  %1484 = vmatprep.subr.mxu1 %v6717_v25  ;;  %v7141_v25 = vrot.slane %v7105_v46, %v7126_v3 }
  0xd1   : > { %5122 = vmatmul.mubr.f32.vlgmr.msra.gmra.mxu0 %v9984_v9  ;;  %5124 = vmatprep.subr.mxu0 %v9984_v9 }
  0xd2   : > { %5125 = vmatpush3.msra.mxu0 %v6739_v34  ;;  %1485 = vmatpush1.msra.mxu1 %v6727_v30 }
  0xd3   : > { %5126 = vmatprep.subr.mxu0 %v9984_v9  ;;  %1518 = vmatprep.mubr.f32.mxu1 %v9984_v9 }
  0xd4   : > { %5127 = vmatpush3.msra.mxu0 %v6752_v41  ;;  %5156 = vmatprep.mubr.msk.f32.mxu0 %vm6067_vm0, %v9984_v9 }
  0xd5   : > { %5128 = vmatprep.subr.mxu0 %v9984_v9  ;;  %1616 = vmatprep.subr.mxu1 %v6732_v32 }
  0xd6   : > { %5129 = vmatpush3.msra.mxu0 %v6767_v11 }
  0xd7   : > { %5130 = vmatprep.subr.mxu0 %v9984_v9 }
  0xd8   : > { %5131 = vmatpush3.msra.mxu0 %v6780_v52 }
  0xd9   : > { %5132 = vmatprep.subr.mxu0 %v9984_v9 }
  0xda   : > { %5133 = vmatpush3.msra.mxu0 %v6795_v20 }
  0xdb   : > { %5134 = vmatprep.subr.mxu0 %v9984_v9 }
  0xdc   : > { %5135 = vmatpush3.msra.mxu0 %v6808_v63 }
  0xdd   : > { %5136 = vmatprep.subr.mxu0 %v9984_v9 }
  0xde   : > { %5137 = vmatpush3.msra.mxu0 %v6823_v29 }
  0xdf   : > { %5138 = vmatprep.subr.mxu0 %v9984_v9 }
  0xe0   : > { %5139 = vmatpush3.msra.mxu0 %v6836_v14 }
  0xe1   : > { %5140 = vmatprep.subr.mxu0 %v9984_v9 }
  0xe2   : > { %5141 = vmatpush3.msra.mxu0 %v6851_v38 }
  0xe3   : > { %5142 = vmatprep.subr.mxu0 %v9984_v9 }
  0xe4   : > { %5143 = vmatpush3.msra.mxu0 %v6864_v18 }
  0xe5   : > { %5144 = vmatprep.subr.mxu0 %v9984_v9 }
  0xe6   : > { %5145 = vmatpush3.msra.mxu0 %v6879_v47 }
  0xe7   : > { %5146 = vmatprep.subr.mxu0 %v9984_v9 }
  0xe8   : > { %5147 = vmatpush3.msra.mxu0 %v6892_v8 }
  0xe9   : > { %5148 = vmatprep.subr.mxu0 %v9984_v9 }
  0xea   : > { %5149 = vmatpush3.msra.mxu0 %v6907_v56 }
  0xeb   : > { %5150 = vmatprep.subr.mxu0 %v9984_v9 }
  0xec   : > { %5151 = vmatpush3.msra.mxu0 %v6920_v6 }
  0xed   : > { %5152 = vmatprep.subr.mxu0 %v9984_v9 }
  0xee   : > { %5153 = vmatpush3.msra.mxu0 %v6935_v1 }
  0xef   : > { %5154 = vmatprep.subr.mxu0 %v9984_v9 }
  0xf0   : > { %5155 = vmatpush3.msra.mxu0 %v6948_v27 }
  0xf1   : > { %5159 = vmatprep.subr.mxu0 %v9984_v9 }
 0x117   : > { %v7110_v51 = vpop.f32.mrf.mxu1 }
 0x118   : > { %v7115_v55 = vpop.f32.mrf.mxu0 }
 0x119   : > { %v782_v60 = vpop.f32.mrf.mxu1 }
 0x11a   : > { %v7121_v62 = vadd.f32 %v782_v60, %v7108_v49  ;;  %v7123_v0 = vpop.f32.mrf.mxu0 }
 0x11c   : > { %10206 = vst [vmem:[#allocation37_spill] sm:$0xff] %v7121_v62 }
 0x11d   : > { %v786_v10 = vpop.f32.mrf.mxu1 }
 0x11e   : > { %v7137_v16 = vadd.f32 %v786_v10, %v7130_v5  ;;  %v673_v21 = vpop.f32.mrf.mxu0 }
 0x11f   : > { %v7144_v30 = vadd.f32 %v673_v21, %v7134_v7  ;;  %v788_v32 = vpop.f32.mrf.mxu1 }
 0x120   : > { %10208 = vst [vmem:[#allocation39_spill] sm:$0xff] %v7137_v16  ;;  %v7147_v40 = vadd.f32 %v788_v32, %v7108_v49  ;;  %v675_v44 = vpop.f32.mrf.mxu0 }
 0x121   : > { %10209 = vst [vmem:[#allocation40_spill] sm:$0xff] %v7144_v30  ;;  %v7150_v60 = vadd.f32 %v675_v44, %v7141_v25 }
 0x122   : > { %10210 = vst [vmem:[#allocation41_spill] sm:$0xff] %v7147_v40 }
 0x123   : > { %10211 = vst [vmem:[#allocation42_spill] sm:$0xff] %v7150_v60  ;;  %v792_v9 = vpop.f32.mrf.mxu1 }
 0x124   : > { %v7153_v10 = vadd.f32 %v792_v9, %v7130_v5  ;;  %v679_v62 = vpop.f32.mrf.mxu0 }
 0x125   : > { %v7156_v16 = vadd.f32 %v679_v62, %v7134_v7  ;;  %v794_v27 = vpop.f32.mrf.mxu1 }
 0x126   : > { %10212 = vst [vmem:[#allocation43_spill] sm:$0xff] %v7153_v10  ;;  %v7159_v21 = vadd.f32 %v794_v27, %v7108_v49  ;;  %v681_v30 = vpop.f32.mrf.mxu0 }
 0x127   : > { %10213 = vst [vmem:[#allocation44_spill] sm:$0xff] %v7156_v16  ;;  %v7162_v32 = vadd.f32 %v681_v30, %v7141_v25 }
 0x128   : > { %10214 = vst [vmem:[#allocation45_spill] sm:$0xff] %v7159_v21 }
 0x129   : > { %10215 = vst [vmem:[#allocation46_spill] sm:$0xff] %v7162_v32  ;;  %v798_v40 = vpop.f32.mrf.mxu1 }
 0x12a   : > { %v7165_v44 = vadd.f32 %v798_v40, %v7130_v5  ;;  %v685_v60 = vpop.f32.mrf.mxu0 }
 0x12b   : > { %v7168_v9 = vadd.f32 %v685_v60, %v7134_v7  ;;  %v800_v10 = vpop.f32.mrf.mxu1 }
 0x12c   : > { %10216 = vst [vmem:[#allocation47_spill] sm:$0xff] %v7165_v44  ;;  %v7171_v62 = vadd.f32 %v800_v10, %v7108_v49  ;;  %v687_v16 = vpop.f32.mrf.mxu0 }
 0x12d   : > { %10217 = vst [vmem:[#allocation48_spill] sm:$0xff] %v7168_v9  ;;  %v7174_v27 = vadd.f32 %v687_v16, %v7141_v25 }
 0x12e   : > { %10218 = vst [vmem:[#allocation49_spill] sm:$0xff] %v7171_v62 }
 0x12f   : > { %10219 = vst [vmem:[#allocation50_spill] sm:$0xff] %v7174_v27  ;;  %v804_v21 = vpop.f32.mrf.mxu1 }
 0x130   : > { %v7177_v30 = vadd.f32 %v804_v21, %v7130_v5  ;;  %v691_v32 = vpop.f32.mrf.mxu0 }
 0x131   : > { %v7180_v40 = vadd.f32 %v691_v32, %v7134_v7  ;;  %v806_v44 = vpop.f32.mrf.mxu1 }
 0x132   : > { %10220 = vst [vmem:[#allocation51_spill] sm:$0xff] %v7177_v30  ;;  %v7183_v60 = vadd.f32 %v806_v44, %v7108_v49  ;;  %v693_v9 = vpop.f32.mrf.mxu0 }
 0x133   : > { %10221 = vst [vmem:[#allocation52_spill] sm:$0xff] %v7180_v40  ;;  %v7186_v10 = vadd.f32 %v693_v9, %v7141_v25 }
 0x134   : > { %10222 = vst [vmem:[#allocation53_spill] sm:$0xff] %v7183_v60 }
 0x135   : > { %10223 = vst [vmem:[#allocation54_spill] sm:$0xff] %v7186_v10  ;;  %v810_v62 = vpop.f32.mrf.mxu1 }
 0x136   : > { %v7189_v16 = vadd.f32 %v810_v62, %v7130_v5  ;;  %v697_v27 = vpop.f32.mrf.mxu0 }
 0x137   : > { %v7192_v21 = vadd.f32 %v697_v27, %v7134_v7  ;;  %v812_v30 = vpop.f32.mrf.mxu1 }
 0x138   : > { %10224 = vst [vmem:[#allocation55_spill] sm:$0xff] %v7189_v16  ;;  %v7195_v32 = vadd.f32 %v812_v30, %v7108_v49  ;;  %v699_v40 = vpop.f32.mrf.mxu0 }
 0x139   : > { %10225 = vst [vmem:[#allocation56_spill] sm:$0xff] %v7192_v21  ;;  %v7198_v44 = vadd.f32 %v699_v40, %v7141_v25  ;;  %v1084_v40 = vld [vmem:[%s9955_s4] sm:$0x7] }
 0x13a   : > { %10226 = vst [vmem:[#allocation57_spill] sm:$0xff] %v7195_v32 }
 0x13b   : > { %10227 = vst [vmem:[#allocation58_spill] sm:$0xff] %v7198_v44  ;;  %v816_v60 = vpop.f32.mrf.mxu1  ;;  %v593_v44 = vsub.s32 5, %v7099_v42 }
 0x13c   : > { %v7201_v9 = vadd.f32 %v816_v60, %v7130_v5  ;;  %v703_v10 = vpop.f32.mrf.mxu0  ;;  %v589_v60 = vsub.s32 4, %v7099_v42 }
 0x13d   : > { %v7204_v62 = vadd.f32 %v703_v10, %v7134_v7  ;;  %v818_v16 = vpop.f32.mrf.mxu1 }
 0x13e   : > { %10228 = vst [vmem:[#allocation59_spill] sm:$0xff] %v7201_v9  ;;  %v7207_v27 = vadd.f32 %v818_v16, %v7108_v49  ;;  %v705_v21 = vpop.f32.mrf.mxu0  ;;  %v7230_v1 = vrot.slane %v7105_v46, %v589_v60 }
 0x13f   : > { %10229 = vst [vmem:[#allocation60_spill] sm:$0xff] %v7204_v62  ;;  %v7210_v30 = vadd.f32 %v705_v21, %v7141_v25  ;;  %v7224_v21 = vrot.slane %v1084_v40, %v7118_v58 }
 0x140   : > { %10230 = vst [vmem:[#allocation61_spill] sm:$0xff] %v7207_v27 }
 0x141   : > { %10231 = vst [vmem:[#allocation62_spill] sm:$0xff] %v7210_v30  ;;  %v822_v32 = vpop.f32.mrf.mxu1  ;;  %10234 = vst [vmem:[#allocation65_spill] sm:$0xff] %v7224_v21 }
 0x142   : > { %v7217_v9 = vadd.f32 %v822_v32, %v7130_v5  ;;  %v709_v10 = vpop.f32.mrf.mxu0  ;;  %v7233_v32 = vrot.slane %v7105_v46, %v593_v44 }
 0x143   : > { %v7220_v62 = vadd.f32 %v709_v10, %v7134_v7  ;;  %v824_v16 = vpop.f32.mrf.mxu1  ;;  %v668_v10 = vadd.f32 %v7115_v55, %v7134_v7  ;;  %v7248_v55 = vrot.slane %v1084_v40, %v7126_v3 }
 0x144   : > { %10232 = vst [vmem:[#allocation63_spill] sm:$0xff] %v7217_v9  ;;  %v711_v27 = vpop.f32.mrf.mxu0 }
 0x145   : > { %10233 = vst [vmem:[#allocation64_spill] sm:$0xff] %v7220_v62  ;;  %v7227_v30 = vadd.f32 %v711_v27, %v7141_v25  ;;  %10239 = vst [vmem:[#allocation70_spill] sm:$0xff] %v7248_v55 }
 0x147   : > { %10235 = vst [vmem:[#allocation66_spill] sm:$0xff] %v7227_v30  ;;  %v1190_v6 = vpop.f32.mrf.mxu1 }
 0x148   : > { %v1191_v9 = vadd.f32 %v1190_v6, %v7224_v21  ;;  %v893_v42 = vpop.f32.mrf.mxu0 }
 0x149   : > { %v7239_v62 = vadd.f32 %v893_v42, %v7230_v1  ;;  %v1192_v7 = vpop.f32.mrf.mxu1 }
 0x14a   : > { %v1265_v56 = vadd.f32 %v1191_v9, %v668_v10  ;;  %v895_v8 = vpop.f32.mrf.mxu0 }
 0x14b   : > { %10236 = vst [vmem:[#allocation67_spill] sm:$0xff] %v7239_v62  ;;  %v7242_v27 = vadd.f32 %v895_v8, %v7233_v32  ;;  %v1193_v8 = vadd.f32 %v1192_v7, %v7248_v55 }
 0x14c   : > { %v4641_v60 = vmul.f32 -1.442695, %v1265_v56 }
 0x14d   : > { %10237 = vst [vmem:[#allocation68_spill] sm:$0xff] %v7242_v27  ;;  %v899_v30 = vpop.f32.mrf.mxu0 }
 0x14e   : > { %v7245_v47 = vadd.f32 %v899_v30, %v7230_v1  ;;  %5653 = vpow2.f32 %v4641_v60  ;;  %v670_v30 = vadd.f32 %v7123_v0, %v7141_v25 }
 0x14f   : > { %v901_v46 = vpop.f32.mrf.mxu0 }
 0x150   : > { %10238 = vst [vmem:[#allocation69_spill] sm:$0xff] %v7245_v47  ;;  %v7251_v6 = vadd.f32 %v901_v46, %v7233_v32  ;;  %v1272_v60 = vadd.f32 %v1193_v8, %v670_v30 }
 0x152   : > { %10240 = vst [vmem:[#allocation71_spill] sm:$0xff] %v7251_v6  ;;  %v905_v44 = vpop.f32.mrf.mxu0 }
 0x153   : > { %v7254_v9 = vadd.f32 %v905_v44, %v7230_v1  ;;  %v4642_v44 = vmul.f32 -1.442695, %v1272_v60 }
 0x154   : > { %v907_v56 = vpop.f32.mrf.mxu0 }
 0x155   : > { %10241 = vst [vmem:[#allocation72_spill] sm:$0xff] %v7254_v9  ;;  %v7258_v10 = vadd.f32 %v907_v56, %v7233_v32  ;;  %5655 = vpow2.f32 %v4642_v44 }
 0x157   : > { %10242 = vst [vmem:[#allocation73_spill] sm:$0xff] %v7258_v10  ;;  %v911_v42 = vpop.f32.mrf.mxu0 }
 0x158   : > { %v7263_v27 = vadd.f32 %v911_v42, %v7230_v1 }
 0x159   : > { %v913_v46 = vpop.f32.mrf.mxu0 }
 0x15a   : > { %10243 = vst [vmem:[#allocation74_spill] sm:$0xff] %v7263_v27  ;;  %v7266_v62 = vadd.f32 %v913_v46, %v7233_v32 }
 0x15b   : > { %v5654_v47 = vpop.eup %5653 }
 0x15c   : > { %10244 = vst [vmem:[#allocation75_spill] sm:$0xff] %v7266_v62  ;;  %v917_v6 = vpop.f32.mrf.mxu0  ;;  %v1269_v0 = vadd.f32 1.0, %v5654_v47  ;;  %v1101_v47 = vld [vmem:[%s9957_s6] sm:$0x7] }
 0x15d   : > { %v7269_v7 = vadd.f32 %v917_v6, %v7230_v1 }
 0x15e   : > { %v919_v56 = vpop.f32.mrf.mxu0  ;;  %5657 = vrcp.f32 %v1269_v0  ;;  %v7292_v0 = vrot.slane %v1101_v47, %v7118_v58 }
 0x15f   : > { %10245 = vst [vmem:[#allocation76_spill] sm:$0xff] %v7269_v7  ;;  %v7272_v10 = vadd.f32 %v919_v56, %v7233_v32 }
 0x160   : > { %10251 = vst [vmem:[#allocation82_spill] sm:$0xff] %v7292_v0 }
 0x161   : > { %10246 = vst [vmem:[#allocation77_spill] sm:$0xff] %v7272_v10  ;;  %v923_v25 = vpop.f32.mrf.mxu0 }
 0x162   : > { %v7275_v8 = vadd.f32 %v923_v25, %v7230_v1  ;;  %v5656_v56 = vpop.eup %5655 }
 0x163   : > { %v925_v30 = vpop.f32.mrf.mxu0 }
 0x164   : > { %10247 = vst [vmem:[#allocation78_spill] sm:$0xff] %v7275_v8  ;;  %v7278_v42 = vadd.f32 %v925_v30, %v7233_v32  ;;  %v7295_v30 = vrot.slane %v1084_v40, %v7113_v53  ;;  %v781_v40 = vadd.f32 %v7110_v51, %v7130_v5 }
 0x166   : > { %10248 = vst [vmem:[#allocation79_spill] sm:$0xff] %v7278_v42  ;;  %v929_v60 = vpop.f32.mrf.mxu0  ;;  %10252 = vst [vmem:[#allocation83_spill] sm:$0xff] %v7295_v30  ;;  %v7300_v42 = vrot.slane %v1101_v47, %v7126_v3 }
 0x167   : > { %v7281_v46 = vadd.f32 %v929_v60, %v7230_v1  ;;  %v1276_v60 = vadd.f32 1.0, %v5656_v56 }
 0x168   : > { %v931_v6 = vpop.f32.mrf.mxu0 }
 0x169   : > { %10249 = vst [vmem:[#allocation80_spill] sm:$0xff] %v7281_v46  ;;  %v7284_v9 = vadd.f32 %v931_v6, %v7233_v32  ;;  %v825_v6 = vadd.f32 %v824_v16, %v7108_v49  ;;  %5659 = vrcp.f32 %v1276_v60  ;;  %v10267_v60 = vld [vmem:[#allocation21_spill] sm:$0xff] }
 0x16b   : > { %10250 = vst [vmem:[#allocation81_spill] sm:$0xff] %v7284_v9  ;;  %v935_v44 = vpop.f32.mrf.mxu0  ;;  %v5658_v27 = vpop.eup %5657 }
 0x16d   : > { %v7289_v25 = vpop.f32.mrf.mxu0 }
 0x170   : > { %v1352_v62 = vpop.f32.mrf.mxu1 }
 0x171   : > { %v1353_v10 = vadd.f32 %v1352_v62, %v7292_v0  ;;  %v1261_v7 = vpop.f32.mrf.mxu0  ;;  %v936_v62 = vadd.f32 %v935_v44, %v7230_v1  ;;  %v10254_v1 = vmov 0.0   ;;  %v10263_v44 = vld [vmem:[#allocation16_spill] sm:$0xff] }
 0x172   : > { %v1262_v8 = vadd.f32 %v1261_v7, %v7295_v30  ;;  %v1354_v9 = vpop.f32.mrf.mxu1 }
 0x173   : > { %v1427_v46 = vadd.f32 %v1353_v10, %v825_v6  ;;  %v5088_v58 = vpop.f32.mrf.mxu0  ;;  %v1355_v21 = vadd.f32 %v1354_v9, %v7300_v42  ;;  %v10258_v9 = vld [vmem:[#allocation11_spill] sm:$0xff] }
 0x174   : > { %v1279_v56 = vmul.f32 %v5658_v27, %v1262_v8  ;;  %v10259_v8 = vld [vmem:[#allocation12_spill] sm:$0xff] }
 0x175   : > { %v4643_v55 = vmul.f32 -1.442695, %v1427_v46  ;;  %v1434_v16 = vadd.f32 %v1355_v21, %v936_v62  ;;  %v7320_v21 = vrot.slane %v1101_v47, %v7113_v53  ;;  %v10261_v46 = vld [vmem:[#allocation14_spill] sm:$0xff]  ;;  %v10262_v47 = vld [vmem:[#allocation15_spill] sm:$0xff] }
 0x176   : > { %v1280_v49 = vadd.f32 %v1279_v56, %v781_v40  ;;  %v5660_v0 = vpop.eup %5659  ;;  %v10268_v40 = vld [vmem:[#allocation23_spill] sm:$0xff]  ;;  %v10270_v62 = vld [vmem:[#allocation26_spill] sm:$0xff] }
 0x177   : > { %5661 = vpow2.f32 %v4643_v55  ;;  %v4644_v3 = vmul.f32 -1.442695, %v1434_v16  ;;  %v1282_v10 = vsub.f32 1.0, %v5660_v0  ;;  %v1284_v51 = vmul.f32 0.0, %v5660_v0  ;;  %v10256_v55 = vld [vmem:[#allocation9_spill] sm:$0xff]  ;;  %v10265_v0 = vld [vmem:[#allocation18_spill] sm:$0xff] }
 0x178   : > { %5663 = vtanh.f32 %v1280_v49  ;;  %v10269_v49 = vld [vmem:[#allocation24_spill] sm:$0xff]  ;;  %v10271_v16 = vld [vmem:[#allocation27_spill] sm:$0xff] }
 0x179   : > { %5665 = vpow2.f32 %v4644_v3 }
 0x184   : > { %v5662_v7 = vpop.eup %5661 }
 0x185   : > { %v5664_v58 = vpop.eup %5663  ;;  %v1431_v6 = vadd.f32 1.0, %v5662_v7  ;;  %v10272_v7 = vld [vmem:[#allocation29_spill] sm:$0xff] }
 0x186   : > { %v1283_v30 = vmul.f32 %v5664_v58, %v1282_v10  ;;  %v5666_v3 = vpop.eup %5665 }
 0x187   : > { %5667 = vrcp.f32 %v1431_v6  ;;  %v10273_v6 = vld [vmem:[#allocation31_spill] sm:$0xff] }
 0x188   : > { %v7307_v5 = vadd.f32 %v1284_v51, %v1283_v30  ;;  %v10266_v30 = vld [vmem:[#allocation20_spill] sm:$0xff] }
 0x18a   : > { %10253 = vst [vmem:[#allocation84_spill] sm:$0xff] %v7307_v5  ;;  %1519 = vmatmul.mubr.f32.vlgmr.msra.gmra.mxu1 %v7307_v5  ;;  %5157 = vmatmul.mubr.f32.vlgmr.msra.gmra.mxu0 %v7307_v5 }
 0x18b   : > { %1617 = vmatpush1.msra.mxu1 %v6741_v36  ;;  %5160 = vmatpush3.msra.mxu0 %v6961_v12  ;;  %v1438_v36 = vadd.f32 1.0, %v5666_v3 }
 0x18c   : > { %1618 = vmatprep.subr.mxu1 %v6745_v39  ;;  %5161 = vmatprep.subr.mxu0 %v10254_v1 }
 0x18d   : > { %1619 = vmatpush1.msra.mxu1 %v6754_v43  ;;  %5162 = vmatpush3.msra.mxu0 %v6966_v2  ;;  %5669 = vrcp.f32 %v1438_v36  ;;  %v10274_v36 = vld [vmem:[#allocation32_spill] sm:$0xff] }
 0x18e   : > { %1620 = vmatprep.subr.mxu1 %v6760_v45  ;;  %5163 = vmatprep.subr.mxu0 %v10254_v1 }
 0x18f   : > { %1621 = vmatpush1.msra.mxu1 %v6769_v48  ;;  %5164 = vmatpush3.msra.mxu0 %v6973_v23 }
 0x190   : > { %1622 = vmatprep.subr.mxu1 %v6773_v50  ;;  %5165 = vmatprep.subr.mxu0 %v10254_v1  ;;  %v10255_v50 = vld [vmem:[#allocation8_spill] sm:$0xff] }
 0x191   : > { %v1423_v39 = vpop.f32.mrf.mxu0  ;;  %1623 = vmatpush1.msra.mxu1 %v6782_v54  ;;  %5166 = vmatpush3.msra.mxu0 %v6979_v4  ;;  %v938_v54 = vadd.f32 %v7289_v25, %v7233_v32  ;;  %v10260_v32 = vld [vmem:[#allocation13_spill] sm:$0xff] }
 0x192   : > { %v1424_v43 = vadd.f32 %v1423_v39, %v7320_v21  ;;  %1624 = vmatprep.subr.mxu1 %v6788_v57  ;;  %5167 = vmatprep.subr.mxu0 %v10254_v1  ;;  %v10257_v57 = vld [vmem:[#allocation10_spill] sm:$0xff]  ;;  %v10264_v25 = vld [vmem:[#allocation17_spill] sm:$0xff] }
 0x193   : > { %v5123_v45 = vpop.f32.mrf.mxu0  ;;  %1625 = vmatpush1.msra.mxu1 %v6797_v59  ;;  %5168 = vmatpush3.msra.mxu0 %v6985_v13  ;;  %v10275_v39 = vld [vmem:[#allocation34_spill] sm:$0xff] }
 0x194   : > { %v5668_v48 = vpop.eup %5667  ;;  %1626 = vmatprep.subr.mxu1 %v10255_v50  ;;  %5169 = vmatprep.subr.mxu0 %v10254_v1  ;;  %v7396_v45 = vld [vmem:[%s9954_s3 + $0x168] sm:$0xff]  ;;  %v7410_v50 = vld [vmem:[%s9954_s3 + $0x150] sm:$0xff] }
 0x195   : > { %v1441_v27 = vmul.f32 %v5668_v48, %v1424_v43  ;;  %1627 = vmatpush1.msra.mxu1 %v10256_v55  ;;  %5170 = vmatpush3.msra.mxu0 %v6991_v15  ;;  %v7403_v48 = vld [vmem:[%s9954_s3 + $0x158] sm:$0xff]  ;;  %v7452_v55 = vld [vmem:[%s9954_s3 + $0x108] sm:$0xff] }
 0x196   : > { %1628 = vmatprep.subr.mxu1 %v10257_v57  ;;  %5171 = vmatprep.subr.mxu0 %v10254_v1  ;;  %10281 = vst [vmem:[#allocation13_spill] sm:$0xff] %v7452_v55  ;;  %v7466_v57 = vld [vmem:[%s9954_s3 + $0xf0] sm:$0xff] }
 0x197   : > { %v1442_v59 = vadd.f32 %v1441_v27, %v938_v54  ;;  %1629 = vmatpush1.msra.mxu1 %v10258_v9  ;;  %5172 = vmatpush3.msra.mxu0 %v6997_v17  ;;  %v7424_v54 = vld [vmem:[%s9954_s3 + $0x138] sm:$0xff]  ;;  %v7438_v27 = vld [vmem:[%s9954_s3 + $0x120] sm:$0xff]  ;;  %10283 = vst [vmem:[#allocation15_spill] sm:$0xff] %v7466_v57 }
 0x198   : > { %1630 = vmatprep.subr.mxu1 %v10259_v8  ;;  %5173 = vmatprep.subr.mxu0 %v10254_v1  ;;  %10277 = vst [vmem:[#allocation9_spill] sm:$0xff] %v7424_v54  ;;  %10279 = vst [vmem:[#allocation11_spill] sm:$0xff] %v7438_v27  ;;  %v7494_v9 = vld [vmem:[%s9954_s3 + $0xc0] sm:$0xff]  ;;  %v7508_v8 = vld [vmem:[%s9954_s3 + $0xa8] sm:$0xff] }
 0x199   : > { %5671 = vtanh.f32 %v1442_v59  ;;  %1631 = vmatpush1.msra.mxu1 %v10260_v32  ;;  %5174 = vmatpush3.msra.mxu0 %v7003_v19  ;;  %v7480_v59 = vld [vmem:[%s9954_s3 + $0xd8] sm:$0xff]  ;;  %10287 = vst [vmem:[#allocation20_spill] sm:$0xff] %v7494_v9  ;;  %10289 = vst [vmem:[#allocation23_spill] sm:$0xff] %v7508_v8  ;;  %v7522_v32 = vld [vmem:[%s9954_s3 + $0x90] sm:$0xff] }
 0x19a   : > { %1632 = vmatprep.subr.mxu1 %v10261_v46  ;;  %5175 = vmatprep.subr.mxu0 %v10254_v1  ;;  %v5670_v56 = vpop.eup %5669  ;;  %10285 = vst [vmem:[#allocation17_spill] sm:$0xff] %v7480_v59  ;;  %10291 = vst [vmem:[#allocation26_spill] sm:$0xff] %v7522_v32  ;;  %v7536_v46 = vld [vmem:[%s9954_s3 + $0x78] sm:$0xff] }
 0x19b   : > { %1633 = vmatpush1.msra.mxu1 %v10262_v47  ;;  %5176 = vmatpush3.msra.mxu0 %v7009_v22  ;;  %v1444_v10 = vsub.f32 1.0, %v5670_v56  ;;  %v1446_v3 = vmul.f32 0.0, %v5670_v56  ;;  %10293 = vst [vmem:[#allocation29_spill] sm:$0xff] %v7536_v46  ;;  %v10294_v47 = vld [vmem:[#allocation19_spill] sm:$0xff]  ;;  %v7578_v56 = vld [vmem:[%s9954_s3 + $0x30] sm:$0xff] }
 0x19c   : > { %1634 = vmatprep.subr.mxu1 %v10263_v44  ;;  %5177 = vmatprep.subr.mxu0 %v10254_v1  ;;  %v7550_v44 = vld [vmem:[%s9954_s3 + $0x60] sm:$0xff] }
 0x19d   : > { %1635 = vmatpush1.msra.mxu1 %v10264_v25  ;;  %5178 = vmatpush3.msra.mxu0 %v7015_v24  ;;  %10296 = vst [vmem:[#allocation32_spill] sm:$0xff] %v7550_v44  ;;  %v10297_v25 = vld [vmem:[#allocation22_spill] sm:$0xff] }
 0x19e   : > { %1636 = vmatprep.subr.mxu1 %v10265_v0  ;;  %5179 = vmatprep.subr.mxu0 %v10254_v1  ;;  %v7557_v0 = vld [vmem:[%s9954_s3 + $0x50] sm:$0xff] }
 0x19f   : > { %1637 = vmatpush1.msra.mxu1 %v10266_v30  ;;  %5180 = vmatpush3.msra.mxu0 %v7021_v26  ;;  %10298 = vst [vmem:[#allocation34_spill] sm:$0xff] %v7557_v0  ;;  %v7564_v30 = vld [vmem:[%s9954_s3 + $0x48] sm:$0xff] }
 0x1a0   : > { %1638 = vmatprep.subr.mxu1 %v10267_v60  ;;  %5181 = vmatprep.subr.mxu0 %v10254_v1  ;;  %10299 = vst [vmem:[#allocation19_spill] sm:$0xff] %v7564_v30  ;;  %v10300_v60 = vld [vmem:[#allocation25_spill] sm:$0xff] }
 0x1a1   : > { %1639 = vmatpush1.msra.mxu1 %v10268_v40  ;;  %5182 = vmatpush3.msra.mxu0 %v7027_v28  ;;  %v7571_v40 = vld [vmem:[%s9954_s3 + $0x38] sm:$0xff]  ;;  %10302 = vst [vmem:[#allocation25_spill] sm:$0xff] %v7578_v56 }
 0x1a2   : > { %1640 = vmatprep.subr.mxu1 %v10269_v49  ;;  %5183 = vmatprep.subr.mxu0 %v10254_v1  ;;  %10301 = vst [vmem:[#allocation22_spill] sm:$0xff] %v7571_v40  ;;  %v10303_v49 = vld [vmem:[#allocation28_spill] sm:$0xff] }
 0x1a3   : > { %1641 = vmatpush1.msra.mxu1 %v10270_v62  ;;  %5184 = vmatpush3.msra.mxu0 %v7033_v31  ;;  %v7585_v62 = vld [vmem:[%s9954_s3 + $0x20] sm:$0xff] }
 0x1a4   : > { %1642 = vmatprep.subr.mxu1 %v10271_v16  ;;  %5185 = vmatprep.subr.mxu0 %v10254_v1  ;;  %10304 = vst [vmem:[#allocation28_spill] sm:$0xff] %v7585_v62  ;;  %v7592_v16 = vld [vmem:[%s9954_s3 + $0x18] sm:$0xff] }
 0x1a5   : > { %1643 = vmatpush1.msra.mxu1 %v10272_v7  ;;  %5186 = vmatpush3.msra.mxu0 %v7039_v33  ;;  %10305 = vst [vmem:[#allocation85_spill] sm:$0xff] %v7592_v16  ;;  %v10306_v7 = vld [vmem:[#allocation30_spill] sm:$0xff] }
 0x1a6   : > { %v5672_v58 = vpop.eup %5671  ;;  %1644 = vmatprep.subr.mxu1 %v6928_v61  ;;  %5187 = vmatprep.subr.mxu0 %v10254_v1  ;;  %v7389_v61 = vld [vmem:[%s9954_s3 + $0x170] sm:$0xff] }
 0x1a7   : > { %1645 = vmatpush1.msra.mxu1 %v10273_v6  ;;  %5188 = vmatpush3.msra.mxu0 %v7045_v35  ;;  %v1445_v51 = vmul.f32 %v5672_v58, %v1444_v10  ;;  %v7599_v10 = vld [vmem:[%s9954_s3 + $0x8] sm:$0xff]  ;;  %v7606_v58 = vld [vmem:[%s9954_s3] sm:$0xff] }
 0x1a8   : > { %1646 = vmatprep.subr.mxu1 %v10274_v36  ;;  %5189 = vmatprep.subr.mxu0 %v10254_v1  ;;  %10307 = vst [vmem:[#allocation30_spill] sm:$0xff] %v7599_v10  ;;  %10308 = vst [vmem:[#allocation86_spill] sm:$0xff] %v7606_v58  ;;  %v10309_v6 = vld [vmem:[#allocation33_spill] sm:$0xff] }
 0x1a9   : > { %1647 = vmatpush1.msra.mxu1 %v10275_v39  ;;  %1680 = vmatprep.mubr.f32.mxu1 %v10254_v1  ;;  %v7379_v43 = vadd.f32 %v1446_v3, %v1445_v51  ;;  %v7613_v51 = vld [vmem:[#allocation5 + $0x170] sm:$0xff]  ;;  %v10311_v39 = vld [vmem:[#allocation65_spill] sm:$0xff] }
 0x1aa   : > { %5190 = vmatpush3.msra.mxu0 %v7051_v37  ;;  %5191 = vmatprep.mubr.msk.f32.mxu0 %vm6067_vm0, %v10254_v1  ;;  %10310 = vst [vmem:[#allocation33_spill] sm:$0xff] %v7613_v51 }
 0x1ab   : > { %10276 = vst [vmem:[#allocation8_spill] sm:$0xff] %v7379_v43  ;;  %1681 = vmatmul.mubr.f32.vlgmr.msra.gmra.mxu1 %v7379_v43  ;;  %5192 = vmatmul.mubr.f32.vlgmr.msra.gmra.mxu0 %v7379_v43 }
 0x1ac   : > { %1788 = vmatprep.subr.mxu1 %v7389_v61  ;;  %5194 = vmatprep.subr.mxu0 %v10254_v1 }
 0x1ad   : > { %1789 = vmatpush1.msra.mxu1 %v7396_v45  ;;  %5195 = vmatpush3.msra.mxu0 %v6739_v34  ;;  %v7417_v34 = vld [vmem:[%s9954_s3 + $0x140] sm:$0xff] }
 0x1ae   : > { %1790 = vmatprep.subr.mxu1 %v7403_v48  ;;  %5196 = vmatprep.subr.mxu0 %v10254_v1 }
 0x1af   : > { %1791 = vmatpush1.msra.mxu1 %v7410_v50  ;;  %5197 = vmatpush3.msra.mxu0 %v6752_v41  ;;  %v7431_v41 = vld [vmem:[%s9954_s3 + $0x128] sm:$0xff] }
 0x1b0   : > { %1792 = vmatprep.subr.mxu1 %v7417_v34  ;;  %5198 = vmatprep.subr.mxu0 %v10254_v1  ;;  %10278 = vst [vmem:[#allocation10_spill] sm:$0xff] %v7431_v41 }
 0x1b1   : > { %1793 = vmatpush1.msra.mxu1 %v7424_v54  ;;  %5199 = vmatpush3.msra.mxu0 %v6767_v11  ;;  %v7445_v11 = vld [vmem:[%s9954_s3 + $0x110] sm:$0xff] }
 0x1b2   : > { %1794 = vmatprep.subr.mxu1 %v7431_v41  ;;  %5200 = vmatprep.subr.mxu0 %v10254_v1  ;;  %10280 = vst [vmem:[#allocation12_spill] sm:$0xff] %v7445_v11 }
 0x1b3   : > { %1795 = vmatpush1.msra.mxu1 %v7438_v27  ;;  %5201 = vmatpush3.msra.mxu0 %v6780_v52  ;;  %v7459_v52 = vld [vmem:[%s9954_s3 + $0xf8] sm:$0xff] }
 0x1b4   : > { %1796 = vmatprep.subr.mxu1 %v7445_v11  ;;  %5202 = vmatprep.subr.mxu0 %v10254_v1  ;;  %10282 = vst [vmem:[#allocation14_spill] sm:$0xff] %v7459_v52 }
 0x1b5   : > { %1797 = vmatpush1.msra.mxu1 %v7452_v55  ;;  %5203 = vmatpush3.msra.mxu0 %v6795_v20  ;;  %v7473_v20 = vld [vmem:[%s9954_s3 + $0xe0] sm:$0xff] }
 0x1b6   : > { %1798 = vmatprep.subr.mxu1 %v7459_v52  ;;  %5204 = vmatprep.subr.mxu0 %v10254_v1  ;;  %10284 = vst [vmem:[#allocation16_spill] sm:$0xff] %v7473_v20 }
 0x1b7   : > { %1799 = vmatpush1.msra.mxu1 %v7466_v57  ;;  %5205 = vmatpush3.msra.mxu0 %v6808_v63  ;;  %v7487_v63 = vld [vmem:[%s9954_s3 + $0xc8] sm:$0xff] }
 0x1b8   : > { %1800 = vmatprep.subr.mxu1 %v7473_v20  ;;  %5206 = vmatprep.subr.mxu0 %v10254_v1  ;;  %10286 = vst [vmem:[#allocation18_spill] sm:$0xff] %v7487_v63 }
 0x1b9   : > { %1801 = vmatpush1.msra.mxu1 %v7480_v59  ;;  %5207 = vmatpush3.msra.mxu0 %v6823_v29  ;;  %v7501_v29 = vld [vmem:[%s9954_s3 + $0xb0] sm:$0xff] }
 0x1ba   : > { %1802 = vmatprep.subr.mxu1 %v7487_v63  ;;  %5208 = vmatprep.subr.mxu0 %v10254_v1  ;;  %10288 = vst [vmem:[#allocation21_spill] sm:$0xff] %v7501_v29 }
 0x1bb   : > { %1803 = vmatpush1.msra.mxu1 %v7494_v9  ;;  %5209 = vmatpush3.msra.mxu0 %v6836_v14  ;;  %v7515_v14 = vld [vmem:[%s9954_s3 + $0x98] sm:$0xff] }
 0x1bc   : > { %1804 = vmatprep.subr.mxu1 %v7501_v29  ;;  %5210 = vmatprep.subr.mxu0 %v10254_v1  ;;  %10290 = vst [vmem:[#allocation24_spill] sm:$0xff] %v7515_v14 }
 0x1bd   : > { %1805 = vmatpush1.msra.mxu1 %v7508_v8  ;;  %5211 = vmatpush3.msra.mxu0 %v6851_v38  ;;  %v7529_v38 = vld [vmem:[%s9954_s3 + $0x80] sm:$0xff] }
 0x1be   : > { %1806 = vmatprep.subr.mxu1 %v7515_v14  ;;  %5212 = vmatprep.subr.mxu0 %v10254_v1  ;;  %10292 = vst [vmem:[#allocation27_spill] sm:$0xff] %v7529_v38 }
 0x1bf   : > { %1807 = vmatpush1.msra.mxu1 %v7522_v32  ;;  %5213 = vmatpush3.msra.mxu0 %v6864_v18  ;;  %v7543_v18 = vld [vmem:[%s9954_s3 + $0x68] sm:$0xff] }
 0x1c0   : > { %1808 = vmatprep.subr.mxu1 %v7529_v38  ;;  %5214 = vmatprep.subr.mxu0 %v10254_v1  ;;  %10295 = vst [vmem:[#allocation31_spill] sm:$0xff] %v7543_v18 }
 0x1c1   : > { %1809 = vmatpush1.msra.mxu1 %v7536_v46  ;;  %5215 = vmatpush3.msra.mxu0 %v10294_v47 }
 0x1c2   : > { %1810 = vmatprep.subr.mxu1 %v7543_v18  ;;  %5216 = vmatprep.subr.mxu0 %v10254_v1 }
 0x1c3   : > { %1811 = vmatpush1.msra.mxu1 %v7550_v44  ;;  %5217 = vmatpush3.msra.mxu0 %v10297_v25 }
 0x1c4   : > { %1812 = vmatprep.subr.mxu1 %v7557_v0  ;;  %5218 = vmatprep.subr.mxu0 %v10254_v1 }
 0x1c5   : > { %1813 = vmatpush1.msra.mxu1 %v7564_v30  ;;  %5219 = vmatpush3.msra.mxu0 %v10300_v60 }
 0x1c6   : > { %1814 = vmatprep.subr.mxu1 %v7571_v40  ;;  %5220 = vmatprep.subr.mxu0 %v10254_v1 }
 0x1c7   : > { %1815 = vmatpush1.msra.mxu1 %v7578_v56  ;;  %5221 = vmatpush3.msra.mxu0 %v10303_v49  ;;  %v10312_v49 = vld [vmem:[#allocation40_spill] sm:$0xff] }
 0x1c8   : > { %1816 = vmatprep.subr.mxu1 %v7585_v62  ;;  %5222 = vmatprep.subr.mxu0 %v10254_v1 }
 0x1c9   : > { %1817 = vmatpush1.msra.mxu1 %v7592_v16  ;;  %5223 = vmatpush3.msra.mxu0 %v10306_v7 }
 0x1ca   : > { %1818 = vmatprep.subr.mxu1 %v7599_v10  ;;  %5224 = vmatprep.subr.mxu0 %v10254_v1  ;;  %v10314_v10 = vld [vmem:[#allocation42_spill] sm:$0xff] }
 0x1cb   : > { %1819 = vmatpush1.msra.mxu1 %v7606_v58  ;;  %1852 = vmatprep.mubr.f32.mxu1 %v10254_v1  ;;  %v10313_v58 = vld [vmem:[#allocation70_spill] sm:$0xff] }
 0x1cc   : > { %5225 = vmatpush3.msra.mxu0 %v10309_v6  ;;  %5226 = vmatprep.mubr.msk.f32.mxu0 %vm6067_vm0, %v10254_v1 }
 0x1cd   : > { %1950 = vmatprep.subr.mxu1 %v7613_v51  ;;  %5229 = vmatprep.subr.mxu0 %v10254_v1 }
 0x24a   : > { %v1520_v3 = vpop.f32.mrf.mxu1  ;;  %v1591_v36 = vpop.f32.mrf.mxu0 }
 0x24b   : > { %v1521_v47 = vadd.f32 %v1520_v3, %v10311_v39  ;;  %v10315_v3 = vld [vmem:[#allocation82_spill] sm:$0xff] }
 0x24c   : > { %v1522_v25 = vpop.f32.mrf.mxu1  ;;  %v5158_v60 = vpop.f32.mrf.mxu0 }
 0x24d   : > { %v1595_v7 = vadd.f32 %v1521_v47, %v10312_v49  ;;  %v1523_v6 = vadd.f32 %v1522_v25, %v10313_v58  ;;  %v10316_v60 = vld [vmem:[#allocation83_spill] sm:$0xff]  ;;  %v10317_v25 = vld [vmem:[#allocation61_spill] sm:$0xff] }
 0x24e   : > { %v1592_v18 = vadd.f32 %v1591_v36, %v10316_v60 }
 0x24f   : > { %v4645_v53 = vmul.f32 -1.442695, %v1595_v7  ;;  %v1602_v16 = vadd.f32 %v1523_v6, %v10314_v10 }
 0x251   : > { %5673 = vpow2.f32 %v4645_v53  ;;  %v4646_v62 = vmul.f32 -1.442695, %v1602_v16 }
 0x253   : > { %5675 = vpow2.f32 %v4646_v62 }
 0x25e   : > { %v5674_v56 = vpop.eup %5673 }
 0x25f   : > { %v1599_v51 = vadd.f32 1.0, %v5674_v56  ;;  %v10318_v56 = vld [vmem:[#allocation39_spill] sm:$0xff] }
 0x260   : > { %v5676_v40 = vpop.eup %5675 }
 0x261   : > { %5677 = vrcp.f32 %v1599_v51  ;;  %v1606_v30 = vadd.f32 1.0, %v5676_v40  ;;  %v10319_v40 = vld [vmem:[#allocation80_spill] sm:$0xff] }
 0x263   : > { %5679 = vrcp.f32 %v1606_v30 }
 0x26b   : > { %v1682_v0 = vpop.f32.mrf.mxu1  ;;  %v1753_v44 = vpop.f32.mrf.mxu0 }
 0x26c   : > { %v1683_v39 = vadd.f32 %v1682_v0, %v10315_v3 }
 0x26d   : > { %v1684_v47 = vpop.f32.mrf.mxu1  ;;  %v5193_v49 = vpop.f32.mrf.mxu0 }
 0x26e   : > { %v5678_v7 = vpop.eup %5677  ;;  %v1757_v53 = vadd.f32 %v1683_v39, %v10317_v25  ;;  %v1685_v62 = vadd.f32 %v1684_v47, %v7300_v42  ;;  %v7636_v39 = vld [vmem:[#allocation5 + $0x158] sm:$0xff]  ;;  %v7652_v47 = vld [vmem:[#allocation5 + $0x128] sm:$0xff]  ;;  %v7660_v25 = vld [vmem:[#allocation5 + $0x110] sm:$0xff] }
 0x26f   : > { %v1609_v58 = vmul.f32 %v5678_v7, %v1592_v18  ;;  %v7656_v7 = vld [vmem:[#allocation5 + $0x120] sm:$0xff] }
 0x270   : > { %v4647_v16 = vmul.f32 -1.442695, %v1757_v53  ;;  %v1764_v51 = vadd.f32 %v1685_v62, %v10319_v40  ;;  %v5680_v0 = vpop.eup %5679  ;;  %v7665_v53 = vld [vmem:[#allocation5 + $0x108] sm:$0xff]  ;;  %v7669_v62 = vld [vmem:[#allocation5 + $0xf8] sm:$0xff] }
 0x271   : > { %v1610_v10 = vadd.f32 %v1609_v58, %v10318_v56  ;;  %v1612_v60 = vsub.f32 1.0, %v5680_v0  ;;  %v1614_v18 = vmul.f32 %v5680_v0, %v7307_v5  ;;  %v7632_v58 = vld [vmem:[#allocation5 + $0x168] sm:$0xff]  ;;  %v7673_v56 = vld [vmem:[#allocation5 + $0xf0] sm:$0xff]  ;;  %v7682_v40 = vld [vmem:[#allocation5 + $0xd8] sm:$0xff] }
 0x272   : > { %5681 = vpow2.f32 %v4647_v16  ;;  %v4648_v6 = vmul.f32 -1.442695, %v1764_v51  ;;  %v7686_v51 = vld [vmem:[#allocation5 + $0xc8] sm:$0xff]  ;;  %v7702_v0 = vld [vmem:[#allocation5 + $0x98] sm:$0xff] }
 0x273   : > { %5683 = vtanh.f32 %v1610_v10  ;;  %v7751_v5 = vld [vmem:[#allocation5 + $0x8] sm:$0xff] }
 0x274   : > { %5685 = vpow2.f32 %v4648_v6  ;;  %v7694_v6 = vld [vmem:[#allocation5 + $0xb0] sm:$0xff] }
 0x27f   : > { %v5682_v36 = vpop.eup %5681 }
 0x280   : > { %v5684_v49 = vpop.eup %5683  ;;  %v1761_v3 = vadd.f32 1.0, %v5682_v36  ;;  %v7706_v36 = vld [vmem:[#allocation5 + $0x90] sm:$0xff] }
 0x281   : > { %v1613_v46 = vmul.f32 %v5684_v49, %v1612_v60  ;;  %v7640_v60 = vld [vmem:[#allocation5 + $0x150] sm:$0xff]  ;;  %v7714_v49 = vld [vmem:[#allocation5 + $0x78] sm:$0xff] }
 0x282   : > { %5687 = vrcp.f32 %v1761_v3  ;;  %v7644_v3 = vld [vmem:[#allocation5 + $0x140] sm:$0xff] }
 0x283   : > { %v7628_v30 = vadd.f32 %v1614_v18, %v1613_v46  ;;  %v5686_v46 = vpop.eup %5685  ;;  %v7722_v18 = vld [vmem:[#allocation5 + $0x60] sm:$0xff] }
 0x285   : > { %10320 = vst [vmem:[#allocation40_spill] sm:$0xff] %v7628_v30  ;;  %1853 = vmatmul.mubr.f32.vlgmr.msra.gmra.mxu1 %v7628_v30  ;;  %5227 = vmatmul.mubr.f32.vlgmr.msra.gmra.mxu0 %v7628_v30 }
 0x286   : > { %1951 = vmatpush1.msra.mxu1 %v7632_v58  ;;  %5230 = vmatpush3.msra.mxu0 %v6961_v12  ;;  %v7648_v12 = vld [vmem:[#allocation5 + $0x138] sm:$0xff] }
 0x287   : > { %1952 = vmatprep.subr.mxu1 %v7636_v39  ;;  %5231 = vmatprep.subr.mxu0 %v10254_v1 }
 0x288   : > { %1953 = vmatpush1.msra.mxu1 %v7640_v60  ;;  %5232 = vmatpush3.msra.mxu0 %v6966_v2  ;;  %v1768_v2 = vadd.f32 1.0, %v5686_v46  ;;  %v7726_v46 = vld [vmem:[#allocation5 + $0x50] sm:$0xff] }
 0x289   : > { %1954 = vmatprep.subr.mxu1 %v7644_v3  ;;  %5233 = vmatprep.subr.mxu0 %v10254_v1 }
 0x28a   : > { %1955 = vmatpush1.msra.mxu1 %v7648_v12  ;;  %5234 = vmatpush3.msra.mxu0 %v6973_v23  ;;  %v1754_v23 = vadd.f32 %v1753_v44, %v7320_v21  ;;  %5689 = vrcp.f32 %v1768_v2  ;;  %v7677_v44 = vld [vmem:[#allocation5 + $0xe0] sm:$0xff]  ;;  %v7734_v2 = vld [vmem:[#allocation5 + $0x38] sm:$0xff] }
 0x28b   : > { %1956 = vmatprep.subr.mxu1 %v7652_v47  ;;  %5235 = vmatprep.subr.mxu0 %v10254_v1  ;;  %10322 = vst [vmem:[#allocation42_spill] sm:$0xff] %v7734_v2 }
 0x28c   : > { %1957 = vmatpush1.msra.mxu1 %v7656_v7  ;;  %5236 = vmatpush3.msra.mxu0 %v6979_v4 }
 0x28d   : > { %1958 = vmatprep.subr.mxu1 %v7660_v25  ;;  %5237 = vmatprep.subr.mxu0 %v10254_v1 }
 0x28e   : > { %1959 = vmatpush1.msra.mxu1 %v7665_v53  ;;  %5238 = vmatpush3.msra.mxu0 %v6985_v13  ;;  %v10321_v13 = vld [vmem:[#allocation81_spill] sm:$0xff] }
 0x28f   : > { %v5688_v16 = vpop.eup %5687  ;;  %1960 = vmatprep.subr.mxu1 %v7669_v62  ;;  %5239 = vmatprep.subr.mxu0 %v10254_v1  ;;  %10326 = vst [vmem:[#allocation81_spill] sm:$0xff] %v7751_v5 }
 0x290   : > { %v1771_v4 = vmul.f32 %v5688_v16, %v1754_v23  ;;  %1961 = vmatpush1.msra.mxu1 %v7673_v56  ;;  %5240 = vmatpush3.msra.mxu0 %v6991_v15  ;;  %v7690_v15 = vld [vmem:[#allocation5 + $0xc0] sm:$0xff] }
 0x291   : > { %1962 = vmatprep.subr.mxu1 %v7677_v44  ;;  %5241 = vmatprep.subr.mxu0 %v10254_v1 }
 0x292   : > { %v1772_v10 = vadd.f32 %v1771_v4, %v10321_v13  ;;  %1963 = vmatpush1.msra.mxu1 %v7682_v40  ;;  %5242 = vmatpush3.msra.mxu0 %v6997_v17  ;;  %v7698_v17 = vld [vmem:[#allocation5 + $0xa8] sm:$0xff]  ;;  %v7742_v4 = vld [vmem:[#allocation5 + $0x20] sm:$0xff] }
 0x293   : > { %1964 = vmatprep.subr.mxu1 %v7686_v51  ;;  %5243 = vmatprep.subr.mxu0 %v10254_v1  ;;  %10324 = vst [vmem:[#allocation39_spill] sm:$0xff] %v7742_v4 }
 0x294   : > { %5691 = vtanh.f32 %v1772_v10  ;;  %1965 = vmatpush1.msra.mxu1 %v7690_v15  ;;  %5244 = vmatpush3.msra.mxu0 %v7003_v19  ;;  %v7710_v19 = vld [vmem:[#allocation5 + $0x80] sm:$0xff] }
 0x295   : > { %1966 = vmatprep.subr.mxu1 %v7694_v6  ;;  %5245 = vmatprep.subr.mxu0 %v10254_v1 }
 0x296   : > { %1967 = vmatpush1.msra.mxu1 %v7698_v17  ;;  %5246 = vmatpush3.msra.mxu0 %v7009_v22  ;;  %v7718_v22 = vld [vmem:[#allocation5 + $0x68] sm:$0xff] }
 0x297   : > { %1968 = vmatprep.subr.mxu1 %v7702_v0  ;;  %5247 = vmatprep.subr.mxu0 %v10254_v1 }
 0x298   : > { %1969 = vmatpush1.msra.mxu1 %v7706_v36  ;;  %5248 = vmatpush3.msra.mxu0 %v7015_v24  ;;  %v5690_v24 = vpop.eup %5689 }
 0x299   : > { %1970 = vmatprep.subr.mxu1 %v7710_v19  ;;  %5249 = vmatprep.subr.mxu0 %v10254_v1  ;;  %v1774_v23 = vsub.f32 1.0, %v5690_v24  ;;  %v1776_v10 = vmul.f32 %v5690_v24, %v7379_v43  ;;  %v7790_v24 = vld [vmem:[%s9954_s3 + $0x148] sm:$0xff]  ;;  %v7835_v43 = vld [vmem:[%s9954_s3 + $0xd0] sm:$0xff] }
 0x29a   : > { %1971 = vmatpush1.msra.mxu1 %v7714_v49  ;;  %5250 = vmatpush3.msra.mxu0 %v7021_v26  ;;  %v7730_v26 = vld [vmem:[#allocation5 + $0x48] sm:$0xff]  ;;  %10331 = vst [vmem:[#allocation91_spill] sm:$0xff] %v7790_v24  ;;  %10336 = vst [vmem:[#allocation96_spill] sm:$0xff] %v7835_v43 }
 0x29b   : > { %1972 = vmatprep.subr.mxu1 %v7718_v22  ;;  %5251 = vmatprep.subr.mxu0 %v10254_v1 }
 0x29c   : > { %1973 = vmatpush1.msra.mxu1 %v7722_v18  ;;  %5252 = vmatpush3.msra.mxu0 %v7027_v28  ;;  %v7738_v28 = vld [vmem:[#allocation5 + $0x30] sm:$0xff] }
 0x29d   : > { %1974 = vmatprep.subr.mxu1 %v7726_v46  ;;  %5253 = vmatprep.subr.mxu0 %v10254_v1  ;;  %10323 = vst [vmem:[#allocation61_spill] sm:$0xff] %v7738_v28 }
 0x29e   : > { %1975 = vmatpush1.msra.mxu1 %v7730_v26  ;;  %5254 = vmatpush3.msra.mxu0 %v7033_v31  ;;  %v7746_v31 = vld [vmem:[#allocation5 + $0x18] sm:$0xff] }
 0x29f   : > { %1976 = vmatprep.subr.mxu1 %v7734_v2  ;;  %5255 = vmatprep.subr.mxu0 %v10254_v1  ;;  %10325 = vst [vmem:[#allocation80_spill] sm:$0xff] %v7746_v31 }
 0x2a0   : > { %1977 = vmatpush1.msra.mxu1 %v7738_v28  ;;  %5256 = vmatpush3.msra.mxu0 %v7039_v33  ;;  %v7755_v33 = vld [vmem:[#allocation5] sm:$0xff] }
 0x2a1   : > { %v5692_v16 = vpop.eup %5691  ;;  %1978 = vmatprep.subr.mxu1 %v7742_v4  ;;  %5257 = vmatprep.subr.mxu0 %v10254_v1  ;;  %10327 = vst [vmem:[#allocation87_spill] sm:$0xff] %v7755_v33 }
 0x2a2   : > { %1979 = vmatpush1.msra.mxu1 %v7746_v31  ;;  %5258 = vmatpush3.msra.mxu0 %v7045_v35  ;;  %v1775_v13 = vmul.f32 %v5692_v16, %v1774_v23  ;;  %v7772_v35 = vld [vmem:[%s9954_s3 + $0x178] sm:$0xff]  ;;  %v7799_v23 = vld [vmem:[%s9954_s3 + $0x130] sm:$0xff] }
 0x2a3   : > { %1980 = vmatprep.subr.mxu1 %v7751_v5  ;;  %5259 = vmatprep.subr.mxu0 %v10254_v1  ;;  %10329 = vst [vmem:[#allocation89_spill] sm:$0xff] %v7772_v35  ;;  %10332 = vst [vmem:[#allocation92_spill] sm:$0xff] %v7799_v23  ;;  %v7808_v16 = vld [vmem:[%s9954_s3 + $0x118] sm:$0xff] }
 0x2a4   : > { %1981 = vmatpush1.msra.mxu1 %v7755_v33  ;;  %2014 = vmatprep.mubr.f32.mxu1 %v10254_v1  ;;  %v7759_v4 = vadd.f32 %v1776_v10, %v1775_v13  ;;  %10333 = vst [vmem:[#allocation93_spill] sm:$0xff] %v7808_v16  ;;  %v7817_v13 = vld [vmem:[%s9954_s3 + $0x100] sm:$0xff]  ;;  %v7826_v10 = vld [vmem:[%s9954_s3 + $0xe8] sm:$0xff] }
 0x2a5   : > { %5260 = vmatpush3.msra.mxu0 %v7051_v37  ;;  %5261 = vmatprep.mubr.msk.f32.mxu0 %vm6067_vm0, %v10254_v1  ;;  %v7781_v37 = vld [vmem:[%s9954_s3 + $0x160] sm:$0xff]  ;;  %10334 = vst [vmem:[#allocation94_spill] sm:$0xff] %v7817_v13  ;;  %10335 = vst [vmem:[#allocation95_spill] sm:$0xff] %v7826_v10 }
 0x2a6   : > { %10328 = vst [vmem:[#allocation88_spill] sm:$0xff] %v7759_v4  ;;  %2015 = vmatmul.mubr.f32.vlgmr.msra.gmra.mxu1 %v7759_v4  ;;  %5262 = vmatmul.mubr.f32.vlgmr.msra.gmra.mxu0 %v7759_v4  ;;  %10330 = vst [vmem:[#allocation90_spill] sm:$0xff] %v7781_v37 }
 0x2a7   : > { %2122 = vmatprep.subr.mxu1 %v7389_v61  ;;  %5264 = vmatprep.subr.mxu0 %v10254_v1 }
 0x2a8   : > { %2123 = vmatpush1.msra.mxu1 %v7396_v45  ;;  %5265 = vmatpush3.msra.mxu0 %v7772_v35 }
 0x2a9   : > { %2124 = vmatprep.subr.mxu1 %v7403_v48  ;;  %5266 = vmatprep.subr.mxu0 %v10254_v1 }
 0x2aa   : > { %2125 = vmatpush1.msra.mxu1 %v7410_v50  ;;  %5267 = vmatpush3.msra.mxu0 %v7781_v37 }
 0x2ab   : > { %2126 = vmatprep.subr.mxu1 %v7417_v34  ;;  %5268 = vmatprep.subr.mxu0 %v10254_v1 }
 0x2ac   : > { %2127 = vmatpush1.msra.mxu1 %v7424_v54  ;;  %5269 = vmatpush3.msra.mxu0 %v7790_v24 }
 0x2ad   : > { %2128 = vmatprep.subr.mxu1 %v7431_v41  ;;  %5270 = vmatprep.subr.mxu0 %v10254_v1 }
 0x2ae   : > { %2129 = vmatpush1.msra.mxu1 %v7438_v27  ;;  %5271 = vmatpush3.msra.mxu0 %v7799_v23 }
 0x2af   : > { %2130 = vmatprep.subr.mxu1 %v7445_v11  ;;  %5272 = vmatprep.subr.mxu0 %v10254_v1 }
 0x2b0   : > { %2131 = vmatpush1.msra.mxu1 %v7452_v55  ;;  %5273 = vmatpush3.msra.mxu0 %v7808_v16 }
 0x2b1   : > { %2132 = vmatprep.subr.mxu1 %v7459_v52  ;;  %5274 = vmatprep.subr.mxu0 %v10254_v1 }
 0x2b2   : > { %2133 = vmatpush1.msra.mxu1 %v7466_v57  ;;  %5275 = vmatpush3.msra.mxu0 %v7817_v13  ;;  %v10359_v13 = vld [vmem:[#allocation70_spill] sm:$0xff] }
 0x2b3   : > { %2134 = vmatprep.subr.mxu1 %v7473_v20  ;;  %5276 = vmatprep.subr.mxu0 %v10254_v1 }
 0x2b4   : > { %2135 = vmatpush1.msra.mxu1 %v7480_v59  ;;  %5277 = vmatpush3.msra.mxu0 %v7826_v10  ;;  %v10358_v10 = vld [vmem:[#allocation44_spill] sm:$0xff] }
 0x2b5   : > { %2136 = vmatprep.subr.mxu1 %v7487_v63  ;;  %5278 = vmatprep.subr.mxu0 %v10254_v1  ;;  %v7844_v63 = vld [vmem:[%s9954_s3 + $0xb8] sm:$0xff] }
 0x2b6   : > { %2137 = vmatpush1.msra.mxu1 %v7494_v9  ;;  %5279 = vmatpush3.msra.mxu0 %v7835_v43  ;;  %10337 = vst [vmem:[#allocation97_spill] sm:$0xff] %v7844_v63 }
 0x2b7   : > { %2138 = vmatprep.subr.mxu1 %v7501_v29  ;;  %5280 = vmatprep.subr.mxu0 %v10254_v1  ;;  %v7853_v29 = vld [vmem:[%s9954_s3 + $0xa0] sm:$0xff] }
 0x2b8   : > { %2139 = vmatpush1.msra.mxu1 %v7508_v8  ;;  %5281 = vmatpush3.msra.mxu0 %v7844_v63  ;;  %10338 = vst [vmem:[#allocation98_spill] sm:$0xff] %v7853_v29  ;;  %v10339_v8 = vld [vmem:[#allocation29_spill] sm:$0xff]  ;;  %v10342_v63 = vld [vmem:[#allocation32_spill] sm:$0xff] }
 0x2b9   : > { %2140 = vmatprep.subr.mxu1 %v7515_v14  ;;  %5282 = vmatprep.subr.mxu0 %v10254_v1  ;;  %v7862_v14 = vld [vmem:[%s9954_s3 + $0x88] sm:$0xff] }
 0x2ba   : > { %2141 = vmatpush1.msra.mxu1 %v7522_v32  ;;  %5283 = vmatpush3.msra.mxu0 %v7853_v29  ;;  %10340 = vst [vmem:[#allocation99_spill] sm:$0xff] %v7862_v14  ;;  %v10341_v32 = vld [vmem:[#allocation31_spill] sm:$0xff] }
 0x2bb   : > { %2142 = vmatprep.subr.mxu1 %v7529_v38  ;;  %5284 = vmatprep.subr.mxu0 %v10254_v1  ;;  %v7871_v38 = vld [vmem:[%s9954_s3 + $0x70] sm:$0xff]  ;;  %v10345_v29 = vld [vmem:[#allocation19_spill] sm:$0xff] }
 0x2bc   : > { %2143 = vmatpush1.msra.mxu1 %v10339_v8  ;;  %5285 = vmatpush3.msra.mxu0 %v7862_v14  ;;  %10343 = vst [vmem:[#allocation100_spill] sm:$0xff] %v7871_v38  ;;  %v10344_v8 = vld [vmem:[#allocation34_spill] sm:$0xff]  ;;  %v10348_v14 = vld [vmem:[#allocation25_spill] sm:$0xff] }
 0x2bd   : > { %2144 = vmatprep.subr.mxu1 %v10341_v32  ;;  %5286 = vmatprep.subr.mxu0 %v10254_v1  ;;  %v7880_v32 = vld [vmem:[%s9954_s3 + $0x58] sm:$0xff] }
 0x2be   : > { %2145 = vmatpush1.msra.mxu1 %v10342_v63  ;;  %5287 = vmatpush3.msra.mxu0 %v7871_v38  ;;  %10346 = vst [vmem:[#allocation101_spill] sm:$0xff] %v7880_v32  ;;  %v10347_v63 = vld [vmem:[#allocation22_spill] sm:$0xff]  ;;  %v10351_v38 = vld [vmem:[#allocation85_spill] sm:$0xff] }
 0x2bf   : > { %2146 = vmatprep.subr.mxu1 %v10344_v8  ;;  %5288 = vmatprep.subr.mxu0 %v10254_v1  ;;  %v7889_v8 = vld [vmem:[%s9954_s3 + $0x40] sm:$0xff] }
 0x2c0   : > { %2147 = vmatpush1.msra.mxu1 %v10345_v29  ;;  %5289 = vmatpush3.msra.mxu0 %v7880_v32  ;;  %10349 = vst [vmem:[#allocation102_spill] sm:$0xff] %v7889_v8  ;;  %v10350_v29 = vld [vmem:[#allocation28_spill] sm:$0xff]  ;;  %v10354_v32 = vld [vmem:[#allocation86_spill] sm:$0xff] }
 0x2c1   : > { %2148 = vmatprep.subr.mxu1 %v10347_v63  ;;  %5290 = vmatprep.subr.mxu0 %v10254_v1  ;;  %v7898_v63 = vld [vmem:[%s9954_s3 + $0x28] sm:$0xff] }
 0x2c2   : > { %2149 = vmatpush1.msra.mxu1 %v10348_v14  ;;  %5291 = vmatpush3.msra.mxu0 %v7889_v8  ;;  %10352 = vst [vmem:[#allocation103_spill] sm:$0xff] %v7898_v63  ;;  %v10353_v14 = vld [vmem:[#allocation30_spill] sm:$0xff]  ;;  %v10357_v8 = vld [vmem:[#allocation65_spill] sm:$0xff] }
 0x2c3   : > { %2150 = vmatprep.subr.mxu1 %v10350_v29  ;;  %5292 = vmatprep.subr.mxu0 %v10254_v1  ;;  %v7908_v29 = vld [vmem:[%s9954_s3 + $0x10] sm:$0xff] }
 0x2c4   : > { %2151 = vmatpush1.msra.mxu1 %v10351_v38  ;;  %5293 = vmatpush3.msra.mxu0 %v7898_v63  ;;  %10355 = vst [vmem:[#allocation104_spill] sm:$0xff] %v7908_v29  ;;  %v10356_v38 = vld [vmem:[#allocation33_spill] sm:$0xff] }
 0x2c5   : > { %2152 = vmatprep.subr.mxu1 %v10353_v14  ;;  %5294 = vmatprep.subr.mxu0 %v10254_v1 }
 0x2c6   : > { %2153 = vmatpush1.msra.mxu1 %v10354_v32  ;;  %2186 = vmatprep.mubr.f32.mxu1 %v10254_v1 }
 0x2c7   : > { %5295 = vmatpush3.msra.mxu0 %v7908_v29  ;;  %5296 = vmatprep.mubr.msk.f32.mxu0 %vm6067_vm0, %v10254_v1  ;;  %v10360_v29 = vld [vmem:[#allocation46_spill] sm:$0xff] }
 0x2c8   : > { %2284 = vmatprep.subr.mxu1 %v10356_v38  ;;  %5299 = vmatprep.subr.mxu0 %v10254_v1 }
 0x345   : > { %v1854_v14 = vpop.f32.mrf.mxu1  ;;  %v1925_v63 = vpop.f32.mrf.mxu0 }
 0x346   : > { %v1855_v32 = vadd.f32 %v1854_v14, %v10357_v8  ;;  %v10361_v14 = vld [vmem:[#allocation82_spill] sm:$0xff] }
 0x347   : > { %v1856_v43 = vpop.f32.mrf.mxu1  ;;  %v5228_v9 = vpop.f32.mrf.mxu0 }
 0x348   : > { %v1929_v59 = vadd.f32 %v1855_v32, %v10358_v10  ;;  %v1857_v57 = vadd.f32 %v1856_v43, %v10359_v13  ;;  %v10362_v9 = vld [vmem:[#allocation83_spill] sm:$0xff]  ;;  %v10363_v43 = vld [vmem:[#allocation57_spill] sm:$0xff] }
 0x349   : > { %v1926_v24 = vadd.f32 %v1925_v63, %v10362_v9 }
 0x34a   : > { %v4649_v20 = vmul.f32 -1.442695, %v1929_v59  ;;  %v1936_v52 = vadd.f32 %v1857_v57, %v10360_v29 }
 0x34c   : > { %5693 = vpow2.f32 %v4649_v20  ;;  %v4650_v16 = vmul.f32 -1.442695, %v1936_v52 }
 0x34e   : > { %5695 = vpow2.f32 %v4650_v16 }
 0x359   : > { %v5694_v55 = vpop.eup %5693 }
 0x35a   : > { %v1933_v38 = vadd.f32 1.0, %v5694_v55  ;;  %v10364_v55 = vld [vmem:[#allocation43_spill] sm:$0xff] }
 0x35b   : > { %v5696_v11 = vpop.eup %5695 }
 0x35c   : > { %5697 = vrcp.f32 %v1933_v38  ;;  %v1940_v23 = vadd.f32 1.0, %v5696_v11  ;;  %v10365_v11 = vld [vmem:[#allocation78_spill] sm:$0xff] }
 0x35e   : > { %5699 = vrcp.f32 %v1940_v23  ;;  %v7931_v23 = vld [vmem:[#allocation5 + $0x178] sm:$0xff] }
 0x366   : > { %v2016_v27 = vpop.f32.mrf.mxu1  ;;  %v2087_v41 = vpop.f32.mrf.mxu0 }
 0x367   : > { %v2017_v8 = vadd.f32 %v2016_v27, %v10361_v14 }
 0x368   : > { %v2018_v32 = vpop.f32.mrf.mxu1  ;;  %v5263_v59 = vpop.f32.mrf.mxu0 }
 0x369   : > { %v5698_v10 = vpop.eup %5697  ;;  %v2091_v20 = vadd.f32 %v2017_v8, %v10363_v43  ;;  %v2019_v57 = vadd.f32 %v2018_v32, %v7300_v42  ;;  %v7949_v32 = vld [vmem:[#allocation5 + $0x130] sm:$0xff]  ;;  %v7956_v43 = vld [vmem:[#allocation5 + $0x118] sm:$0xff] }
 0x36a   : > { %v1943_v13 = vmul.f32 %v5698_v10, %v1926_v24  ;;  %v2088_v10 = vadd.f32 %v2087_v41, %v7320_v21  ;;  %v10367_v41 = vld [vmem:[#allocation79_spill] sm:$0xff] }
 0x36b   : > { %v4651_v52 = vmul.f32 -1.442695, %v2091_v20  ;;  %v2098_v38 = vadd.f32 %v2019_v57, %v10365_v11  ;;  %v5700_v27 = vpop.eup %5699  ;;  %v7962_v57 = vld [vmem:[#allocation5 + $0x100] sm:$0xff]  ;;  %v7975_v11 = vld [vmem:[#allocation5 + $0xd0] sm:$0xff] }
 0x36c   : > { %v1944_v29 = vadd.f32 %v1943_v13, %v10364_v55  ;;  %v1946_v9 = vsub.f32 1.0, %v5700_v27  ;;  %v1948_v8 = vmul.f32 %v5700_v27, %v7628_v30  ;;  %v7937_v13 = vld [vmem:[#allocation5 + $0x160] sm:$0xff]  ;;  %v7993_v27 = vld [vmem:[#allocation5 + $0x88] sm:$0xff] }
 0x36d   : > { %5701 = vpow2.f32 %v4651_v52  ;;  %v4652_v16 = vmul.f32 -1.442695, %v2098_v38  ;;  %v7981_v38 = vld [vmem:[#allocation5 + $0xb8] sm:$0xff] }
 0x36e   : > { %5703 = vtanh.f32 %v1944_v29  ;;  %v7969_v29 = vld [vmem:[#allocation5 + $0xe8] sm:$0xff] }
 0x36f   : > { %5705 = vpow2.f32 %v4652_v16  ;;  %v7987_v16 = vld [vmem:[#allocation5 + $0xa0] sm:$0xff] }
 0x37a   : > { %v5702_v63 = vpop.eup %5701 }
 0x37b   : > { %v5704_v59 = vpop.eup %5703  ;;  %v2095_v14 = vadd.f32 1.0, %v5702_v63  ;;  %v7999_v63 = vld [vmem:[#allocation5 + $0x70] sm:$0xff] }
 0x37c   : > { %v1947_v54 = vmul.f32 %v5704_v59, %v1946_v9 }
 0x37d   : > { %5707 = vrcp.f32 %v2095_v14  ;;  %v7943_v14 = vld [vmem:[#allocation5 + $0x148] sm:$0xff] }
 0x37e   : > { %v7926_v24 = vadd.f32 %v1948_v8, %v1947_v54  ;;  %v5706_v54 = vpop.eup %5705  ;;  %v8005_v8 = vld [vmem:[#allocation5 + $0x58] sm:$0xff] }
 0x37f   : > { %v2102_v9 = vadd.f32 1.0, %v5706_v54  ;;  %v8011_v54 = vld [vmem:[#allocation5 + $0x40] sm:$0xff] }
 0x380   : > { %10366 = vst [vmem:[#allocation44_spill] sm:$0xff] %v7926_v24  ;;  %2187 = vmatmul.mubr.f32.vlgmr.msra.gmra.mxu1 %v7926_v24  ;;  %5297 = vmatmul.mubr.f32.vlgmr.msra.gmra.mxu0 %v7926_v24  ;;  %10368 = vst [vmem:[#allocation46_spill] sm:$0xff] %v8011_v54 }
 0x381   : > { %2285 = vmatpush1.msra.mxu1 %v7632_v58  ;;  %5300 = vmatpush3.msra.mxu0 %v7931_v23  ;;  %5709 = vrcp.f32 %v2102_v9 }
 0x382   : > { %2286 = vmatprep.subr.mxu1 %v7636_v39  ;;  %5301 = vmatprep.subr.mxu0 %v10254_v1 }
 0x383   : > { %2287 = vmatpush1.msra.mxu1 %v7640_v60  ;;  %5302 = vmatpush3.msra.mxu0 %v7937_v13 }
 0x384   : > { %2288 = vmatprep.subr.mxu1 %v7644_v3  ;;  %5303 = vmatprep.subr.mxu0 %v10254_v1 }
 0x385   : > { %2289 = vmatpush1.msra.mxu1 %v7648_v12  ;;  %5304 = vmatpush3.msra.mxu0 %v7943_v14 }
 0x386   : > { %2290 = vmatprep.subr.mxu1 %v7652_v47  ;;  %5305 = vmatprep.subr.mxu0 %v10254_v1 }
 0x387   : > { %2291 = vmatpush1.msra.mxu1 %v7656_v7  ;;  %5306 = vmatpush3.msra.mxu0 %v7949_v32 }
 0x388   : > { %2292 = vmatprep.subr.mxu1 %v7660_v25  ;;  %5307 = vmatprep.subr.mxu0 %v10254_v1 }
 0x389   : > { %2293 = vmatpush1.msra.mxu1 %v7665_v53  ;;  %5308 = vmatpush3.msra.mxu0 %v7956_v43 }
 0x38a   : > { %v5708_v20 = vpop.eup %5707  ;;  %2294 = vmatprep.subr.mxu1 %v7669_v62  ;;  %5309 = vmatprep.subr.mxu0 %v10254_v1 }
 0x38b   : > { %v2105_v52 = vmul.f32 %v5708_v20, %v2088_v10  ;;  %2295 = vmatpush1.msra.mxu1 %v7673_v56  ;;  %5310 = vmatpush3.msra.mxu0 %v7962_v57  ;;  %v10369_v20 = vld [vmem:[#allocation39_spill] sm:$0xff] }
 0x38c   : > { %2296 = vmatprep.subr.mxu1 %v7677_v44  ;;  %5311 = vmatprep.subr.mxu0 %v10254_v1 }
 0x38d   : > { %v2106_v55 = vadd.f32 %v2105_v52, %v10367_v41  ;;  %2297 = vmatpush1.msra.mxu1 %v7682_v40  ;;  %5312 = vmatpush3.msra.mxu0 %v7969_v29  ;;  %v8017_v52 = vld [vmem:[#allocation5 + $0x28] sm:$0xff] }
 0x38e   : > { %2298 = vmatprep.subr.mxu1 %v7686_v51  ;;  %5313 = vmatprep.subr.mxu0 %v10254_v1  ;;  %v5710_v59 = vpop.eup %5709  ;;  %10370 = vst [vmem:[#allocation57_spill] sm:$0xff] %v8017_v52 }
 0x38f   : > { %5711 = vtanh.f32 %v2106_v55  ;;  %2299 = vmatpush1.msra.mxu1 %v7690_v15  ;;  %5314 = vmatpush3.msra.mxu0 %v7975_v11  ;;  %v2108_v9 = vsub.f32 1.0, %v5710_v59  ;;  %v2110_v55 = vmul.f32 %v5710_v59, %v7759_v4  ;;  %v10373_v59 = vld [vmem:[#allocation9_spill] sm:$0xff]  ;;  %v10387_v4 = vld [vmem:[#allocation18_spill] sm:$0xff] }
 0x390   : > { %2300 = vmatprep.subr.mxu1 %v7694_v6  ;;  %5315 = vmatprep.subr.mxu0 %v10254_v1 }
 0x391   : > { %2301 = vmatpush1.msra.mxu1 %v7698_v17  ;;  %5316 = vmatpush3.msra.mxu0 %v7981_v38 }
 0x392   : > { %2302 = vmatprep.subr.mxu1 %v7702_v0  ;;  %5317 = vmatprep.subr.mxu0 %v10254_v1 }
 0x393   : > { %2303 = vmatpush1.msra.mxu1 %v7706_v36  ;;  %5318 = vmatpush3.msra.mxu0 %v7987_v16 }
 0x394   : > { %2304 = vmatprep.subr.mxu1 %v7710_v19  ;;  %5319 = vmatprep.subr.mxu0 %v10254_v1 }
 0x395   : > { %2305 = vmatpush1.msra.mxu1 %v7714_v49  ;;  %5320 = vmatpush3.msra.mxu0 %v7993_v27 }
 0x396   : > { %2306 = vmatprep.subr.mxu1 %v7718_v22  ;;  %5321 = vmatprep.subr.mxu0 %v10254_v1 }
 0x397   : > { %2307 = vmatpush1.msra.mxu1 %v7722_v18  ;;  %5322 = vmatpush3.msra.mxu0 %v7999_v63 }
 0x398   : > { %2308 = vmatprep.subr.mxu1 %v7726_v46  ;;  %5323 = vmatprep.subr.mxu0 %v10254_v1 }
 0x399   : > { %2309 = vmatpush1.msra.mxu1 %v7730_v26  ;;  %5324 = vmatpush3.msra.mxu0 %v8005_v8 }
 0x39a   : > { %2310 = vmatprep.subr.mxu1 %v7734_v2  ;;  %5325 = vmatprep.subr.mxu0 %v10254_v1 }
 0x39b   : > { %2311 = vmatpush1.msra.mxu1 %v7738_v28  ;;  %5326 = vmatpush3.msra.mxu0 %v8011_v54 }
 0x39c   : > { %v5712_v10 = vpop.eup %5711  ;;  %2312 = vmatprep.subr.mxu1 %v10369_v20  ;;  %5327 = vmatprep.subr.mxu0 %v10254_v1  ;;  %v8027_v20 = vld [vmem:[#allocation5 + $0x10] sm:$0xff] }
 0x39d   : > { %2313 = vmatpush1.msra.mxu1 %v7746_v31  ;;  %5328 = vmatpush3.msra.mxu0 %v8017_v52  ;;  %v2109_v41 = vmul.f32 %v5712_v10, %v2108_v9  ;;  %10372 = vst [vmem:[#allocation78_spill] sm:$0xff] %v8027_v20  ;;  %v10375_v9 = vld [vmem:[#allocation10_spill] sm:$0xff]  ;;  %v10378_v10 = vld [vmem:[#allocation12_spill] sm:$0xff] }
 0x39e   : > { %2314 = vmatprep.subr.mxu1 %v7751_v5  ;;  %5329 = vmatprep.subr.mxu0 %v10254_v1 }
 0x39f   : > { %2315 = vmatpush1.msra.mxu1 %v7755_v33  ;;  %2348 = vmatprep.mubr.f32.mxu1 %v10254_v1  ;;  %v8025_v30 = vadd.f32 %v2110_v55, %v2109_v41  ;;  %v10381_v41 = vld [vmem:[#allocation14_spill] sm:$0xff]  ;;  %v10382_v55 = vld [vmem:[#allocation15_spill] sm:$0xff] }
 0x3a0   : > { %5330 = vmatpush3.msra.mxu0 %v8027_v20  ;;  %5331 = vmatprep.mubr.msk.f32.mxu0 %vm6067_vm0, %v10254_v1 }
 0x3a1   : > { %10371 = vst [vmem:[#allocation43_spill] sm:$0xff] %v8025_v30  ;;  %2349 = vmatmul.mubr.f32.vlgmr.msra.gmra.mxu1 %v8025_v30  ;;  %5332 = vmatmul.mubr.f32.vlgmr.msra.gmra.mxu0 %v8025_v30 }
 0x3a2   : > { %2456 = vmatprep.subr.mxu1 %v7389_v61  ;;  %5334 = vmatprep.subr.mxu0 %v10254_v1  ;;  %v10374_v61 = vld [vmem:[#allocation91_spill] sm:$0xff] }
 0x3a3   : > { %2457 = vmatpush1.msra.mxu1 %v7396_v45  ;;  %5335 = vmatpush3.msra.mxu0 %v7772_v35  ;;  %v10376_v45 = vld [vmem:[#allocation11_spill] sm:$0xff] }
 0x3a4   : > { %2458 = vmatprep.subr.mxu1 %v7403_v48  ;;  %5336 = vmatprep.subr.mxu0 %v10254_v1  ;;  %v10377_v48 = vld [vmem:[#allocation92_spill] sm:$0xff] }
 0x3a5   : > { %2459 = vmatpush1.msra.mxu1 %v7410_v50  ;;  %5337 = vmatpush3.msra.mxu0 %v7781_v37  ;;  %v10379_v50 = vld [vmem:[#allocation13_spill] sm:$0xff]  ;;  %v10417_v37 = vld [vmem:[#allocation70_spill] sm:$0xff] }
 0x3a6   : > { %2460 = vmatprep.subr.mxu1 %v7417_v34  ;;  %5338 = vmatprep.subr.mxu0 %v10254_v1  ;;  %v10380_v34 = vld [vmem:[#allocation93_spill] sm:$0xff] }
 0x3a7   : > { %2461 = vmatpush1.msra.mxu1 %v10373_v59  ;;  %5339 = vmatpush3.msra.mxu0 %v10374_v61  ;;  %v10383_v59 = vld [vmem:[#allocation94_spill] sm:$0xff] }
 0x3a8   : > { %2462 = vmatprep.subr.mxu1 %v10375_v9  ;;  %5340 = vmatprep.subr.mxu0 %v10254_v1  ;;  %v10384_v9 = vld [vmem:[#allocation16_spill] sm:$0xff] }
 0x3a9   : > { %2463 = vmatpush1.msra.mxu1 %v10376_v45  ;;  %5341 = vmatpush3.msra.mxu0 %v10377_v48  ;;  %v10385_v45 = vld [vmem:[#allocation17_spill] sm:$0xff]  ;;  %v10416_v48 = vld [vmem:[#allocation48_spill] sm:$0xff] }
 0x3aa   : > { %2464 = vmatprep.subr.mxu1 %v10378_v10  ;;  %5342 = vmatprep.subr.mxu0 %v10254_v1  ;;  %v10386_v10 = vld [vmem:[#allocation95_spill] sm:$0xff] }
 0x3ab   : > { %2465 = vmatpush1.msra.mxu1 %v10379_v50  ;;  %5343 = vmatpush3.msra.mxu0 %v10380_v34  ;;  %v10388_v50 = vld [vmem:[#allocation20_spill] sm:$0xff]  ;;  %v10390_v34 = vld [vmem:[#allocation21_spill] sm:$0xff] }
 0x3ac   : > { %2466 = vmatprep.subr.mxu1 %v10381_v41  ;;  %5344 = vmatprep.subr.mxu0 %v10254_v1  ;;  %v10389_v41 = vld [vmem:[#allocation96_spill] sm:$0xff] }
 0x3ad   : > { %2467 = vmatpush1.msra.mxu1 %v10382_v55  ;;  %5345 = vmatpush3.msra.mxu0 %v10383_v59  ;;  %v10391_v55 = vld [vmem:[#allocation23_spill] sm:$0xff]  ;;  %v10393_v59 = vld [vmem:[#allocation24_spill] sm:$0xff] }
 0x3ae   : > { %2468 = vmatprep.subr.mxu1 %v10384_v9  ;;  %5346 = vmatprep.subr.mxu0 %v10254_v1  ;;  %v10392_v9 = vld [vmem:[#allocation97_spill] sm:$0xff] }
 0x3af   : > { %2469 = vmatpush1.msra.mxu1 %v10385_v45  ;;  %5347 = vmatpush3.msra.mxu0 %v10386_v10  ;;  %v10394_v45 = vld [vmem:[#allocation26_spill] sm:$0xff]  ;;  %v10396_v10 = vld [vmem:[#allocation27_spill] sm:$0xff] }
 0x3b0   : > { %2470 = vmatprep.subr.mxu1 %v10387_v4  ;;  %5348 = vmatprep.subr.mxu0 %v10254_v1  ;;  %v10395_v4 = vld [vmem:[#allocation98_spill] sm:$0xff] }
 0x3b1   : > { %2471 = vmatpush1.msra.mxu1 %v10388_v50  ;;  %5349 = vmatpush3.msra.mxu0 %v10389_v41  ;;  %v10397_v50 = vld [vmem:[#allocation29_spill] sm:$0xff]  ;;  %v10399_v41 = vld [vmem:[#allocation31_spill] sm:$0xff] }
 0x3b2   : > { %2472 = vmatprep.subr.mxu1 %v10390_v34  ;;  %5350 = vmatprep.subr.mxu0 %v10254_v1  ;;  %v10398_v34 = vld [vmem:[#allocation99_spill] sm:$0xff] }
 0x3b3   : > { %2473 = vmatpush1.msra.mxu1 %v10391_v55  ;;  %5351 = vmatpush3.msra.mxu0 %v10392_v9  ;;  %v10400_v55 = vld [vmem:[#allocation32_spill] sm:$0xff]  ;;  %v10402_v9 = vld [vmem:[#allocation34_spill] sm:$0xff] }
 0x3b4   : > { %2474 = vmatprep.subr.mxu1 %v10393_v59  ;;  %5352 = vmatprep.subr.mxu0 %v10254_v1  ;;  %v10401_v59 = vld [vmem:[#allocation100_spill] sm:$0xff] }
 0x3b5   : > { %2475 = vmatpush1.msra.mxu1 %v10394_v45  ;;  %5353 = vmatpush3.msra.mxu0 %v10395_v4  ;;  %v10403_v45 = vld [vmem:[#allocation19_spill] sm:$0xff]  ;;  %v10405_v4 = vld [vmem:[#allocation22_spill] sm:$0xff] }
 0x3b6   : > { %2476 = vmatprep.subr.mxu1 %v10396_v10  ;;  %5354 = vmatprep.subr.mxu0 %v10254_v1  ;;  %v10404_v10 = vld [vmem:[#allocation101_spill] sm:$0xff] }
 0x3b7   : > { %2477 = vmatpush1.msra.mxu1 %v10397_v50  ;;  %5355 = vmatpush3.msra.mxu0 %v10398_v34  ;;  %v10406_v50 = vld [vmem:[#allocation25_spill] sm:$0xff]  ;;  %v10408_v34 = vld [vmem:[#allocation28_spill] sm:$0xff] }
 0x3b8   : > { %2478 = vmatprep.subr.mxu1 %v10399_v41  ;;  %5356 = vmatprep.subr.mxu0 %v10254_v1  ;;  %v10407_v41 = vld [vmem:[#allocation102_spill] sm:$0xff] }
 0x3b9   : > { %2479 = vmatpush1.msra.mxu1 %v10400_v55  ;;  %5357 = vmatpush3.msra.mxu0 %v10401_v59  ;;  %v10409_v55 = vld [vmem:[#allocation85_spill] sm:$0xff]  ;;  %v10411_v59 = vld [vmem:[#allocation30_spill] sm:$0xff] }
 0x3ba   : > { %2480 = vmatprep.subr.mxu1 %v10402_v9  ;;  %5358 = vmatprep.subr.mxu0 %v10254_v1  ;;  %v10410_v9 = vld [vmem:[#allocation103_spill] sm:$0xff] }
 0x3bb   : > { %2481 = vmatpush1.msra.mxu1 %v10403_v45  ;;  %5359 = vmatpush3.msra.mxu0 %v10404_v10  ;;  %v10412_v45 = vld [vmem:[#allocation86_spill] sm:$0xff] }
 0x3bc   : > { %2482 = vmatprep.subr.mxu1 %v10405_v4  ;;  %5360 = vmatprep.subr.mxu0 %v10254_v1  ;;  %v10413_v4 = vld [vmem:[#allocation104_spill] sm:$0xff] }
 0x3bd   : > { %2483 = vmatpush1.msra.mxu1 %v10406_v50  ;;  %5361 = vmatpush3.msra.mxu0 %v10407_v41 }
 0x3be   : > { %2484 = vmatprep.subr.mxu1 %v10408_v34  ;;  %5362 = vmatprep.subr.mxu0 %v10254_v1  ;;  %v10414_v34 = vld [vmem:[#allocation33_spill] sm:$0xff] }
 0x3bf   : > { %2485 = vmatpush1.msra.mxu1 %v10409_v55  ;;  %5363 = vmatpush3.msra.mxu0 %v10410_v9  ;;  %v10415_v9 = vld [vmem:[#allocation65_spill] sm:$0xff] }
 0x3c0   : > { %2486 = vmatprep.subr.mxu1 %v10411_v59  ;;  %5364 = vmatprep.subr.mxu0 %v10254_v1 }
 0x3c1   : > { %2487 = vmatpush1.msra.mxu1 %v10412_v45  ;;  %2520 = vmatprep.mubr.f32.mxu1 %v10254_v1 }
 0x3c2   : > { %5365 = vmatpush3.msra.mxu0 %v10413_v4  ;;  %5366 = vmatprep.mubr.msk.f32.mxu0 %vm6067_vm0, %v10254_v1  ;;  %v10418_v4 = vld [vmem:[#allocation50_spill] sm:$0xff] }
 0x3c3   : > { %2618 = vmatprep.subr.mxu1 %v10414_v34  ;;  %5369 = vmatprep.subr.mxu0 %v10254_v1 }
 0x440   : > { %v2188_v50 = vpop.f32.mrf.mxu1  ;;  %v2259_v55 = vpop.f32.mrf.mxu0 }
 0x441   : > { %v2189_v41 = vadd.f32 %v2188_v50, %v10415_v9  ;;  %v10419_v50 = vld [vmem:[#allocation82_spill] sm:$0xff] }
 0x442   : > { %v2190_v59 = vpop.f32.mrf.mxu1  ;;  %v5298_v10 = vpop.f32.mrf.mxu0 }
 0x443   : > { %v2263_v61 = vadd.f32 %v2189_v41, %v10416_v48  ;;  %v2191_v35 = vadd.f32 %v2190_v59, %v10417_v37  ;;  %v10420_v10 = vld [vmem:[#allocation83_spill] sm:$0xff]  ;;  %v10421_v59 = vld [vmem:[#allocation53_spill] sm:$0xff] }
 0x444   : > { %v2260_v28 = vadd.f32 %v2259_v55, %v10420_v10 }
 0x445   : > { %v4653_v45 = vmul.f32 -1.442695, %v2263_v61  ;;  %v2270_v20 = vadd.f32 %v2191_v35, %v10418_v4 }
 0x447   : > { %5713 = vpow2.f32 %v4653_v45  ;;  %v4654_v33 = vmul.f32 -1.442695, %v2270_v20 }
 0x449   : > { %5715 = vpow2.f32 %v4654_v33 }
 0x454   : > { %v5714_v5 = vpop.eup %5713 }
 0x455   : > { %v2267_v34 = vadd.f32 1.0, %v5714_v5  ;;  %v10422_v5 = vld [vmem:[#allocation47_spill] sm:$0xff] }
 0x456   : > { %v5716_v30 = vpop.eup %5715 }
 0x457   : > { %5717 = vrcp.f32 %v2267_v34  ;;  %v2274_v52 = vadd.f32 1.0, %v5716_v30  ;;  %v10423_v30 = vld [vmem:[#allocation76_spill] sm:$0xff] }
 0x459   : > { %5719 = vrcp.f32 %v2274_v52 }
 0x461   : > { %v2350_v31 = vpop.f32.mrf.mxu1  ;;  %v2421_v54 = vpop.f32.mrf.mxu0 }
 0x462   : > { %v2351_v9 = vadd.f32 %v2350_v31, %v10419_v50 }
 0x463   : > { %v2352_v48 = vpop.f32.mrf.mxu1  ;;  %v5333_v61 = vpop.f32.mrf.mxu0 }
 0x464   : > { %v5718_v41 = vpop.eup %5717  ;;  %v2425_v45 = vadd.f32 %v2351_v9, %v10421_v59  ;;  %v2353_v33 = vadd.f32 %v2352_v48, %v7300_v42  ;;  %v10438_v9 = vld [vmem:[#allocation90_spill] sm:$0xff]  ;;  %v10440_v48 = vld [vmem:[#allocation91_spill] sm:$0xff] }
 0x465   : > { %v2277_v37 = vmul.f32 %v5718_v41, %v2260_v28  ;;  %v8235_v41 = vld [vmem:[%s9954_s3 + $0x128] sm:$0xff]  ;;  %v8242_v59 = vld [vmem:[%s9954_s3 + $0x120] sm:$0xff] }
 0x466   : > { %v4655_v35 = vmul.f32 -1.442695, %v2425_v45  ;;  %v2432_v4 = vadd.f32 %v2353_v33, %v10423_v30  ;;  %v5720_v31 = vpop.eup %5719  ;;  %10441 = vst [vmem:[#allocation11_spill] sm:$0xff] %v8235_v41  ;;  %10442 = vst [vmem:[#allocation12_spill] sm:$0xff] %v8242_v59  ;;  %v10443_v45 = vld [vmem:[#allocation92_spill] sm:$0xff]  ;;  %v8270_v30 = vld [vmem:[%s9954_s3 + $0xf0] sm:$0xff] }
 0x467   : > { %v2278_v20 = vadd.f32 %v2277_v37, %v10422_v5  ;;  %v2280_v10 = vsub.f32 1.0, %v5720_v31  ;;  %v2282_v28 = vmul.f32 %v5720_v31, %v7926_v24  ;;  %v8256_v33 = vld [vmem:[%s9954_s3 + $0x108] sm:$0xff]  ;;  %10448 = vst [vmem:[#allocation16_spill] sm:$0xff] %v8270_v30  ;;  %v8284_v31 = vld [vmem:[%s9954_s3 + $0xd8] sm:$0xff] }
 0x468   : > { %5721 = vpow2.f32 %v4655_v35  ;;  %v4656_v34 = vmul.f32 -1.442695, %v2432_v4  ;;  %v8249_v35 = vld [vmem:[%s9954_s3 + $0x110] sm:$0xff]  ;;  %10445 = vst [vmem:[#allocation14_spill] sm:$0xff] %v8256_v33  ;;  %10451 = vst [vmem:[#allocation18_spill] sm:$0xff] %v8284_v31 }
 0x469   : > { %5723 = vtanh.f32 %v2278_v20  ;;  %10444 = vst [vmem:[#allocation13_spill] sm:$0xff] %v8249_v35  ;;  %v10446_v5 = vld [vmem:[#allocation93_spill] sm:$0xff]  ;;  %v8263_v20 = vld [vmem:[%s9954_s3 + $0xf8] sm:$0xff] }
 0x46a   : > { %5725 = vpow2.f32 %v4656_v34  ;;  %10447 = vst [vmem:[#allocation15_spill] sm:$0xff] %v8263_v20  ;;  %v10449_v4 = vld [vmem:[#allocation94_spill] sm:$0xff]  ;;  %v8277_v34 = vld [vmem:[%s9954_s3 + $0xe0] sm:$0xff] }
 0x46b   : > { %10450 = vst [vmem:[#allocation17_spill] sm:$0xff] %v8277_v34 }
 0x475   : > { %v5722_v55 = vpop.eup %5721 }
 0x476   : > { %v5724_v61 = vpop.eup %5723  ;;  %v2429_v50 = vadd.f32 1.0, %v5722_v55  ;;  %v10452_v55 = vld [vmem:[#allocation95_spill] sm:$0xff] }
 0x477   : > { %v2281_v2 = vmul.f32 %v5724_v61, %v2280_v10  ;;  %v5726_v37 = vpop.eup %5725  ;;  %v8228_v10 = vld [vmem:[%s9954_s3 + $0x138] sm:$0xff]  ;;  %v8291_v61 = vld [vmem:[%s9954_s3 + $0xc8] sm:$0xff] }
 0x478   : > { %5727 = vrcp.f32 %v2429_v50  ;;  %v8221_v50 = vld [vmem:[%s9954_s3 + $0x140] sm:$0xff]  ;;  %10439 = vst [vmem:[#allocation10_spill] sm:$0xff] %v8228_v10  ;;  %10453 = vst [vmem:[#allocation20_spill] sm:$0xff] %v8291_v61 }
 0x479   : > { %v8114_v52 = vadd.f32 %v2282_v28, %v2281_v2  ;;  %v8207_v2 = vld [vmem:[%s9954_s3 + $0x158] sm:$0xff]  ;;  %v8298_v28 = vld [vmem:[%s9954_s3 + $0xc0] sm:$0xff] }
 0x47a   : > { %10454 = vst [vmem:[#allocation21_spill] sm:$0xff] %v8298_v28 }
 0x47b   : > { %10424 = vst [vmem:[#allocation79_spill] sm:$0xff] %v8114_v52  ;;  %2521 = vmatmul.mubr.f32.vlgmr.msra.gmra.mxu1 %v8114_v52  ;;  %5367 = vmatmul.mubr.f32.vlgmr.msra.gmra.mxu0 %v8114_v52 }
 0x47c   : > { %2619 = vmatpush1.msra.mxu1 %v7632_v58  ;;  %5370 = vmatpush3.msra.mxu0 %v7931_v23  ;;  %v2436_v58 = vadd.f32 1.0, %v5726_v37  ;;  %v10455_v37 = vld [vmem:[#allocation96_spill] sm:$0xff] }
 0x47d   : > { %2620 = vmatprep.subr.mxu1 %v7636_v39  ;;  %5371 = vmatprep.subr.mxu0 %v10254_v1  ;;  %v2422_v39 = vadd.f32 %v2421_v54, %v7320_v21  ;;  %v8214_v54 = vld [vmem:[%s9954_s3 + $0x150] sm:$0xff] }
 0x47e   : > { %2621 = vmatpush1.msra.mxu1 %v7640_v60  ;;  %5372 = vmatpush3.msra.mxu0 %v7937_v13  ;;  %5729 = vrcp.f32 %v2436_v58  ;;  %v8305_v58 = vld [vmem:[%s9954_s3 + $0xb0] sm:$0xff] }
 0x47f   : > { %2622 = vmatprep.subr.mxu1 %v7644_v3  ;;  %5373 = vmatprep.subr.mxu0 %v10254_v1  ;;  %10456 = vst [vmem:[#allocation23_spill] sm:$0xff] %v8305_v58 }
 0x480   : > { %2623 = vmatpush1.msra.mxu1 %v7648_v12  ;;  %5374 = vmatpush3.msra.mxu0 %v7943_v14  ;;  %v10425_v12 = vld [vmem:[#allocation77_spill] sm:$0xff] }
 0x481   : > { %2624 = vmatprep.subr.mxu1 %v7652_v47  ;;  %5375 = vmatprep.subr.mxu0 %v10254_v1 }
 0x482   : > { %2625 = vmatpush1.msra.mxu1 %v7656_v7  ;;  %5376 = vmatpush3.msra.mxu0 %v7949_v32 }
 0x483   : > { %2626 = vmatprep.subr.mxu1 %v7660_v25  ;;  %5377 = vmatprep.subr.mxu0 %v10254_v1  ;;  %v10426_v25 = vld [vmem:[#allocation42_spill] sm:$0xff] }
 0x484   : > { %2627 = vmatpush1.msra.mxu1 %v7665_v53  ;;  %5378 = vmatpush3.msra.mxu0 %v7956_v43  ;;  %v10427_v53 = vld [vmem:[#allocation61_spill] sm:$0xff] }
 0x485   : > { %v5728_v60 = vpop.eup %5727  ;;  %2628 = vmatprep.subr.mxu1 %v7669_v62  ;;  %5379 = vmatprep.subr.mxu0 %v10254_v1  ;;  %v10428_v62 = vld [vmem:[#allocation46_spill] sm:$0xff] }
 0x486   : > { %v2439_v3 = vmul.f32 %v5728_v60, %v2422_v39  ;;  %2629 = vmatpush1.msra.mxu1 %v7673_v56  ;;  %5380 = vmatpush3.msra.mxu0 %v7962_v57  ;;  %v8312_v39 = vld [vmem:[%s9954_s3 + $0xa8] sm:$0xff] }
 0x487   : > { %2630 = vmatprep.subr.mxu1 %v7677_v44  ;;  %5381 = vmatprep.subr.mxu0 %v10254_v1  ;;  %10457 = vst [vmem:[#allocation24_spill] sm:$0xff] %v8312_v39  ;;  %v10458_v60 = vld [vmem:[#allocation97_spill] sm:$0xff] }
 0x488   : > { %v2440_v47 = vadd.f32 %v2439_v3, %v10425_v12  ;;  %2631 = vmatpush1.msra.mxu1 %v7682_v40  ;;  %5382 = vmatpush3.msra.mxu0 %v7969_v29  ;;  %v10429_v40 = vld [vmem:[#allocation39_spill] sm:$0xff]  ;;  %v8326_v12 = vld [vmem:[%s9954_s3 + $0x90] sm:$0xff] }
 0x489   : > { %2632 = vmatprep.subr.mxu1 %v7686_v51  ;;  %5383 = vmatprep.subr.mxu0 %v10254_v1  ;;  %v10430_v51 = vld [vmem:[#allocation80_spill] sm:$0xff]  ;;  %v8319_v3 = vld [vmem:[%s9954_s3 + $0x98] sm:$0xff]  ;;  %10460 = vst [vmem:[#allocation27_spill] sm:$0xff] %v8326_v12 }
 0x48a   : > { %5731 = vtanh.f32 %v2440_v47  ;;  %2633 = vmatpush1.msra.mxu1 %v7690_v15  ;;  %5384 = vmatpush3.msra.mxu0 %v7975_v11  ;;  %v10431_v15 = vld [vmem:[#allocation57_spill] sm:$0xff]  ;;  %10459 = vst [vmem:[#allocation26_spill] sm:$0xff] %v8319_v3  ;;  %v10461_v47 = vld [vmem:[#allocation98_spill] sm:$0xff] }
 0x48b   : > { %2634 = vmatprep.subr.mxu1 %v7694_v6  ;;  %5385 = vmatprep.subr.mxu0 %v10254_v1  ;;  %v5730_v7 = vpop.eup %5729 }
 0x48c   : > { %2635 = vmatpush1.msra.mxu1 %v7698_v17  ;;  %5386 = vmatpush3.msra.mxu0 %v7981_v38  ;;  %v2442_v56 = vsub.f32 1.0, %v5730_v7  ;;  %v10432_v17 = vld [vmem:[#allocation43_spill] sm:$0xff] }
 0x48d   : > { %2636 = vmatprep.subr.mxu1 %v7702_v0  ;;  %5387 = vmatprep.subr.mxu0 %v10254_v1  ;;  %v2444_v0 = vmul.f32 %v5730_v7, %v10432_v17  ;;  %v8333_v7 = vld [vmem:[%s9954_s3 + $0x80] sm:$0xff] }
 0x48e   : > { %2637 = vmatpush1.msra.mxu1 %v7706_v36  ;;  %5388 = vmatpush3.msra.mxu0 %v7987_v16  ;;  %v10433_v36 = vld [vmem:[#allocation81_spill] sm:$0xff]  ;;  %10462 = vst [vmem:[#allocation29_spill] sm:$0xff] %v8333_v7 }
 0x48f   : > { %2638 = vmatprep.subr.mxu1 %v7710_v19  ;;  %5389 = vmatprep.subr.mxu0 %v10254_v1  ;;  %v10434_v19 = vld [vmem:[#allocation87_spill] sm:$0xff] }
 0x490   : > { %2639 = vmatpush1.msra.mxu1 %v7714_v49  ;;  %5390 = vmatpush3.msra.mxu0 %v7993_v27 }
 0x491   : > { %2640 = vmatprep.subr.mxu1 %v7718_v22  ;;  %5391 = vmatprep.subr.mxu0 %v10254_v1  ;;  %v10436_v22 = vld [vmem:[#allocation78_spill] sm:$0xff] }
 0x492   : > { %2641 = vmatpush1.msra.mxu1 %v7722_v18  ;;  %5392 = vmatpush3.msra.mxu0 %v7999_v63  ;;  %v8193_v18 = vld [vmem:[%s9954_s3 + $0x170] sm:$0xff] }
 0x493   : > { %2642 = vmatprep.subr.mxu1 %v7726_v46  ;;  %5393 = vmatprep.subr.mxu0 %v10254_v1  ;;  %v8200_v46 = vld [vmem:[%s9954_s3 + $0x168] sm:$0xff] }
 0x494   : > { %2643 = vmatpush1.msra.mxu1 %v7730_v26  ;;  %5394 = vmatpush3.msra.mxu0 %v8005_v8  ;;  %v10437_v26 = vld [vmem:[#allocation89_spill] sm:$0xff] }
 0x495   : > { %2644 = vmatprep.subr.mxu1 %v10426_v25  ;;  %5395 = vmatprep.subr.mxu0 %v10254_v1  ;;  %v8340_v25 = vld [vmem:[%s9954_s3 + $0x78] sm:$0xff] }
 0x496   : > { %2645 = vmatpush1.msra.mxu1 %v10427_v53  ;;  %5396 = vmatpush3.msra.mxu0 %v10428_v62  ;;  %10463 = vst [vmem:[#allocation31_spill] sm:$0xff] %v8340_v25  ;;  %v10464_v53 = vld [vmem:[#allocation99_spill] sm:$0xff] }
 0x497   : > { %v5732_v44 = vpop.eup %5731  ;;  %2646 = vmatprep.subr.mxu1 %v10429_v40  ;;  %5397 = vmatprep.subr.mxu0 %v10254_v1  ;;  %v10467_v40 = vld [vmem:[#allocation100_spill] sm:$0xff] }
 0x498   : > { %2647 = vmatpush1.msra.mxu1 %v10430_v51  ;;  %5398 = vmatpush3.msra.mxu0 %v10431_v15  ;;  %v2443_v6 = vmul.f32 %v5732_v44, %v2442_v56  ;;  %v8347_v56 = vld [vmem:[%s9954_s3 + $0x68] sm:$0xff]  ;;  %v8354_v44 = vld [vmem:[%s9954_s3 + $0x60] sm:$0xff]  ;;  %v8361_v51 = vld [vmem:[%s9954_s3 + $0x50] sm:$0xff] }
 0x499   : > { %2648 = vmatprep.subr.mxu1 %v10433_v36  ;;  %5399 = vmatprep.subr.mxu0 %v10254_v1  ;;  %10465 = vst [vmem:[#allocation32_spill] sm:$0xff] %v8347_v56  ;;  %10466 = vst [vmem:[#allocation34_spill] sm:$0xff] %v8354_v44  ;;  %v8375_v36 = vld [vmem:[%s9954_s3 + $0x38] sm:$0xff] }
 0x49a   : > { %2649 = vmatpush1.msra.mxu1 %v10434_v19  ;;  %2682 = vmatprep.mubr.f32.mxu1 %v10254_v1  ;;  %v8183_v49 = vadd.f32 %v2444_v0, %v2443_v6  ;;  %10468 = vst [vmem:[#allocation19_spill] sm:$0xff] %v8361_v51  ;;  %v8368_v6 = vld [vmem:[%s9954_s3 + $0x48] sm:$0xff]  ;;  %10471 = vst [vmem:[#allocation25_spill] sm:$0xff] %v8375_v36  ;;  %v8382_v19 = vld [vmem:[%s9954_s3 + $0x30] sm:$0xff] }
 0x49b   : > { %5400 = vmatpush3.msra.mxu0 %v10436_v22  ;;  %5401 = vmatprep.mubr.msk.f32.mxu0 %vm6067_vm0, %v10254_v1  ;;  %10469 = vst [vmem:[#allocation22_spill] sm:$0xff] %v8368_v6  ;;  %v10470_v0 = vld [vmem:[#allocation101_spill] sm:$0xff]  ;;  %10472 = vst [vmem:[#allocation28_spill] sm:$0xff] %v8382_v19 }
 0x49c   : > { %10435 = vst [vmem:[#allocation9_spill] sm:$0xff] %v8183_v49  ;;  %2683 = vmatmul.mubr.f32.vlgmr.msra.gmra.mxu1 %v8183_v49  ;;  %5402 = vmatmul.mubr.f32.vlgmr.msra.gmra.mxu0 %v8183_v49 }
 0x49d   : > { %2790 = vmatprep.subr.mxu1 %v8193_v18  ;;  %5404 = vmatprep.subr.mxu0 %v10254_v1 }
 0x49e   : > { %2791 = vmatpush1.msra.mxu1 %v8200_v46  ;;  %5405 = vmatpush3.msra.mxu0 %v10437_v26  ;;  %v10473_v26 = vld [vmem:[#allocation102_spill] sm:$0xff] }
 0x49f   : > { %2792 = vmatprep.subr.mxu1 %v8207_v2  ;;  %5406 = vmatprep.subr.mxu0 %v10254_v1 }
 0x4a0   : > { %2793 = vmatpush1.msra.mxu1 %v8214_v54  ;;  %5407 = vmatpush3.msra.mxu0 %v10438_v9  ;;  %v8389_v9 = vld [vmem:[%s9954_s3 + $0x20] sm:$0xff] }
 0x4a1   : > { %2794 = vmatprep.subr.mxu1 %v8221_v50  ;;  %5408 = vmatprep.subr.mxu0 %v10254_v1  ;;  %10474 = vst [vmem:[#allocation85_spill] sm:$0xff] %v8389_v9 }
 0x4a2   : > { %2795 = vmatpush1.msra.mxu1 %v8228_v10  ;;  %5409 = vmatpush3.msra.mxu0 %v10440_v48  ;;  %v8396_v48 = vld [vmem:[%s9954_s3 + $0x18] sm:$0xff] }
 0x4a3   : > { %2796 = vmatprep.subr.mxu1 %v8235_v41  ;;  %5410 = vmatprep.subr.mxu0 %v10254_v1  ;;  %10475 = vst [vmem:[#allocation30_spill] sm:$0xff] %v8396_v48 }
 0x4a4   : > { %2797 = vmatpush1.msra.mxu1 %v8242_v59  ;;  %5411 = vmatpush3.msra.mxu0 %v10443_v45  ;;  %v10476_v45 = vld [vmem:[#allocation103_spill] sm:$0xff] }
 0x4a5   : > { %2798 = vmatprep.subr.mxu1 %v8249_v35  ;;  %5412 = vmatprep.subr.mxu0 %v10254_v1 }
 0x4a6   : > { %2799 = vmatpush1.msra.mxu1 %v8256_v33  ;;  %5413 = vmatpush3.msra.mxu0 %v10446_v5  ;;  %v8403_v5 = vld [vmem:[%s9954_s3 + $0x8] sm:$0xff] }
 0x4a7   : > { %2800 = vmatprep.subr.mxu1 %v8263_v20  ;;  %5414 = vmatprep.subr.mxu0 %v10254_v1  ;;  %10477 = vst [vmem:[#allocation86_spill] sm:$0xff] %v8403_v5 }
 0x4a8   : > { %2801 = vmatpush1.msra.mxu1 %v8270_v30  ;;  %5415 = vmatpush3.msra.mxu0 %v10449_v4  ;;  %v8410_v4 = vld [vmem:[%s9954_s3] sm:$0xff] }
 0x4a9   : > { %2802 = vmatprep.subr.mxu1 %v8277_v34  ;;  %5416 = vmatprep.subr.mxu0 %v10254_v1  ;;  %10478 = vst [vmem:[#allocation33_spill] sm:$0xff] %v8410_v4 }
 0x4aa   : > { %2803 = vmatpush1.msra.mxu1 %v8284_v31  ;;  %5417 = vmatpush3.msra.mxu0 %v10452_v55  ;;  %v10479_v55 = vld [vmem:[#allocation104_spill] sm:$0xff] }
 0x4ab   : > { %2804 = vmatprep.subr.mxu1 %v8291_v61  ;;  %5418 = vmatprep.subr.mxu0 %v10254_v1 }
 0x4ac   : > { %2805 = vmatpush1.msra.mxu1 %v8298_v28  ;;  %5419 = vmatpush3.msra.mxu0 %v10455_v37  ;;  %v8417_v37 = vld [vmem:[#allocation5 + $0x170] sm:$0xff] }
 0x4ad   : > { %2806 = vmatprep.subr.mxu1 %v8305_v58  ;;  %5420 = vmatprep.subr.mxu0 %v10254_v1  ;;  %10480 = vst [vmem:[#allocation48_spill] sm:$0xff] %v8417_v37 }
 0x4ae   : > { %2807 = vmatpush1.msra.mxu1 %v8312_v39  ;;  %5421 = vmatpush3.msra.mxu0 %v10458_v60 }
 0x4af   : > { %2808 = vmatprep.subr.mxu1 %v8319_v3  ;;  %5422 = vmatprep.subr.mxu0 %v10254_v1 }
 0x4b0   : > { %2809 = vmatpush1.msra.mxu1 %v8326_v12  ;;  %5423 = vmatpush3.msra.mxu0 %v10461_v47 }
 0x4b1   : > { %2810 = vmatprep.subr.mxu1 %v8333_v7  ;;  %5424 = vmatprep.subr.mxu0 %v10254_v1 }
 0x4b2   : > { %2811 = vmatpush1.msra.mxu1 %v8340_v25  ;;  %5425 = vmatpush3.msra.mxu0 %v10464_v53  ;;  %v10481_v53 = vld [vmem:[#allocation65_spill] sm:$0xff] }
 0x4b3   : > { %2812 = vmatprep.subr.mxu1 %v8347_v56  ;;  %5426 = vmatprep.subr.mxu0 %v10254_v1 }
 0x4b4   : > { %2813 = vmatpush1.msra.mxu1 %v8354_v44  ;;  %5427 = vmatpush3.msra.mxu0 %v10467_v40 }
 0x4b5   : > { %2814 = vmatprep.subr.mxu1 %v8361_v51  ;;  %5428 = vmatprep.subr.mxu0 %v10254_v1 }
 0x4b6   : > { %2815 = vmatpush1.msra.mxu1 %v8368_v6  ;;  %5429 = vmatpush3.msra.mxu0 %v10470_v0 }
 0x4b7   : > { %2816 = vmatprep.subr.mxu1 %v8375_v36  ;;  %5430 = vmatprep.subr.mxu0 %v10254_v1 }
 0x4b8   : > { %2817 = vmatpush1.msra.mxu1 %v8382_v19  ;;  %5431 = vmatpush3.msra.mxu0 %v10473_v26 }
 0x4b9   : > { %2818 = vmatprep.subr.mxu1 %v8389_v9  ;;  %5432 = vmatprep.subr.mxu0 %v10254_v1 }
 0x4ba   : > { %2819 = vmatpush1.msra.mxu1 %v8396_v48  ;;  %5433 = vmatpush3.msra.mxu0 %v10476_v45  ;;  %v10482_v45 = vld [vmem:[#allocation52_spill] sm:$0xff] }
 0x4bb   : > { %2820 = vmatprep.subr.mxu1 %v8403_v5  ;;  %5434 = vmatprep.subr.mxu0 %v10254_v1  ;;  %v10484_v5 = vld [vmem:[#allocation54_spill] sm:$0xff] }
 0x4bc   : > { %2821 = vmatpush1.msra.mxu1 %v8410_v4  ;;  %2854 = vmatprep.mubr.f32.mxu1 %v10254_v1  ;;  %v10483_v4 = vld [vmem:[#allocation70_spill] sm:$0xff] }
 0x4bd   : > { %5435 = vmatpush3.msra.mxu0 %v10479_v55  ;;  %5436 = vmatprep.mubr.msk.f32.mxu0 %vm6067_vm0, %v10254_v1 }
 0x4be   : > { %2952 = vmatprep.subr.mxu1 %v8417_v37  ;;  %5439 = vmatprep.subr.mxu0 %v10254_v1 }
 0x53b   : > { %v2522_v60 = vpop.f32.mrf.mxu1  ;;  %v2593_v47 = vpop.f32.mrf.mxu0 }
 0x53c   : > { %v2523_v40 = vadd.f32 %v2522_v60, %v10481_v53  ;;  %v10485_v60 = vld [vmem:[#allocation82_spill] sm:$0xff] }
 0x53d   : > { %v2524_v0 = vpop.f32.mrf.mxu1  ;;  %v5368_v26 = vpop.f32.mrf.mxu0 }
 0x53e   : > { %v2597_v17 = vadd.f32 %v2523_v40, %v10482_v45  ;;  %v2525_v55 = vadd.f32 %v2524_v0, %v10483_v4  ;;  %v10486_v26 = vld [vmem:[#allocation83_spill] sm:$0xff]  ;;  %v10487_v0 = vld [vmem:[#allocation49_spill] sm:$0xff] }
 0x53f   : > { %v2594_v56 = vadd.f32 %v2593_v47, %v10486_v26 }
 0x540   : > { %v4657_v24 = vmul.f32 -1.442695, %v2597_v17  ;;  %v2604_v48 = vadd.f32 %v2525_v55, %v10484_v5 }
 0x542   : > { %5733 = vpow2.f32 %v4657_v24  ;;  %v4658_v9 = vmul.f32 -1.442695, %v2604_v48 }
 0x544   : > { %5735 = vpow2.f32 %v4658_v9 }
 0x54f   : > { %v5734_v19 = vpop.eup %5733 }
 0x550   : > { %v2601_v37 = vadd.f32 1.0, %v5734_v19  ;;  %v10488_v19 = vld [vmem:[#allocation51_spill] sm:$0xff] }
 0x551   : > { %v5736_v36 = vpop.eup %5735 }
 0x552   : > { %5737 = vrcp.f32 %v2601_v37  ;;  %v2608_v6 = vadd.f32 1.0, %v5736_v36  ;;  %v10489_v36 = vld [vmem:[#allocation74_spill] sm:$0xff] }
 0x554   : > { %5739 = vrcp.f32 %v2608_v6 }
 0x55c   : > { %v2684_v51 = vpop.f32.mrf.mxu1  ;;  %v2755_v44 = vpop.f32.mrf.mxu0 }
 0x55d   : > { %v2685_v53 = vadd.f32 %v2684_v51, %v10485_v60 }
 0x55e   : > { %v2686_v40 = vpop.f32.mrf.mxu1  ;;  %v5403_v17 = vpop.f32.mrf.mxu0 }
 0x55f   : > { %v5738_v45 = vpop.eup %5737  ;;  %v2759_v24 = vadd.f32 %v2685_v53, %v10487_v0  ;;  %v2687_v9 = vadd.f32 %v2686_v40, %v7300_v42  ;;  %v8440_v53 = vld [vmem:[#allocation5 + $0x158] sm:$0xff]  ;;  %v8456_v40 = vld [vmem:[#allocation5 + $0x128] sm:$0xff]  ;;  %v8464_v0 = vld [vmem:[#allocation5 + $0x110] sm:$0xff] }
 0x560   : > { %v2611_v4 = vmul.f32 %v5738_v45, %v2594_v56  ;;  %v8460_v45 = vld [vmem:[#allocation5 + $0x120] sm:$0xff] }
 0x561   : > { %v4659_v48 = vmul.f32 -1.442695, %v2759_v24  ;;  %v2766_v37 = vadd.f32 %v2687_v9, %v10489_v36  ;;  %v5740_v51 = vpop.eup %5739  ;;  %v8469_v24 = vld [vmem:[#allocation5 + $0x108] sm:$0xff]  ;;  %v8473_v9 = vld [vmem:[#allocation5 + $0xf8] sm:$0xff] }
 0x562   : > { %v2612_v5 = vadd.f32 %v2611_v4, %v10488_v19  ;;  %v2614_v26 = vsub.f32 1.0, %v5740_v51  ;;  %v2616_v56 = vmul.f32 %v5740_v51, %v8114_v52  ;;  %v8436_v4 = vld [vmem:[#allocation5 + $0x168] sm:$0xff]  ;;  %v8477_v19 = vld [vmem:[#allocation5 + $0xf0] sm:$0xff]  ;;  %v8486_v36 = vld [vmem:[#allocation5 + $0xd8] sm:$0xff] }
 0x563   : > { %5741 = vpow2.f32 %v4659_v48  ;;  %v4660_v55 = vmul.f32 -1.442695, %v2766_v37  ;;  %v8490_v37 = vld [vmem:[#allocation5 + $0xc8] sm:$0xff]  ;;  %v8506_v51 = vld [vmem:[#allocation5 + $0x98] sm:$0xff] }
 0x564   : > { %5743 = vtanh.f32 %v2612_v5  ;;  %v8555_v52 = vld [vmem:[#allocation5 + $0x8] sm:$0xff] }
 0x565   : > { %5745 = vpow2.f32 %v4660_v55  ;;  %v8498_v55 = vld [vmem:[#allocation5 + $0xb0] sm:$0xff]  ;;  %10496 = vst [vmem:[#allocation42_spill] sm:$0xff] %v8555_v52 }
 0x570   : > { %v5742_v47 = vpop.eup %5741 }
 0x571   : > { %v5744_v17 = vpop.eup %5743  ;;  %v2763_v60 = vadd.f32 1.0, %v5742_v47  ;;  %v8510_v47 = vld [vmem:[#allocation5 + $0x90] sm:$0xff] }
 0x572   : > { %v2615_v25 = vmul.f32 %v5744_v17, %v2614_v26  ;;  %v8444_v26 = vld [vmem:[#allocation5 + $0x150] sm:$0xff]  ;;  %v8518_v17 = vld [vmem:[#allocation5 + $0x78] sm:$0xff] }
 0x573   : > { %5747 = vrcp.f32 %v2763_v60  ;;  %v8448_v60 = vld [vmem:[#allocation5 + $0x140] sm:$0xff] }
 0x574   : > { %v8432_v6 = vadd.f32 %v2616_v56, %v2615_v25  ;;  %v5746_v25 = vpop.eup %5745  ;;  %v8526_v56 = vld [vmem:[#allocation5 + $0x60] sm:$0xff] }
 0x576   : > { %10490 = vst [vmem:[#allocation50_spill] sm:$0xff] %v8432_v6  ;;  %2855 = vmatmul.mubr.f32.vlgmr.msra.gmra.mxu1 %v8432_v6  ;;  %5437 = vmatmul.mubr.f32.vlgmr.msra.gmra.mxu0 %v8432_v6 }
 0x577   : > { %2953 = vmatpush1.msra.mxu1 %v8436_v4  ;;  %5440 = vmatpush3.msra.mxu0 %v7931_v23  ;;  %v8452_v23 = vld [vmem:[#allocation5 + $0x138] sm:$0xff] }
 0x578   : > { %2954 = vmatprep.subr.mxu1 %v8440_v53  ;;  %5441 = vmatprep.subr.mxu0 %v10254_v1 }
 0x579   : > { %2955 = vmatpush1.msra.mxu1 %v8444_v26  ;;  %5442 = vmatpush3.msra.mxu0 %v7937_v13  ;;  %v2770_v13 = vadd.f32 1.0, %v5746_v25  ;;  %v8530_v25 = vld [vmem:[#allocation5 + $0x50] sm:$0xff] }
 0x57a   : > { %2956 = vmatprep.subr.mxu1 %v8448_v60  ;;  %5443 = vmatprep.subr.mxu0 %v10254_v1 }
 0x57b   : > { %2957 = vmatpush1.msra.mxu1 %v8452_v23  ;;  %5444 = vmatpush3.msra.mxu0 %v7943_v14  ;;  %v2756_v14 = vadd.f32 %v2755_v44, %v7320_v21  ;;  %5749 = vrcp.f32 %v2770_v13  ;;  %v8481_v44 = vld [vmem:[#allocation5 + $0xe0] sm:$0xff]  ;;  %v8538_v13 = vld [vmem:[#allocation5 + $0x38] sm:$0xff] }
 0x57c   : > { %2958 = vmatprep.subr.mxu1 %v8456_v40  ;;  %5445 = vmatprep.subr.mxu0 %v10254_v1  ;;  %10492 = vst [vmem:[#allocation53_spill] sm:$0xff] %v8538_v13 }
 0x57d   : > { %2959 = vmatpush1.msra.mxu1 %v8460_v45  ;;  %5446 = vmatpush3.msra.mxu0 %v7949_v32 }
 0x57e   : > { %2960 = vmatprep.subr.mxu1 %v8464_v0  ;;  %5447 = vmatprep.subr.mxu0 %v10254_v1 }
 0x57f   : > { %2961 = vmatpush1.msra.mxu1 %v8469_v24  ;;  %5448 = vmatpush3.msra.mxu0 %v7956_v43  ;;  %v10491_v43 = vld [vmem:[#allocation75_spill] sm:$0xff] }
 0x580   : > { %v5748_v48 = vpop.eup %5747  ;;  %2962 = vmatprep.subr.mxu1 %v8473_v9  ;;  %5449 = vmatprep.subr.mxu0 %v10254_v1 }
 0x581   : > { %v2773_v32 = vmul.f32 %v5748_v48, %v2756_v14  ;;  %2963 = vmatpush1.msra.mxu1 %v8477_v19  ;;  %5450 = vmatpush3.msra.mxu0 %v7962_v57  ;;  %v8494_v57 = vld [vmem:[#allocation5 + $0xc0] sm:$0xff] }
 0x582   : > { %2964 = vmatprep.subr.mxu1 %v8481_v44  ;;  %5451 = vmatprep.subr.mxu0 %v10254_v1 }
 0x583   : > { %v2774_v5 = vadd.f32 %v2773_v32, %v10491_v43  ;;  %2965 = vmatpush1.msra.mxu1 %v8486_v36  ;;  %5452 = vmatpush3.msra.mxu0 %v7969_v29  ;;  %v8502_v29 = vld [vmem:[#allocation5 + $0xa8] sm:$0xff]  ;;  %v8546_v32 = vld [vmem:[#allocation5 + $0x20] sm:$0xff] }
 0x584   : > { %2966 = vmatprep.subr.mxu1 %v8490_v37  ;;  %5453 = vmatprep.subr.mxu0 %v10254_v1  ;;  %10494 = vst [vmem:[#allocation76_spill] sm:$0xff] %v8546_v32 }
 0x585   : > { %5751 = vtanh.f32 %v2774_v5  ;;  %2967 = vmatpush1.msra.mxu1 %v8494_v57  ;;  %5454 = vmatpush3.msra.mxu0 %v7975_v11  ;;  %v8514_v11 = vld [vmem:[#allocation5 + $0x80] sm:$0xff] }
 0x586   : > { %2968 = vmatprep.subr.mxu1 %v8498_v55  ;;  %5455 = vmatprep.subr.mxu0 %v10254_v1 }
 0x587   : > { %2969 = vmatpush1.msra.mxu1 %v8502_v29  ;;  %5456 = vmatpush3.msra.mxu0 %v7981_v38  ;;  %v8522_v38 = vld [vmem:[#allocation5 + $0x68] sm:$0xff] }
 0x588   : > { %2970 = vmatprep.subr.mxu1 %v8506_v51  ;;  %5457 = vmatprep.subr.mxu0 %v10254_v1 }
 0x589   : > { %2971 = vmatpush1.msra.mxu1 %v8510_v47  ;;  %5458 = vmatpush3.msra.mxu0 %v7987_v16  ;;  %v5750_v16 = vpop.eup %5749 }
 0x58a   : > { %2972 = vmatprep.subr.mxu1 %v8514_v11  ;;  %5459 = vmatprep.subr.mxu0 %v10254_v1  ;;  %v2776_v14 = vsub.f32 1.0, %v5750_v16  ;;  %v2778_v5 = vmul.f32 %v5750_v16, %v8183_v49  ;;  %v8594_v16 = vld [vmem:[%s9954_s3 + $0x148] sm:$0xff]  ;;  %v8639_v49 = vld [vmem:[%s9954_s3 + $0xd0] sm:$0xff] }
 0x58b   : > { %2973 = vmatpush1.msra.mxu1 %v8518_v17  ;;  %5460 = vmatpush3.msra.mxu0 %v7993_v27  ;;  %v8534_v27 = vld [vmem:[#allocation5 + $0x48] sm:$0xff]  ;;  %10499 = vst [vmem:[#allocation39_spill] sm:$0xff] %v8594_v16  ;;  %10504 = vst [vmem:[#allocation78_spill] sm:$0xff] %v8639_v49 }
 0x58c   : > { %2974 = vmatprep.subr.mxu1 %v8522_v38  ;;  %5461 = vmatprep.subr.mxu0 %v10254_v1 }
 0x58d   : > { %2975 = vmatpush1.msra.mxu1 %v8526_v56  ;;  %5462 = vmatpush3.msra.mxu0 %v7999_v63  ;;  %v8542_v63 = vld [vmem:[#allocation5 + $0x30] sm:$0xff] }
 0x58e   : > { %2976 = vmatprep.subr.mxu1 %v8530_v25  ;;  %5463 = vmatprep.subr.mxu0 %v10254_v1  ;;  %10493 = vst [vmem:[#allocation47_spill] sm:$0xff] %v8542_v63 }
 0x58f   : > { %2977 = vmatpush1.msra.mxu1 %v8534_v27  ;;  %5464 = vmatpush3.msra.mxu0 %v8005_v8  ;;  %v8550_v8 = vld [vmem:[#allocation5 + $0x18] sm:$0xff] }
 0x590   : > { %2978 = vmatprep.subr.mxu1 %v8538_v13  ;;  %5465 = vmatprep.subr.mxu0 %v10254_v1  ;;  %10495 = vst [vmem:[#allocation77_spill] sm:$0xff] %v8550_v8 }
 0x591   : > { %2979 = vmatpush1.msra.mxu1 %v8542_v63  ;;  %5466 = vmatpush3.msra.mxu0 %v10428_v62  ;;  %v8559_v62 = vld [vmem:[#allocation5] sm:$0xff] }
 0x592   : > { %v5752_v48 = vpop.eup %5751  ;;  %2980 = vmatprep.subr.mxu1 %v8546_v32  ;;  %5467 = vmatprep.subr.mxu0 %v10254_v1  ;;  %10497 = vst [vmem:[#allocation61_spill] sm:$0xff] %v8559_v62 }
 0x593   : > { %2981 = vmatpush1.msra.mxu1 %v8550_v8  ;;  %5468 = vmatpush3.msra.mxu0 %v10431_v15  ;;  %v2777_v43 = vmul.f32 %v5752_v48, %v2776_v14  ;;  %v8576_v15 = vld [vmem:[%s9954_s3 + $0x178] sm:$0xff]  ;;  %v8603_v14 = vld [vmem:[%s9954_s3 + $0x130] sm:$0xff] }
 0x594   : > { %2982 = vmatprep.subr.mxu1 %v8555_v52  ;;  %5469 = vmatprep.subr.mxu0 %v10254_v1  ;;  %10500 = vst [vmem:[#allocation80_spill] sm:$0xff] %v8603_v14  ;;  %v8612_v48 = vld [vmem:[%s9954_s3 + $0x118] sm:$0xff] }
 0x595   : > { %2983 = vmatpush1.msra.mxu1 %v8559_v62  ;;  %3016 = vmatprep.mubr.f32.mxu1 %v10254_v1  ;;  %v8563_v32 = vadd.f32 %v2778_v5, %v2777_v43  ;;  %10501 = vst [vmem:[#allocation57_spill] sm:$0xff] %v8612_v48  ;;  %v8621_v43 = vld [vmem:[%s9954_s3 + $0x100] sm:$0xff]  ;;  %v8630_v5 = vld [vmem:[%s9954_s3 + $0xe8] sm:$0xff] }
 0x596   : > { %5470 = vmatpush3.msra.mxu0 %v10436_v22  ;;  %5471 = vmatprep.mubr.msk.f32.mxu0 %vm6067_vm0, %v10254_v1  ;;  %v8585_v22 = vld [vmem:[%s9954_s3 + $0x160] sm:$0xff]  ;;  %10502 = vst [vmem:[#allocation81_spill] sm:$0xff] %v8621_v43  ;;  %10503 = vst [vmem:[#allocation87_spill] sm:$0xff] %v8630_v5 }
 0x597   : > { %10498 = vst [vmem:[#allocation46_spill] sm:$0xff] %v8563_v32  ;;  %3017 = vmatmul.mubr.f32.vlgmr.msra.gmra.mxu1 %v8563_v32  ;;  %5472 = vmatmul.mubr.f32.vlgmr.msra.gmra.mxu0 %v8563_v32 }
 0x598   : > { %3124 = vmatprep.subr.mxu1 %v8193_v18  ;;  %5474 = vmatprep.subr.mxu0 %v10254_v1 }
 0x599   : > { %3125 = vmatpush1.msra.mxu1 %v8200_v46  ;;  %5475 = vmatpush3.msra.mxu0 %v8576_v15 }
 0x59a   : > { %3126 = vmatprep.subr.mxu1 %v8207_v2  ;;  %5476 = vmatprep.subr.mxu0 %v10254_v1 }
 0x59b   : > { %3127 = vmatpush1.msra.mxu1 %v8214_v54  ;;  %5477 = vmatpush3.msra.mxu0 %v8585_v22 }
 0x59c   : > { %3128 = vmatprep.subr.mxu1 %v8221_v50  ;;  %5478 = vmatprep.subr.mxu0 %v10254_v1 }
 0x59d   : > { %3129 = vmatpush1.msra.mxu1 %v8228_v10  ;;  %5479 = vmatpush3.msra.mxu0 %v8594_v16 }
 0x59e   : > { %3130 = vmatprep.subr.mxu1 %v8235_v41  ;;  %5480 = vmatprep.subr.mxu0 %v10254_v1 }
 0x59f   : > { %3131 = vmatpush1.msra.mxu1 %v8242_v59  ;;  %5481 = vmatpush3.msra.mxu0 %v8603_v14 }
 0x5a0   : > { %3132 = vmatprep.subr.mxu1 %v8249_v35  ;;  %5482 = vmatprep.subr.mxu0 %v10254_v1 }
 0x5a1   : > { %3133 = vmatpush1.msra.mxu1 %v8256_v33  ;;  %5483 = vmatpush3.msra.mxu0 %v8612_v48 }
 0x5a2   : > { %3134 = vmatprep.subr.mxu1 %v8263_v20  ;;  %5484 = vmatprep.subr.mxu0 %v10254_v1 }
 0x5a3   : > { %3135 = vmatpush1.msra.mxu1 %v8270_v30  ;;  %5485 = vmatpush3.msra.mxu0 %v8621_v43  ;;  %v10527_v43 = vld [vmem:[#allocation70_spill] sm:$0xff] }
 0x5a4   : > { %3136 = vmatprep.subr.mxu1 %v8277_v34  ;;  %5486 = vmatprep.subr.mxu0 %v10254_v1 }
 0x5a5   : > { %3137 = vmatpush1.msra.mxu1 %v8284_v31  ;;  %5487 = vmatpush3.msra.mxu0 %v8630_v5  ;;  %v10526_v5 = vld [vmem:[#allocation56_spill] sm:$0xff] }
 0x5a6   : > { %3138 = vmatprep.subr.mxu1 %v8291_v61  ;;  %5488 = vmatprep.subr.mxu0 %v10254_v1  ;;  %v8648_v61 = vld [vmem:[%s9954_s3 + $0xb8] sm:$0xff] }
 0x5a7   : > { %3139 = vmatpush1.msra.mxu1 %v8298_v28  ;;  %5489 = vmatpush3.msra.mxu0 %v8639_v49  ;;  %10505 = vst [vmem:[#allocation89_spill] sm:$0xff] %v8648_v61 }
 0x5a8   : > { %3140 = vmatprep.subr.mxu1 %v8305_v58  ;;  %5490 = vmatprep.subr.mxu0 %v10254_v1  ;;  %v8657_v58 = vld [vmem:[%s9954_s3 + $0xa0] sm:$0xff] }
 0x5a9   : > { %3141 = vmatpush1.msra.mxu1 %v8312_v39  ;;  %5491 = vmatpush3.msra.mxu0 %v8648_v61  ;;  %10506 = vst [vmem:[#allocation90_spill] sm:$0xff] %v8657_v58  ;;  %v10507_v39 = vld [vmem:[#allocation31_spill] sm:$0xff]  ;;  %v10510_v61 = vld [vmem:[#allocation34_spill] sm:$0xff] }
 0x5aa   : > { %3142 = vmatprep.subr.mxu1 %v8319_v3  ;;  %5492 = vmatprep.subr.mxu0 %v10254_v1  ;;  %v8666_v3 = vld [vmem:[%s9954_s3 + $0x88] sm:$0xff] }
 0x5ab   : > { %3143 = vmatpush1.msra.mxu1 %v8326_v12  ;;  %5493 = vmatpush3.msra.mxu0 %v8657_v58  ;;  %10508 = vst [vmem:[#allocation91_spill] sm:$0xff] %v8666_v3  ;;  %v10509_v12 = vld [vmem:[#allocation32_spill] sm:$0xff]  ;;  %v10513_v58 = vld [vmem:[#allocation22_spill] sm:$0xff] }
 0x5ac   : > { %3144 = vmatprep.subr.mxu1 %v8333_v7  ;;  %5494 = vmatprep.subr.mxu0 %v10254_v1  ;;  %v8675_v7 = vld [vmem:[%s9954_s3 + $0x70] sm:$0xff] }
 0x5ad   : > { %3145 = vmatpush1.msra.mxu1 %v10507_v39  ;;  %5495 = vmatpush3.msra.mxu0 %v8666_v3  ;;  %10511 = vst [vmem:[#allocation92_spill] sm:$0xff] %v8675_v7  ;;  %v10512_v39 = vld [vmem:[#allocation19_spill] sm:$0xff]  ;;  %v10516_v3 = vld [vmem:[#allocation28_spill] sm:$0xff] }
 0x5ae   : > { %3146 = vmatprep.subr.mxu1 %v10509_v12  ;;  %5496 = vmatprep.subr.mxu0 %v10254_v1  ;;  %v8684_v12 = vld [vmem:[%s9954_s3 + $0x58] sm:$0xff] }
 0x5af   : > { %3147 = vmatpush1.msra.mxu1 %v10510_v61  ;;  %5497 = vmatpush3.msra.mxu0 %v8675_v7  ;;  %10514 = vst [vmem:[#allocation93_spill] sm:$0xff] %v8684_v12  ;;  %v10515_v61 = vld [vmem:[#allocation25_spill] sm:$0xff]  ;;  %v10519_v7 = vld [vmem:[#allocation30_spill] sm:$0xff] }
 0x5b0   : > { %3148 = vmatprep.subr.mxu1 %v10512_v39  ;;  %5498 = vmatprep.subr.mxu0 %v10254_v1  ;;  %v8693_v39 = vld [vmem:[%s9954_s3 + $0x40] sm:$0xff] }
 0x5b1   : > { %3149 = vmatpush1.msra.mxu1 %v10513_v58  ;;  %5499 = vmatpush3.msra.mxu0 %v8684_v12  ;;  %10517 = vst [vmem:[#allocation94_spill] sm:$0xff] %v8693_v39  ;;  %v10518_v58 = vld [vmem:[#allocation85_spill] sm:$0xff] }
 0x5b2   : > { %3150 = vmatprep.subr.mxu1 %v10515_v61  ;;  %5500 = vmatprep.subr.mxu0 %v10254_v1  ;;  %v8702_v61 = vld [vmem:[%s9954_s3 + $0x28] sm:$0xff] }
 0x5b3   : > { %3151 = vmatpush1.msra.mxu1 %v10516_v3  ;;  %5501 = vmatpush3.msra.mxu0 %v8693_v39  ;;  %10520 = vst [vmem:[#allocation95_spill] sm:$0xff] %v8702_v61  ;;  %v10521_v3 = vld [vmem:[#allocation86_spill] sm:$0xff]  ;;  %v10522_v12 = vld [vmem:[#allocation33_spill] sm:$0xff] }
 0x5b4   : > { %3152 = vmatprep.subr.mxu1 %v10518_v58  ;;  %5502 = vmatprep.subr.mxu0 %v10254_v1  ;;  %v8712_v58 = vld [vmem:[%s9954_s3 + $0x10] sm:$0xff] }
 0x5b5   : > { %3153 = vmatpush1.msra.mxu1 %v10519_v7  ;;  %5503 = vmatpush3.msra.mxu0 %v8702_v61  ;;  %10523 = vst [vmem:[#allocation96_spill] sm:$0xff] %v8712_v58  ;;  %v10524_v7 = vld [vmem:[#allocation48_spill] sm:$0xff]  ;;  %v10525_v39 = vld [vmem:[#allocation65_spill] sm:$0xff] }
 0x5b6   : > { %3154 = vmatprep.subr.mxu1 %v10521_v3  ;;  %5504 = vmatprep.subr.mxu0 %v10254_v1 }
 0x5b7   : > { %3155 = vmatpush1.msra.mxu1 %v10522_v12  ;;  %3188 = vmatprep.mubr.f32.mxu1 %v10254_v1 }
 0x5b8   : > { %5505 = vmatpush3.msra.mxu0 %v8712_v58  ;;  %5506 = vmatprep.mubr.msk.f32.mxu0 %vm6067_vm0, %v10254_v1  ;;  %v10528_v58 = vld [vmem:[#allocation58_spill] sm:$0xff] }
 0x5b9   : > { %3286 = vmatprep.subr.mxu1 %v10524_v7  ;;  %5509 = vmatprep.subr.mxu0 %v10254_v1 }
 0x636   : > { %v2856_v3 = vpop.f32.mrf.mxu1  ;;  %v2927_v61 = vpop.f32.mrf.mxu0 }
 0x637   : > { %v2857_v12 = vadd.f32 %v2856_v3, %v10525_v39  ;;  %v10529_v3 = vld [vmem:[#allocation82_spill] sm:$0xff] }
 0x638   : > { %v2858_v49 = vpop.f32.mrf.mxu1  ;;  %v5438_v28 = vpop.f32.mrf.mxu0 }
 0x639   : > { %v2931_v31 = vadd.f32 %v2857_v12, %v10526_v5  ;;  %v2859_v30 = vadd.f32 %v2858_v49, %v10527_v43  ;;  %v10530_v28 = vld [vmem:[#allocation83_spill] sm:$0xff]  ;;  %v10531_v49 = vld [vmem:[#allocation45_spill] sm:$0xff] }
 0x63a   : > { %v2928_v16 = vadd.f32 %v2927_v61, %v10530_v28 }
 0x63b   : > { %v4661_v34 = vmul.f32 -1.442695, %v2931_v31  ;;  %v2938_v20 = vadd.f32 %v2859_v30, %v10528_v58 }
 0x63d   : > { %5753 = vpow2.f32 %v4661_v34  ;;  %v4662_v48 = vmul.f32 -1.442695, %v2938_v20 }
 0x63f   : > { %5755 = vpow2.f32 %v4662_v48 }
 0x64a   : > { %v5754_v33 = vpop.eup %5753 }
 0x64b   : > { %v2935_v7 = vadd.f32 1.0, %v5754_v33  ;;  %v10532_v33 = vld [vmem:[#allocation55_spill] sm:$0xff] }
 0x64c   : > { %v5756_v35 = vpop.eup %5755 }
 0x64d   : > { %5757 = vrcp.f32 %v2935_v7  ;;  %v2942_v14 = vadd.f32 1.0, %v5756_v35  ;;  %v10533_v35 = vld [vmem:[#allocation72_spill] sm:$0xff] }
 0x64f   : > { %5759 = vrcp.f32 %v2942_v14  ;;  %v8735_v14 = vld [vmem:[#allocation5 + $0x178] sm:$0xff] }
 0x657   : > { %v3018_v59 = vpop.f32.mrf.mxu1  ;;  %v3089_v41 = vpop.f32.mrf.mxu0 }
 0x658   : > { %v3019_v39 = vadd.f32 %v3018_v59, %v10529_v3 }
 0x659   : > { %v3020_v12 = vpop.f32.mrf.mxu1  ;;  %v5473_v31 = vpop.f32.mrf.mxu0 }
 0x65a   : > { %v5758_v5 = vpop.eup %5757  ;;  %v3093_v34 = vadd.f32 %v3019_v39, %v10531_v49  ;;  %v3021_v30 = vadd.f32 %v3020_v12, %v7300_v42  ;;  %v8753_v12 = vld [vmem:[#allocation5 + $0x130] sm:$0xff]  ;;  %v8760_v49 = vld [vmem:[#allocation5 + $0x118] sm:$0xff] }
 0x65b   : > { %v2945_v43 = vmul.f32 %v5758_v5, %v2928_v16  ;;  %v3090_v5 = vadd.f32 %v3089_v41, %v7320_v21  ;;  %v10534_v41 = vld [vmem:[#allocation73_spill] sm:$0xff] }
 0x65c   : > { %v4663_v20 = vmul.f32 -1.442695, %v3093_v34  ;;  %v3100_v7 = vadd.f32 %v3021_v30, %v10533_v35  ;;  %v5760_v59 = vpop.eup %5759  ;;  %v8766_v30 = vld [vmem:[#allocation5 + $0x100] sm:$0xff]  ;;  %v8779_v35 = vld [vmem:[#allocation5 + $0xd0] sm:$0xff] }
 0x65d   : > { %v2946_v58 = vadd.f32 %v2945_v43, %v10532_v33  ;;  %v2948_v28 = vsub.f32 1.0, %v5760_v59  ;;  %v2950_v39 = vmul.f32 %v5760_v59, %v8432_v6  ;;  %v8741_v43 = vld [vmem:[#allocation5 + $0x160] sm:$0xff]  ;;  %v8797_v59 = vld [vmem:[#allocation5 + $0x88] sm:$0xff] }
 0x65e   : > { %5761 = vpow2.f32 %v4663_v20  ;;  %v4664_v48 = vmul.f32 -1.442695, %v3100_v7  ;;  %v8785_v7 = vld [vmem:[#allocation5 + $0xb8] sm:$0xff] }
 0x65f   : > { %5763 = vtanh.f32 %v2946_v58  ;;  %v8773_v58 = vld [vmem:[#allocation5 + $0xe8] sm:$0xff] }
 0x660   : > { %5765 = vpow2.f32 %v4664_v48  ;;  %v8791_v48 = vld [vmem:[#allocation5 + $0xa0] sm:$0xff] }
 0x66b   : > { %v5762_v61 = vpop.eup %5761 }
 0x66c   : > { %v5764_v31 = vpop.eup %5763  ;;  %v3097_v3 = vadd.f32 1.0, %v5762_v61  ;;  %v8803_v61 = vld [vmem:[#allocation5 + $0x70] sm:$0xff] }
 0x66d   : > { %v2949_v10 = vmul.f32 %v5764_v31, %v2948_v28 }
 0x66e   : > { %5767 = vrcp.f32 %v3097_v3  ;;  %v8747_v3 = vld [vmem:[#allocation5 + $0x148] sm:$0xff] }
 0x66f   : > { %v8730_v16 = vadd.f32 %v2950_v39, %v2949_v10  ;;  %v5766_v10 = vpop.eup %5765  ;;  %v8809_v39 = vld [vmem:[#allocation5 + $0x58] sm:$0xff] }
 0x670   : > { %v3104_v28 = vadd.f32 1.0, %v5766_v10  ;;  %v8815_v10 = vld [vmem:[#allocation5 + $0x40] sm:$0xff] }
 0x671   : > { %3189 = vmatmul.mubr.f32.vlgmr.msra.gmra.mxu1 %v8730_v16  ;;  %5507 = vmatmul.mubr.f32.vlgmr.msra.gmra.mxu0 %v8730_v16  ;;  %10535 = vst [vmem:[#allocation97_spill] sm:$0xff] %v8815_v10 }
 0x672   : > { %3287 = vmatpush1.msra.mxu1 %v8436_v4  ;;  %5510 = vmatpush3.msra.mxu0 %v8735_v14  ;;  %5769 = vrcp.f32 %v3104_v28 }
 0x673   : > { %3288 = vmatprep.subr.mxu1 %v8440_v53  ;;  %5511 = vmatprep.subr.mxu0 %v10254_v1 }
 0x674   : > { %3289 = vmatpush1.msra.mxu1 %v8444_v26  ;;  %5512 = vmatpush3.msra.mxu0 %v8741_v43 }
 0x675   : > { %3290 = vmatprep.subr.mxu1 %v8448_v60  ;;  %5513 = vmatprep.subr.mxu0 %v10254_v1 }
 0x676   : > { %3291 = vmatpush1.msra.mxu1 %v8452_v23  ;;  %5514 = vmatpush3.msra.mxu0 %v8747_v3 }
 0x677   : > { %3292 = vmatprep.subr.mxu1 %v8456_v40  ;;  %5515 = vmatprep.subr.mxu0 %v10254_v1 }
 0x678   : > { %3293 = vmatpush1.msra.mxu1 %v8460_v45  ;;  %5516 = vmatpush3.msra.mxu0 %v8753_v12 }
 0x679   : > { %3294 = vmatprep.subr.mxu1 %v8464_v0  ;;  %5517 = vmatprep.subr.mxu0 %v10254_v1 }
 0x67a   : > { %3295 = vmatpush1.msra.mxu1 %v8469_v24  ;;  %5518 = vmatpush3.msra.mxu0 %v8760_v49 }
 0x67b   : > { %v5768_v34 = vpop.eup %5767  ;;  %3296 = vmatprep.subr.mxu1 %v8473_v9  ;;  %5519 = vmatprep.subr.mxu0 %v10254_v1 }
 0x67c   : > { %v3107_v20 = vmul.f32 %v5768_v34, %v3090_v5  ;;  %3297 = vmatpush1.msra.mxu1 %v8477_v19  ;;  %5520 = vmatpush3.msra.mxu0 %v8766_v30  ;;  %v10536_v34 = vld [vmem:[#allocation76_spill] sm:$0xff] }
 0x67d   : > { %3298 = vmatprep.subr.mxu1 %v8481_v44  ;;  %5521 = vmatprep.subr.mxu0 %v10254_v1 }
 0x67e   : > { %v3108_v33 = vadd.f32 %v3107_v20, %v10534_v41  ;;  %3299 = vmatpush1.msra.mxu1 %v8486_v36  ;;  %5522 = vmatpush3.msra.mxu0 %v8773_v58  ;;  %v8821_v20 = vld [vmem:[#allocation5 + $0x28] sm:$0xff] }
 0x67f   : > { %3300 = vmatprep.subr.mxu1 %v8490_v37  ;;  %5523 = vmatprep.subr.mxu0 %v10254_v1  ;;  %v5770_v31 = vpop.eup %5769  ;;  %10537 = vst [vmem:[#allocation98_spill] sm:$0xff] %v8821_v20 }
 0x680   : > { %5771 = vtanh.f32 %v3108_v33  ;;  %3301 = vmatpush1.msra.mxu1 %v8494_v57  ;;  %5524 = vmatpush3.msra.mxu0 %v8779_v35  ;;  %v3110_v28 = vsub.f32 1.0, %v5770_v31  ;;  %v3112_v33 = vmul.f32 %v5770_v31, %v8563_v32  ;;  %v10540_v31 = vld [vmem:[#allocation10_spill] sm:$0xff] }
 0x681   : > { %3302 = vmatprep.subr.mxu1 %v8498_v55  ;;  %5525 = vmatprep.subr.mxu0 %v10254_v1 }
 0x682   : > { %3303 = vmatpush1.msra.mxu1 %v8502_v29  ;;  %5526 = vmatpush3.msra.mxu0 %v8785_v7 }
 0x683   : > { %3304 = vmatprep.subr.mxu1 %v8506_v51  ;;  %5527 = vmatprep.subr.mxu0 %v10254_v1 }
 0x684   : > { %3305 = vmatpush1.msra.mxu1 %v8510_v47  ;;  %5528 = vmatpush3.msra.mxu0 %v8791_v48 }
 0x685   : > { %3306 = vmatprep.subr.mxu1 %v8514_v11  ;;  %5529 = vmatprep.subr.mxu0 %v10254_v1 }
 0x686   : > { %3307 = vmatpush1.msra.mxu1 %v8518_v17  ;;  %5530 = vmatpush3.msra.mxu0 %v8797_v59 }
 0x687   : > { %3308 = vmatprep.subr.mxu1 %v8522_v38  ;;  %5531 = vmatprep.subr.mxu0 %v10254_v1 }
 0x688   : > { %3309 = vmatpush1.msra.mxu1 %v8526_v56  ;;  %5532 = vmatpush3.msra.mxu0 %v8803_v61 }
 0x689   : > { %3310 = vmatprep.subr.mxu1 %v8530_v25  ;;  %5533 = vmatprep.subr.mxu0 %v10254_v1 }
 0x68a   : > { %3311 = vmatpush1.msra.mxu1 %v8534_v27  ;;  %5534 = vmatpush3.msra.mxu0 %v8809_v39 }
 0x68b   : > { %3312 = vmatprep.subr.mxu1 %v8538_v13  ;;  %5535 = vmatprep.subr.mxu0 %v10254_v1 }
 0x68c   : > { %3313 = vmatpush1.msra.mxu1 %v8542_v63  ;;  %5536 = vmatpush3.msra.mxu0 %v8815_v10 }
 0x68d   : > { %v5772_v5 = vpop.eup %5771  ;;  %3314 = vmatprep.subr.mxu1 %v10536_v34  ;;  %5537 = vmatprep.subr.mxu0 %v10254_v1  ;;  %v8831_v34 = vld [vmem:[#allocation5 + $0x10] sm:$0xff] }
 0x68e   : > { %3315 = vmatpush1.msra.mxu1 %v8550_v8  ;;  %5538 = vmatpush3.msra.mxu0 %v8821_v20  ;;  %v3111_v41 = vmul.f32 %v5772_v5, %v3110_v28  ;;  %10539 = vst [vmem:[#allocation100_spill] sm:$0xff] %v8831_v34  ;;  %v10542_v28 = vld [vmem:[#allocation11_spill] sm:$0xff]  ;;  %v10549_v5 = vld [vmem:[#allocation16_spill] sm:$0xff] }
 0x68f   : > { %3316 = vmatprep.subr.mxu1 %v8555_v52  ;;  %5539 = vmatprep.subr.mxu0 %v10254_v1 }
 0x690   : > { %3317 = vmatpush1.msra.mxu1 %v8559_v62  ;;  %3350 = vmatprep.mubr.f32.mxu1 %v10254_v1  ;;  %v8829_v6 = vadd.f32 %v3112_v33, %v3111_v41  ;;  %v10550_v41 = vld [vmem:[#allocation81_spill] sm:$0xff] }
 0x691   : > { %5540 = vmatpush3.msra.mxu0 %v8831_v34  ;;  %5541 = vmatprep.mubr.msk.f32.mxu0 %vm6067_vm0, %v10254_v1  ;;  %v10551_v33 = vld [vmem:[#allocation17_spill] sm:$0xff] }
 0x692   : > { %10538 = vst [vmem:[#allocation99_spill] sm:$0xff] %v8829_v6  ;;  %3351 = vmatmul.mubr.f32.vlgmr.msra.gmra.mxu1 %v8829_v6  ;;  %5542 = vmatmul.mubr.f32.vlgmr.msra.gmra.mxu0 %v8829_v6 }
 0x693   : > { %3458 = vmatprep.subr.mxu1 %v8193_v18  ;;  %5544 = vmatprep.subr.mxu0 %v10254_v1  ;;  %v10541_v18 = vld [vmem:[#allocation39_spill] sm:$0xff] }
 0x694   : > { %3459 = vmatpush1.msra.mxu1 %v8200_v46  ;;  %5545 = vmatpush3.msra.mxu0 %v8576_v15  ;;  %v10543_v46 = vld [vmem:[#allocation12_spill] sm:$0xff]  ;;  %v10545_v15 = vld [vmem:[#allocation13_spill] sm:$0xff] }
 0x695   : > { %3460 = vmatprep.subr.mxu1 %v8207_v2  ;;  %5546 = vmatprep.subr.mxu0 %v10254_v1  ;;  %v10544_v2 = vld [vmem:[#allocation80_spill] sm:$0xff] }
 0x696   : > { %3461 = vmatpush1.msra.mxu1 %v8214_v54  ;;  %5547 = vmatpush3.msra.mxu0 %v8585_v22  ;;  %v10546_v54 = vld [vmem:[#allocation14_spill] sm:$0xff]  ;;  %v10548_v22 = vld [vmem:[#allocation15_spill] sm:$0xff] }
 0x697   : > { %3462 = vmatprep.subr.mxu1 %v8221_v50  ;;  %5548 = vmatprep.subr.mxu0 %v10254_v1  ;;  %v10547_v50 = vld [vmem:[#allocation57_spill] sm:$0xff] }
 0x698   : > { %3463 = vmatpush1.msra.mxu1 %v10540_v31  ;;  %5549 = vmatpush3.msra.mxu0 %v10541_v18  ;;  %v10552_v31 = vld [vmem:[#allocation18_spill] sm:$0xff]  ;;  %v10553_v18 = vld [vmem:[#allocation87_spill] sm:$0xff] }
 0x699   : > { %3464 = vmatprep.subr.mxu1 %v10542_v28  ;;  %5550 = vmatprep.subr.mxu0 %v10254_v1  ;;  %v10554_v28 = vld [vmem:[#allocation20_spill] sm:$0xff] }
 0x69a   : > { %3465 = vmatpush1.msra.mxu1 %v10543_v46  ;;  %5551 = vmatpush3.msra.mxu0 %v10544_v2  ;;  %v10555_v46 = vld [vmem:[#allocation21_spill] sm:$0xff]  ;;  %v10556_v2 = vld [vmem:[#allocation78_spill] sm:$0xff] }
 0x69b   : > { %3466 = vmatprep.subr.mxu1 %v10545_v15  ;;  %5552 = vmatprep.subr.mxu0 %v10254_v1  ;;  %v10557_v15 = vld [vmem:[#allocation23_spill] sm:$0xff] }
 0x69c   : > { %3467 = vmatpush1.msra.mxu1 %v10546_v54  ;;  %5553 = vmatpush3.msra.mxu0 %v10547_v50  ;;  %v10558_v54 = vld [vmem:[#allocation24_spill] sm:$0xff]  ;;  %v10559_v50 = vld [vmem:[#allocation89_spill] sm:$0xff] }
 0x69d   : > { %3468 = vmatprep.subr.mxu1 %v10548_v22  ;;  %5554 = vmatprep.subr.mxu0 %v10254_v1  ;;  %v10560_v22 = vld [vmem:[#allocation26_spill] sm:$0xff] }
 0x69e   : > { %3469 = vmatpush1.msra.mxu1 %v10549_v5  ;;  %5555 = vmatpush3.msra.mxu0 %v10550_v41  ;;  %v10561_v5 = vld [vmem:[#allocation27_spill] sm:$0xff]  ;;  %v10562_v41 = vld [vmem:[#allocation90_spill] sm:$0xff] }
 0x69f   : > { %3470 = vmatprep.subr.mxu1 %v10551_v33  ;;  %5556 = vmatprep.subr.mxu0 %v10254_v1  ;;  %v10563_v33 = vld [vmem:[#allocation29_spill] sm:$0xff] }
 0x6a0   : > { %3471 = vmatpush1.msra.mxu1 %v10552_v31  ;;  %5557 = vmatpush3.msra.mxu0 %v10553_v18  ;;  %v10564_v31 = vld [vmem:[#allocation31_spill] sm:$0xff] }
 0x6a1   : > { %3472 = vmatprep.subr.mxu1 %v10554_v28  ;;  %5558 = vmatprep.subr.mxu0 %v10254_v1  ;;  %v10565_v18 = vld [vmem:[#allocation91_spill] sm:$0xff]  ;;  %v10566_v28 = vld [vmem:[#allocation32_spill] sm:$0xff] }
 0x6a2   : > { %3473 = vmatpush1.msra.mxu1 %v10555_v46  ;;  %5559 = vmatpush3.msra.mxu0 %v10556_v2  ;;  %v10567_v46 = vld [vmem:[#allocation34_spill] sm:$0xff]  ;;  %v10568_v2 = vld [vmem:[#allocation92_spill] sm:$0xff] }
 0x6a3   : > { %3474 = vmatprep.subr.mxu1 %v10557_v15  ;;  %5560 = vmatprep.subr.mxu0 %v10254_v1  ;;  %v10569_v15 = vld [vmem:[#allocation19_spill] sm:$0xff] }
 0x6a4   : > { %3475 = vmatpush1.msra.mxu1 %v10558_v54  ;;  %5561 = vmatpush3.msra.mxu0 %v10559_v50  ;;  %v10570_v54 = vld [vmem:[#allocation22_spill] sm:$0xff]  ;;  %v10571_v50 = vld [vmem:[#allocation93_spill] sm:$0xff] }
 0x6a5   : > { %3476 = vmatprep.subr.mxu1 %v10560_v22  ;;  %5562 = vmatprep.subr.mxu0 %v10254_v1  ;;  %v10572_v22 = vld [vmem:[#allocation25_spill] sm:$0xff] }
 0x6a6   : > { %3477 = vmatpush1.msra.mxu1 %v10561_v5  ;;  %5563 = vmatpush3.msra.mxu0 %v10562_v41  ;;  %v10573_v5 = vld [vmem:[#allocation28_spill] sm:$0xff]  ;;  %v10574_v41 = vld [vmem:[#allocation94_spill] sm:$0xff] }
 0x6a7   : > { %3478 = vmatprep.subr.mxu1 %v10563_v33  ;;  %5564 = vmatprep.subr.mxu0 %v10254_v1  ;;  %v10575_v33 = vld [vmem:[#allocation85_spill] sm:$0xff] }
 0x6a8   : > { %3479 = vmatpush1.msra.mxu1 %v10564_v31  ;;  %5565 = vmatpush3.msra.mxu0 %v10565_v18  ;;  %v10576_v31 = vld [vmem:[#allocation30_spill] sm:$0xff]  ;;  %v10577_v18 = vld [vmem:[#allocation95_spill] sm:$0xff] }
 0x6a9   : > { %3480 = vmatprep.subr.mxu1 %v10566_v28  ;;  %5566 = vmatprep.subr.mxu0 %v10254_v1  ;;  %v10578_v28 = vld [vmem:[#allocation86_spill] sm:$0xff] }
 0x6aa   : > { %3481 = vmatpush1.msra.mxu1 %v10567_v46  ;;  %5567 = vmatpush3.msra.mxu0 %v10568_v2  ;;  %v10579_v46 = vld [vmem:[#allocation33_spill] sm:$0xff]  ;;  %v10580_v2 = vld [vmem:[#allocation96_spill] sm:$0xff] }
 0x6ab   : > { %3482 = vmatprep.subr.mxu1 %v10569_v15  ;;  %5568 = vmatprep.subr.mxu0 %v10254_v1  ;;  %v10581_v15 = vld [vmem:[#allocation48_spill] sm:$0xff] }
 0x6ac   : > { %3483 = vmatpush1.msra.mxu1 %v10570_v54  ;;  %5569 = vmatpush3.msra.mxu0 %v10571_v50 }
 0x6ad   : > { %3484 = vmatprep.subr.mxu1 %v10572_v22  ;;  %5570 = vmatprep.subr.mxu0 %v10254_v1  ;;  %v10582_v22 = vld [vmem:[#allocation65_spill] sm:$0xff] }
 0x6ae   : > { %3485 = vmatpush1.msra.mxu1 %v10573_v5  ;;  %5571 = vmatpush3.msra.mxu0 %v10574_v41 }
 0x6af   : > { %3486 = vmatprep.subr.mxu1 %v10575_v33  ;;  %5572 = vmatprep.subr.mxu0 %v10254_v1 }
 0x6b0   : > { %3487 = vmatpush1.msra.mxu1 %v10576_v31  ;;  %5573 = vmatpush3.msra.mxu0 %v10577_v18  ;;  %v10583_v31 = vld [vmem:[#allocation60_spill] sm:$0xff] }
 0x6b1   : > { %3488 = vmatprep.subr.mxu1 %v10578_v28  ;;  %5574 = vmatprep.subr.mxu0 %v10254_v1 }
 0x6b2   : > { %3489 = vmatpush1.msra.mxu1 %v10579_v46  ;;  %3522 = vmatprep.mubr.f32.mxu1 %v10254_v1  ;;  %v10584_v46 = vld [vmem:[#allocation70_spill] sm:$0xff] }
 0x6b3   : > { %5575 = vmatpush3.msra.mxu0 %v10580_v2  ;;  %5576 = vmatprep.mubr.msk.f32.mxu0 %vm6067_vm0, %v10254_v1  ;;  %v10585_v2 = vld [vmem:[#allocation62_spill] sm:$0xff] }
 0x6b4   : > { %3620 = vmatprep.subr.mxu1 %v10581_v15  ;;  %5579 = vmatprep.subr.mxu0 %v10254_v1 }
 0x731   : > { %v3190_v54 = vpop.f32.mrf.mxu1  ;;  %v3261_v50 = vpop.f32.mrf.mxu0 }
 0x732   : > { %v3191_v5 = vadd.f32 %v3190_v54, %v10582_v22  ;;  %v10586_v54 = vld [vmem:[#allocation82_spill] sm:$0xff] }
 0x733   : > { %v3192_v41 = vpop.f32.mrf.mxu1  ;;  %v5508_v33 = vpop.f32.mrf.mxu0 }
 0x734   : > { %v3265_v18 = vadd.f32 %v3191_v5, %v10583_v31  ;;  %v3193_v32 = vadd.f32 %v3192_v41, %v10584_v46  ;;  %v10587_v33 = vld [vmem:[#allocation83_spill] sm:$0xff]  ;;  %v10588_v41 = vld [vmem:[#allocation41_spill] sm:$0xff] }
 0x735   : > { %v3262_v63 = vadd.f32 %v3261_v50, %v10587_v33 }
 0x736   : > { %v4665_v28 = vmul.f32 -1.442695, %v3265_v18  ;;  %v3272_v34 = vadd.f32 %v3193_v32, %v10585_v2 }
 0x738   : > { %5773 = vpow2.f32 %v4665_v28  ;;  %v4666_v62 = vmul.f32 -1.442695, %v3272_v34 }
 0x73a   : > { %5775 = vpow2.f32 %v4666_v62 }
 0x745   : > { %v5774_v52 = vpop.eup %5773 }
 0x746   : > { %v3269_v15 = vadd.f32 1.0, %v5774_v52  ;;  %v10589_v52 = vld [vmem:[#allocation59_spill] sm:$0xff] }
 0x747   : > { %v5776_v6 = vpop.eup %5775 }
 0x748   : > { %5777 = vrcp.f32 %v3269_v15  ;;  %v3276_v20 = vadd.f32 1.0, %v5776_v6  ;;  %v10590_v6 = vld [vmem:[#allocation69_spill] sm:$0xff] }
 0x74a   : > { %5779 = vrcp.f32 %v3276_v20 }
 0x752   : > { %v3352_v8 = vpop.f32.mrf.mxu1  ;;  %v3423_v10 = vpop.f32.mrf.mxu0 }
 0x753   : > { %v3353_v22 = vadd.f32 %v3352_v8, %v10586_v54 }
 0x754   : > { %v3354_v5 = vpop.f32.mrf.mxu1  ;;  %v5543_v31 = vpop.f32.mrf.mxu0 }
 0x755   : > { %v5778_v18 = vpop.eup %5777  ;;  %v3427_v28 = vadd.f32 %v3353_v22, %v10588_v41  ;;  %v3355_v62 = vadd.f32 %v3354_v5, %v7300_v42  ;;  %v3816_v5 = vld [vmem:[%s9958_s7 + $0xe0] sm:$0xff]  ;;  %v3815_v41 = vld [vmem:[%s9958_s7 + $0xd8] sm:$0xff] }
 0x756   : > { %v3279_v46 = vmul.f32 %v5778_v18, %v3262_v63  ;;  %v3915_v18 = vld [vmem:[%s9958_s7 + $0x3f8] sm:$0xff] }
 0x757   : > { %v4667_v32 = vmul.f32 -1.442695, %v3427_v28  ;;  %v3434_v2 = vadd.f32 %v3355_v62, %v10590_v6  ;;  %v5780_v8 = vpop.eup %5779  ;;  %v3914_v28 = vld [vmem:[%s9958_s7 + $0x3f0] sm:$0xff]  ;;  %v3912_v62 = vld [vmem:[%s9958_s7 + $0x3e0] sm:$0xff] }
 0x758   : > { %v3280_v34 = vadd.f32 %v3279_v46, %v10589_v52  ;;  %v3282_v33 = vsub.f32 1.0, %v5780_v8  ;;  %v3284_v63 = vmul.f32 %v5780_v8, %v8730_v16  ;;  %v3918_v46 = vld [vmem:[%s9958_s7 + $0x410] sm:$0xff]  ;;  %v3812_v52 = vld [vmem:[%s9958_s7 + $0xc0] sm:$0xff] }
 0x759   : > { %5781 = vpow2.f32 %v4667_v32  ;;  %v4668_v15 = vmul.f32 -1.442695, %v3434_v2  ;;  %v3813_v32 = vld [vmem:[%s9958_s7 + $0xc8] sm:$0xff]  ;;  %v3810_v6 = vld [vmem:[%s9958_s7 + $0xb0] sm:$0xff]  ;;  %v3908_v8 = vld [vmem:[%s9958_s7 + $0x3c0] sm:$0xff] }
 0x75a   : > { %5783 = vtanh.f32 %v3280_v34  ;;  %v3911_v34 = vld [vmem:[%s9958_s7 + $0x3d8] sm:$0xff]  ;;  %v3909_v2 = vld [vmem:[%s9958_s7 + $0x3c8] sm:$0xff] }
 0x75b   : > { %5785 = vpow2.f32 %v4668_v15  ;;  %v3809_v15 = vld [vmem:[%s9958_s7 + $0xa8] sm:$0xff] }
 0x766   : > { %v5782_v50 = vpop.eup %5781 }
 0x767   : > { %v5784_v31 = vpop.eup %5783  ;;  %v3431_v54 = vadd.f32 1.0, %v5782_v50  ;;  %v3807_v50 = vld [vmem:[%s9958_s7 + $0x98] sm:$0xff] }
 0x768   : > { %v3283_v13 = vmul.f32 %v5784_v31, %v3282_v33  ;;  %v5786_v22 = vpop.eup %5785  ;;  %v3917_v33 = vld [vmem:[%s9958_s7 + $0x408] sm:$0xff]  ;;  %v3906_v31 = vld [vmem:[%s9958_s7 + $0x3b0] sm:$0xff] }
 0x769   : > { %5787 = vrcp.f32 %v3431_v54  ;;  %v3818_v54 = vld [vmem:[%s9958_s7 + $0xf0] sm:$0xff] }
 0x76a   : > { %v8918_v20 = vadd.f32 %v3284_v63, %v3283_v13  ;;  %v3830_v13 = vld [vmem:[%s9958_s7 + $0x150] sm:$0xff] }
 0x76b   : > { %v3806_v63 = vld [vmem:[%s9958_s7 + $0x90] sm:$0xff] }
 0x76c   : > { %3523 = vmatmul.mubr.f32.vlgmr.msra.gmra.mxu1 %v8918_v20  ;;  %5577 = vmatmul.mubr.f32.vlgmr.msra.gmra.mxu0 %v8918_v20 }
 0x76d   : > { %3621 = vmatpush1.msra.mxu1 %v8436_v4  ;;  %5580 = vmatpush3.msra.mxu0 %v8735_v14  ;;  %v3438_v4 = vadd.f32 1.0, %v5786_v22  ;;  %v3929_v14 = vld [vmem:[%s9958_s7 + $0x468] sm:$0xff] }
 0x76e   : > { %3622 = vmatprep.subr.mxu1 %v8440_v53  ;;  %5581 = vmatprep.subr.mxu0 %v10254_v1  ;;  %v3424_v53 = vadd.f32 %v3423_v10, %v7320_v21  ;;  %v3819_v10 = vld [vmem:[%s9958_s7 + $0xf8] sm:$0xff]  ;;  %v3905_v22 = vld [vmem:[%s9958_s7 + $0x3a8] sm:$0xff] }
 0x76f   : > { %3623 = vmatpush1.msra.mxu1 %v8444_v26  ;;  %5582 = vmatpush3.msra.mxu0 %v8741_v43  ;;  %5789 = vrcp.f32 %v3438_v4  ;;  %v3828_v43 = vld [vmem:[%s9958_s7 + $0x140] sm:$0xff] }
 0x770   : > { %3624 = vmatprep.subr.mxu1 %v8448_v60  ;;  %5583 = vmatprep.subr.mxu0 %v10254_v1  ;;  %v3804_v4 = vld [vmem:[%s9958_s7 + $0x80] sm:$0xff] }
 0x771   : > { %3625 = vmatpush1.msra.mxu1 %v8452_v23  ;;  %5584 = vmatpush3.msra.mxu0 %v8747_v3  ;;  %v10591_v23 = vld [vmem:[#allocation71_spill] sm:$0xff] }
 0x772   : > { %3626 = vmatprep.subr.mxu1 %v8456_v40  ;;  %5585 = vmatprep.subr.mxu0 %v10254_v1  ;;  %v3927_v3 = vld [vmem:[%s9958_s7 + $0x458] sm:$0xff] }
 0x773   : > { %3627 = vmatpush1.msra.mxu1 %v8460_v45  ;;  %5586 = vmatpush3.msra.mxu0 %v8753_v12  ;;  %v3827_v12 = vld [vmem:[%s9958_s7 + $0x138] sm:$0xff] }
 0x774   : > { %3628 = vmatprep.subr.mxu1 %v8464_v0  ;;  %5587 = vmatprep.subr.mxu0 %v10254_v1  ;;  %v10592_v0 = vld [vmem:[#allocation53_spill] sm:$0xff] }
 0x775   : > { %3629 = vmatpush1.msra.mxu1 %v8469_v24  ;;  %5588 = vmatpush3.msra.mxu0 %v8760_v49  ;;  %v10593_v24 = vld [vmem:[#allocation47_spill] sm:$0xff]  ;;  %v3926_v49 = vld [vmem:[%s9958_s7 + $0x450] sm:$0xff] }
 0x776   : > { %v5788_v26 = vpop.eup %5787  ;;  %3630 = vmatprep.subr.mxu1 %v8473_v9  ;;  %5589 = vmatprep.subr.mxu0 %v10254_v1  ;;  %v10594_v9 = vld [vmem:[#allocation97_spill] sm:$0xff] }
 0x777   : > { %v3441_v60 = vmul.f32 %v5788_v26, %v3424_v53  ;;  %3631 = vmatpush1.msra.mxu1 %v8477_v19  ;;  %5590 = vmatpush3.msra.mxu0 %v8766_v30  ;;  %v3825_v30 = vld [vmem:[%s9958_s7 + $0x128] sm:$0xff]  ;;  %v3903_v53 = vld [vmem:[%s9958_s7 + $0x398] sm:$0xff] }
 0x778   : > { %3632 = vmatprep.subr.mxu1 %v8481_v44  ;;  %5591 = vmatprep.subr.mxu0 %v10254_v1  ;;  %v3803_v26 = vld [vmem:[%s9958_s7 + $0x78] sm:$0xff] }
 0x779   : > { %v3442_v40 = vadd.f32 %v3441_v60, %v10591_v23  ;;  %3633 = vmatpush1.msra.mxu1 %v8486_v36  ;;  %5592 = vmatpush3.msra.mxu0 %v8773_v58  ;;  %v10595_v36 = vld [vmem:[#allocation76_spill] sm:$0xff]  ;;  %v3902_v60 = vld [vmem:[%s9958_s7 + $0x390] sm:$0xff] }
 0x77a   : > { %3634 = vmatprep.subr.mxu1 %v8490_v37  ;;  %5593 = vmatprep.subr.mxu0 %v10254_v1  ;;  %v10596_v37 = vld [vmem:[#allocation77_spill] sm:$0xff]  ;;  %v3924_v58 = vld [vmem:[%s9958_s7 + $0x440] sm:$0xff] }
 0x77b   : > { %5791 = vtanh.f32 %v3442_v40  ;;  %3635 = vmatpush1.msra.mxu1 %v8494_v57  ;;  %5594 = vmatpush3.msra.mxu0 %v8779_v35  ;;  %v10597_v57 = vld [vmem:[#allocation98_spill] sm:$0xff]  ;;  %v3824_v35 = vld [vmem:[%s9958_s7 + $0x120] sm:$0xff]  ;;  %v3801_v23 = vld [vmem:[%s9958_s7 + $0x68] sm:$0xff] }
 0x77c   : > { %3636 = vmatprep.subr.mxu1 %v8498_v55  ;;  %5595 = vmatprep.subr.mxu0 %v10254_v1  ;;  %v5790_v45 = vpop.eup %5789  ;;  %v3900_v40 = vld [vmem:[%s9958_s7 + $0x380] sm:$0xff] }
 0x77d   : > { %3637 = vmatpush1.msra.mxu1 %v8502_v29  ;;  %5596 = vmatpush3.msra.mxu0 %v8785_v7  ;;  %v3444_v19 = vsub.f32 1.0, %v5790_v45  ;;  %v10598_v29 = vld [vmem:[#allocation99_spill] sm:$0xff] }
 0x77e   : > { %3638 = vmatprep.subr.mxu1 %v8506_v51  ;;  %5597 = vmatprep.subr.mxu0 %v10254_v1  ;;  %v3446_v51 = vmul.f32 %v5790_v45, %v10598_v29  ;;  %v3923_v7 = vld [vmem:[%s9958_s7 + $0x438] sm:$0xff]  ;;  %v3800_v45 = vld [vmem:[%s9958_s7 + $0x60] sm:$0xff] }
 0x77f   : > { %3639 = vmatpush1.msra.mxu1 %v8510_v47  ;;  %5598 = vmatpush3.msra.mxu0 %v8791_v48  ;;  %v10599_v47 = vld [vmem:[#allocation42_spill] sm:$0xff] }
 0x780   : > { %3640 = vmatprep.subr.mxu1 %v8514_v11  ;;  %5599 = vmatprep.subr.mxu0 %v10254_v1  ;;  %v10600_v11 = vld [vmem:[#allocation61_spill] sm:$0xff] }
 0x781   : > { %3641 = vmatpush1.msra.mxu1 %v8518_v17  ;;  %5600 = vmatpush3.msra.mxu0 %v8797_v59  ;;  %v3822_v48 = vld [vmem:[%s9958_s7 + $0x110] sm:$0xff]  ;;  %v3921_v59 = vld [vmem:[%s9958_s7 + $0x428] sm:$0xff] }
 0x782   : > { %3642 = vmatprep.subr.mxu1 %v8522_v38  ;;  %5601 = vmatprep.subr.mxu0 %v10254_v1  ;;  %v10601_v38 = vld [vmem:[#allocation100_spill] sm:$0xff] }
 0x783   : > { %3643 = vmatpush1.msra.mxu1 %v8526_v56  ;;  %5602 = vmatpush3.msra.mxu0 %v8803_v61  ;;  %v3834_v56 = vld [vmem:[%s9958_s7 + $0x170] sm:$0xff]  ;;  %v3821_v61 = vld [vmem:[%s9958_s7 + $0x108] sm:$0xff] }
 0x784   : > { %3644 = vmatprep.subr.mxu1 %v8530_v25  ;;  %5603 = vmatprep.subr.mxu0 %v10254_v1  ;;  %v3833_v25 = vld [vmem:[%s9958_s7 + $0x168] sm:$0xff] }
 0x785   : > { %3645 = vmatpush1.msra.mxu1 %v8534_v27  ;;  %5604 = vmatpush3.msra.mxu0 %v8809_v39  ;;  %v3831_v27 = vld [vmem:[%s9958_s7 + $0x158] sm:$0xff]  ;;  %v3920_v39 = vld [vmem:[%s9958_s7 + $0x420] sm:$0xff] }
 0x786   : > { %3646 = vmatprep.subr.mxu1 %v10592_v0  ;;  %5605 = vmatprep.subr.mxu0 %v10254_v1  ;;  %v3899_v0 = vld [vmem:[%s9958_s7 + $0x378] sm:$0xff] }
 0x787   : > { %3647 = vmatpush1.msra.mxu1 %v10593_v24  ;;  %5606 = vmatpush3.msra.mxu0 %v10594_v9  ;;  %v3798_v24 = vld [vmem:[%s9958_s7 + $0x50] sm:$0xff]  ;;  %v3897_v9 = vld [vmem:[%s9958_s7 + $0x368] sm:$0xff] }
 0x788   : > { %v5792_v44 = vpop.eup %5791  ;;  %3648 = vmatprep.subr.mxu1 %v10595_v36  ;;  %5607 = vmatprep.subr.mxu0 %v10254_v1  ;;  %v3795_v36 = vld [vmem:[%s9958_s7 + $0x38] sm:$0xff] }
 0x789   : > { %3649 = vmatpush1.msra.mxu1 %v10596_v37  ;;  %5608 = vmatpush3.msra.mxu0 %v10597_v57  ;;  %v3445_v55 = vmul.f32 %v5792_v44, %v3444_v19  ;;  %v3797_v19 = vld [vmem:[%s9958_s7 + $0x48] sm:$0xff]  ;;  %v3896_v44 = vld [vmem:[%s9958_s7 + $0x360] sm:$0xff]  ;;  %v3894_v37 = vld [vmem:[%s9958_s7 + $0x350] sm:$0xff] }
 0x78a   : > { %3650 = vmatprep.subr.mxu1 %v10599_v47  ;;  %5609 = vmatprep.subr.mxu0 %v10254_v1  ;;  %v3794_v57 = vld [vmem:[%s9958_s7 + $0x30] sm:$0xff]  ;;  %v3891_v47 = vld [vmem:[%s9958_s7 + $0x338] sm:$0xff] }
 0x78b   : > { %3651 = vmatpush1.msra.mxu1 %v10600_v11  ;;  %3684 = vmatprep.mubr.f32.mxu1 %v10254_v1  ;;  %v8987_v17 = vadd.f32 %v3446_v51, %v3445_v55  ;;  %v3893_v55 = vld [vmem:[%s9958_s7 + $0x348] sm:$0xff]  ;;  %v3792_v51 = vld [vmem:[%s9958_s7 + $0x20] sm:$0xff]  ;;  %v3791_v11 = vld [vmem:[%s9958_s7 + $0x18] sm:$0xff] }
 0x78c   : > { %5610 = vmatpush3.msra.mxu0 %v10601_v38  ;;  %5611 = vmatprep.mubr.msk.f32.mxu0 %vm6067_vm0, %v10254_v1  ;;  %v3930_v1 = vld [vmem:[%s9958_s7 + $0x470] sm:$0xff] }
 0x78d   : > { %3685 = vmatmul.mubr.f32.vlgmr.msra.gmra.mxu1 %v8987_v17  ;;  %5612 = vmatmul.mubr.f32.vlgmr.msra.gmra.mxu0 %v8987_v17  ;;  %v3890_v38 = vld [vmem:[%s9958_s7 + $0x330] sm:$0xff] }
 0x78e   : > { %4093 = vmatprep.subr.mxu1 %v3834_v56  ;;  %4164 = vmatprep.subr.mxu0 %v3930_v1  ;;  %v3789_v56 = vld [vmem:[%s9958_s7 + $0x8] sm:$0xff]  ;;  %v3887_v1 = vld [vmem:[%s9958_s7 + $0x318] sm:$0xff] }
 0x78f   : > { %4094 = vmatpush1.msra.mxu1 %v3833_v25  ;;  %4165 = vmatpush1.msra.mxu0 %v3929_v14  ;;  %v3888_v25 = vld [vmem:[%s9958_s7 + $0x320] sm:$0xff]  ;;  %v3885_v14 = vld [vmem:[%s9958_s7 + $0x308] sm:$0xff] }
 0x790   : > { %4095 = vmatprep.subr.mxu1 %v3831_v27  ;;  %4166 = vmatprep.subr.mxu0 %v3927_v3  ;;  %v3788_v27 = vld [vmem:[%s9958_s7] sm:$0xff] }
 0x791   : > { %4096 = vmatpush1.msra.mxu1 %v3830_v13  ;;  %4167 = vmatpush1.msra.mxu0 %v3926_v49  ;;  %v3882_v13 = vld [vmem:[%s9958_s7 + $0x2f0] sm:$0xff]  ;;  %v3884_v3 = vld [vmem:[%s9958_s7 + $0x300] sm:$0xff] }
 0x792   : > { %4097 = vmatprep.subr.mxu1 %v3828_v43  ;;  %4168 = vmatprep.subr.mxu0 %v3924_v58  ;;  %v3881_v43 = vld [vmem:[%s9958_s7 + $0x2e8] sm:$0xff]  ;;  %v3978_v49 = vld [vmem:[%s9958_s7 + $0x5f0] sm:$0xff] }
 0x793   : > { %4098 = vmatpush1.msra.mxu1 %v3827_v12  ;;  %4169 = vmatpush1.msra.mxu0 %v3923_v7  ;;  %v3879_v12 = vld [vmem:[%s9958_s7 + $0x2d8] sm:$0xff]  ;;  %v3977_v58 = vld [vmem:[%s9958_s7 + $0x5e8] sm:$0xff] }
 0x794   : > { %4099 = vmatprep.subr.mxu1 %v3825_v30  ;;  %4170 = vmatprep.subr.mxu0 %v3921_v59  ;;  %v3878_v30 = vld [vmem:[%s9958_s7 + $0x2d0] sm:$0xff]  ;;  %v3975_v7 = vld [vmem:[%s9958_s7 + $0x5d8] sm:$0xff] }
 0x795   : > { %4100 = vmatpush1.msra.mxu1 %v3824_v35  ;;  %4171 = vmatpush1.msra.mxu0 %v3920_v39  ;;  %v3876_v35 = vld [vmem:[%s9958_s7 + $0x2c0] sm:$0xff]  ;;  %v3974_v59 = vld [vmem:[%s9958_s7 + $0x5d0] sm:$0xff] }
 0x796   : > { %4101 = vmatprep.subr.mxu1 %v3822_v48  ;;  %4172 = vmatprep.subr.mxu0 %v3918_v46  ;;  %v3875_v48 = vld [vmem:[%s9958_s7 + $0x2b8] sm:$0xff]  ;;  %v3972_v39 = vld [vmem:[%s9958_s7 + $0x5c0] sm:$0xff] }
 0x797   : > { %4102 = vmatpush1.msra.mxu1 %v3821_v61  ;;  %4173 = vmatpush1.msra.mxu0 %v3917_v33  ;;  %v3873_v61 = vld [vmem:[%s9958_s7 + $0x2a8] sm:$0xff]  ;;  %v3971_v46 = vld [vmem:[%s9958_s7 + $0x5b8] sm:$0xff] }
 0x798   : > { %4103 = vmatprep.subr.mxu1 %v3819_v10  ;;  %4174 = vmatprep.subr.mxu0 %v3915_v18  ;;  %v3872_v10 = vld [vmem:[%s9958_s7 + $0x2a0] sm:$0xff]  ;;  %v3969_v33 = vld [vmem:[%s9958_s7 + $0x5a8] sm:$0xff] }
 0x799   : > { %4104 = vmatpush1.msra.mxu1 %v3818_v54  ;;  %4175 = vmatpush1.msra.mxu0 %v3914_v28  ;;  %v3870_v54 = vld [vmem:[%s9958_s7 + $0x290] sm:$0xff]  ;;  %v3968_v18 = vld [vmem:[%s9958_s7 + $0x5a0] sm:$0xff] }
 0x79a   : > { %4105 = vmatprep.subr.mxu1 %v3816_v5  ;;  %4176 = vmatprep.subr.mxu0 %v3912_v62  ;;  %v3869_v5 = vld [vmem:[%s9958_s7 + $0x288] sm:$0xff]  ;;  %v3966_v28 = vld [vmem:[%s9958_s7 + $0x590] sm:$0xff] }
 0x79b   : > { %4106 = vmatpush1.msra.mxu1 %v3815_v41  ;;  %4177 = vmatpush1.msra.mxu0 %v3911_v34  ;;  %v3867_v41 = vld [vmem:[%s9958_s7 + $0x278] sm:$0xff]  ;;  %v3965_v62 = vld [vmem:[%s9958_s7 + $0x588] sm:$0xff] }
 0x79c   : > { %4107 = vmatprep.subr.mxu1 %v3813_v32  ;;  %4178 = vmatprep.subr.mxu0 %v3909_v2  ;;  %v3866_v32 = vld [vmem:[%s9958_s7 + $0x270] sm:$0xff]  ;;  %v3963_v34 = vld [vmem:[%s9958_s7 + $0x578] sm:$0xff] }
 0x79d   : > { %4108 = vmatpush1.msra.mxu1 %v3812_v52  ;;  %4179 = vmatpush1.msra.mxu0 %v3908_v8  ;;  %v3864_v52 = vld [vmem:[%s9958_s7 + $0x260] sm:$0xff]  ;;  %v3962_v2 = vld [vmem:[%s9958_s7 + $0x570] sm:$0xff] }
 0x79e   : > { %4109 = vmatprep.subr.mxu1 %v3810_v6  ;;  %4180 = vmatprep.subr.mxu0 %v3906_v31  ;;  %v3863_v6 = vld [vmem:[%s9958_s7 + $0x258] sm:$0xff]  ;;  %v3960_v8 = vld [vmem:[%s9958_s7 + $0x560] sm:$0xff] }
 0x79f   : > { %4110 = vmatpush1.msra.mxu1 %v3809_v15  ;;  %4181 = vmatpush1.msra.mxu0 %v3905_v22  ;;  %v3861_v15 = vld [vmem:[%s9958_s7 + $0x248] sm:$0xff]  ;;  %v3959_v31 = vld [vmem:[%s9958_s7 + $0x558] sm:$0xff] }
 0x7a0   : > { %4111 = vmatprep.subr.mxu1 %v3807_v50  ;;  %4182 = vmatprep.subr.mxu0 %v3903_v53  ;;  %v3860_v50 = vld [vmem:[%s9958_s7 + $0x240] sm:$0xff]  ;;  %v3957_v22 = vld [vmem:[%s9958_s7 + $0x548] sm:$0xff] }
 0x7a1   : > { %4112 = vmatpush1.msra.mxu1 %v3806_v63  ;;  %4183 = vmatpush1.msra.mxu0 %v3902_v60  ;;  %v3858_v63 = vld [vmem:[%s9958_s7 + $0x230] sm:$0xff]  ;;  %v3956_v53 = vld [vmem:[%s9958_s7 + $0x540] sm:$0xff] }
 0x7a2   : > { %4113 = vmatprep.subr.mxu1 %v3804_v4  ;;  %4184 = vmatprep.subr.mxu0 %v3900_v40  ;;  %v3857_v4 = vld [vmem:[%s9958_s7 + $0x228] sm:$0xff]  ;;  %v3954_v60 = vld [vmem:[%s9958_s7 + $0x530] sm:$0xff] }
 0x7a3   : > { %4114 = vmatpush1.msra.mxu1 %v3803_v26  ;;  %4185 = vmatpush1.msra.mxu0 %v3899_v0  ;;  %v3855_v26 = vld [vmem:[%s9958_s7 + $0x218] sm:$0xff]  ;;  %v3953_v40 = vld [vmem:[%s9958_s7 + $0x528] sm:$0xff] }
 0x7a4   : > { %4115 = vmatprep.subr.mxu1 %v3801_v23  ;;  %4186 = vmatprep.subr.mxu0 %v3897_v9  ;;  %v3854_v23 = vld [vmem:[%s9958_s7 + $0x210] sm:$0xff]  ;;  %v3951_v0 = vld [vmem:[%s9958_s7 + $0x518] sm:$0xff] }
 0x7a5   : > { %4116 = vmatpush1.msra.mxu1 %v3800_v45  ;;  %4187 = vmatpush1.msra.mxu0 %v3896_v44  ;;  %v3852_v45 = vld [vmem:[%s9958_s7 + $0x200] sm:$0xff]  ;;  %v3950_v9 = vld [vmem:[%s9958_s7 + $0x510] sm:$0xff] }
 0x7a6   : > { %4117 = vmatprep.subr.mxu1 %v3798_v24  ;;  %4188 = vmatprep.subr.mxu0 %v3894_v37  ;;  %v3851_v24 = vld [vmem:[%s9958_s7 + $0x1f8] sm:$0xff]  ;;  %v3948_v44 = vld [vmem:[%s9958_s7 + $0x500] sm:$0xff] }
 0x7a7   : > { %4118 = vmatpush1.msra.mxu1 %v3797_v19  ;;  %4189 = vmatpush1.msra.mxu0 %v3893_v55  ;;  %v3849_v19 = vld [vmem:[%s9958_s7 + $0x1e8] sm:$0xff]  ;;  %v3947_v37 = vld [vmem:[%s9958_s7 + $0x4f8] sm:$0xff] }
 0x7a8   : > { %4119 = vmatprep.subr.mxu1 %v3795_v36  ;;  %4190 = vmatprep.subr.mxu0 %v3891_v47  ;;  %v3848_v36 = vld [vmem:[%s9958_s7 + $0x1e0] sm:$0xff]  ;;  %v3945_v55 = vld [vmem:[%s9958_s7 + $0x4e8] sm:$0xff] }
 0x7a9   : > { %4120 = vmatpush1.msra.mxu1 %v3794_v57  ;;  %4191 = vmatpush1.msra.mxu0 %v3890_v38  ;;  %v3846_v57 = vld [vmem:[%s9958_s7 + $0x1d0] sm:$0xff]  ;;  %v3944_v47 = vld [vmem:[%s9958_s7 + $0x4e0] sm:$0xff] }
 0x7aa   : > { %4121 = vmatprep.subr.mxu1 %v3792_v51  ;;  %4192 = vmatprep.subr.mxu0 %v3888_v25  ;;  %v3845_v51 = vld [vmem:[%s9958_s7 + $0x1c8] sm:$0xff]  ;;  %v3942_v38 = vld [vmem:[%s9958_s7 + $0x4d0] sm:$0xff] }
 0x7ab   : > { %4122 = vmatpush1.msra.mxu1 %v3791_v11  ;;  %4193 = vmatpush1.msra.mxu0 %v3887_v1  ;;  %v3843_v11 = vld [vmem:[%s9958_s7 + $0x1b8] sm:$0xff]  ;;  %v3941_v25 = vld [vmem:[%s9958_s7 + $0x4c8] sm:$0xff] }
 0x7ac   : > { %4123 = vmatprep.subr.mxu1 %v3789_v56  ;;  %4194 = vmatprep.subr.mxu0 %v3885_v14  ;;  %v3842_v56 = vld [vmem:[%s9958_s7 + $0x1b0] sm:$0xff]  ;;  %v3939_v1 = vld [vmem:[%s9958_s7 + $0x4b8] sm:$0xff] }
 0x7ad   : > { %4124 = vmatpush1.msra.mxu1 %v3788_v27  ;;  %4195 = vmatpush1.msra.mxu0 %v3884_v3  ;;  %v3840_v27 = vld [vmem:[%s9958_s7 + $0x1a0] sm:$0xff]  ;;  %v3938_v14 = vld [vmem:[%s9958_s7 + $0x4b0] sm:$0xff] }
 0x7ae   : > { %4125 = vmatprep.subr.mxu1 %v3882_v13  ;;  %4196 = vmatprep.subr.mxu0 %v3978_v49  ;;  %v3839_v13 = vld [vmem:[%s9958_s7 + $0x198] sm:$0xff]  ;;  %v3936_v3 = vld [vmem:[%s9958_s7 + $0x4a0] sm:$0xff] }
 0x7af   : > { %4126 = vmatpush2.msra.mxu1 %v3881_v43  ;;  %4197 = vmatpush2.msra.mxu0 %v3977_v58  ;;  %v3837_v43 = vld [vmem:[%s9958_s7 + $0x188] sm:$0xff]  ;;  %v3935_v49 = vld [vmem:[%s9958_s7 + $0x498] sm:$0xff]  ;;  %v4026_v58 = vld [vmem:[%s9958_s7 + $0x770] sm:$0xff] }
 0x7b0   : > { %4127 = vmatprep.subr.mxu1 %v3879_v12  ;;  %4198 = vmatprep.subr.mxu0 %v3975_v7  ;;  %v3836_v12 = vld [vmem:[%s9958_s7 + $0x180] sm:$0xff]  ;;  %v3883_v7 = vld [vmem:[%s9958_s7 + $0x2f8] sm:$0xff] }
 0x7b1   : > { %4128 = vmatpush2.msra.mxu1 %v3878_v30  ;;  %4199 = vmatpush2.msra.mxu0 %v3974_v59  ;;  %v3933_v30 = vld [vmem:[%s9958_s7 + $0x488] sm:$0xff] }
 0x7b2   : > { %4129 = vmatprep.subr.mxu1 %v3876_v35  ;;  %4200 = vmatprep.subr.mxu0 %v3972_v39  ;;  %v3932_v35 = vld [vmem:[%s9958_s7 + $0x480] sm:$0xff] }
 0x7b3   : > { %4130 = vmatpush2.msra.mxu1 %v3875_v48  ;;  %4201 = vmatpush2.msra.mxu0 %v3971_v46 }
 0x7b4   : > { %4131 = vmatprep.subr.mxu1 %v3873_v61  ;;  %4202 = vmatprep.subr.mxu0 %v3969_v33  ;;  %v10602_v61 = vld [vmem:[#allocation65_spill] sm:$0xff] }
 0x7b5   : > { %4132 = vmatpush2.msra.mxu1 %v3872_v10  ;;  %4203 = vmatpush2.msra.mxu0 %v3968_v18  ;;  %v10604_v18 = vld [vmem:[#allocation70_spill] sm:$0xff] }
 0x7b6   : > { %4133 = vmatprep.subr.mxu1 %v3870_v54  ;;  %4204 = vmatprep.subr.mxu0 %v3966_v28  ;;  %v10603_v54 = vld [vmem:[#allocation64_spill] sm:$0xff]  ;;  %v10605_v28 = vld [vmem:[#allocation66_spill] sm:$0xff] }
 0x7b7   : > { %4134 = vmatpush2.msra.mxu1 %v3869_v5  ;;  %4205 = vmatpush2.msra.mxu0 %v3965_v62 }
 0x7b8   : > { %4135 = vmatprep.subr.mxu1 %v3867_v41  ;;  %4206 = vmatprep.subr.mxu0 %v3963_v34 }
 0x7b9   : > { %4136 = vmatpush2.msra.mxu1 %v3866_v32  ;;  %4207 = vmatpush2.msra.mxu0 %v3962_v2 }
 0x7ba   : > { %4137 = vmatprep.subr.mxu1 %v3864_v52  ;;  %4208 = vmatprep.subr.mxu0 %v3960_v8 }
 0x7bb   : > { %4138 = vmatpush2.msra.mxu1 %v3863_v6  ;;  %4209 = vmatpush2.msra.mxu0 %v3959_v31 }
 0x7bc   : > { %4139 = vmatprep.subr.mxu1 %v3861_v15  ;;  %4210 = vmatprep.subr.mxu0 %v3957_v22 }
 0x7bd   : > { %4140 = vmatpush2.msra.mxu1 %v3860_v50  ;;  %4211 = vmatpush2.msra.mxu0 %v3956_v53  ;;  %v10606_v50 = vld [vmem:[#allocation82_spill] sm:$0xff] }
 0x7be   : > { %4141 = vmatprep.subr.mxu1 %v3858_v63  ;;  %4212 = vmatprep.subr.mxu0 %v3954_v60  ;;  %v10607_v63 = vld [vmem:[#allocation83_spill] sm:$0xff]  ;;  %v10608_v60 = vld [vmem:[#allocation37_spill] sm:$0xff] }
 0x7bf   : > { %4142 = vmatpush2.msra.mxu1 %v3857_v4  ;;  %4213 = vmatpush2.msra.mxu0 %v3953_v40 }
 0x7c0   : > { %4143 = vmatprep.subr.mxu1 %v3855_v26  ;;  %4214 = vmatprep.subr.mxu0 %v3951_v0 }
 0x7c1   : > { %4144 = vmatpush2.msra.mxu1 %v3854_v23  ;;  %4215 = vmatpush2.msra.mxu0 %v3950_v9 }
 0x7c2   : > { %4145 = vmatprep.subr.mxu1 %v3852_v45  ;;  %4216 = vmatprep.subr.mxu0 %v3948_v44 }
 0x7c3   : > { %4146 = vmatpush2.msra.mxu1 %v3851_v24  ;;  %4217 = vmatpush2.msra.mxu0 %v3947_v37  ;;  %v10609_v24 = vld [vmem:[#allocation63_spill] sm:$0xff] }
 0x7c4   : > { %4147 = vmatprep.subr.mxu1 %v3849_v19  ;;  %4218 = vmatprep.subr.mxu0 %v3945_v55  ;;  %v10610_v19 = vld [vmem:[#allocation67_spill] sm:$0xff] }
 0x7c5   : > { %4148 = vmatpush2.msra.mxu1 %v3848_v36  ;;  %4219 = vmatpush2.msra.mxu0 %v3944_v47 }
 0x7c6   : > { %4149 = vmatprep.subr.mxu1 %v3846_v57  ;;  %4220 = vmatprep.subr.mxu0 %v3942_v38 }
 0x7c7   : > { %4150 = vmatpush2.msra.mxu1 %v3845_v51  ;;  %4221 = vmatpush2.msra.mxu0 %v3941_v25 }
 0x7c8   : > { %4151 = vmatprep.subr.mxu1 %v3843_v11  ;;  %4222 = vmatprep.subr.mxu0 %v3939_v1 }
 0x7c9   : > { %4152 = vmatpush2.msra.mxu1 %v3842_v56  ;;  %4223 = vmatpush2.msra.mxu0 %v3938_v14  ;;  %v10611_v14 = vld [vmem:[#allocation68_spill] sm:$0xff] }
 0x7ca   : > { %4153 = vmatprep.subr.mxu1 %v3840_v27  ;;  %4224 = vmatprep.subr.mxu0 %v3936_v3  ;;  %v10612_v3 = vld [vmem:[#allocation84_spill] sm:$0xff] }
 0x7cb   : > { %4154 = vmatpush2.msra.mxu1 %v3839_v13  ;;  %4225 = vmatpush2.msra.mxu0 %v3935_v49 }
 0x7cc   : > { %4155 = vmatprep.subr.mxu1 %v3837_v43  ;;  %4226 = vmatprep.subr.mxu0 %v3933_v30  ;;  %v10614_v30 = vld [vmem:[#allocation88_spill] sm:$0xff] }
 0x7cd   : > { %4156 = vmatpush2.msra.mxu1 %v3836_v12  ;;  %4227 = vmatpush2.msra.mxu0 %v3932_v35  ;;  %v10613_v12 = vld [vmem:[#allocation40_spill] sm:$0xff] }
 0x7ce   : > { %4235 = vmatprep.subr.mxu1 %v4026_v58  ;;  %4949 = vmatprep.subr.mxu0 %v3883_v7  ;;  %v1780_v49 = vadd.f32 %v10613_v12, %v10612_v3  ;;  %v10615_v58 = vld [vmem:[#allocation8_spill] sm:$0xff] }
 0x7cf   : > { %v1779_v35 = vmax.f32 %v10615_v58, %v10614_v30  ;;  %v1781_v7 = vadd.f32 %v10614_v30, %v10615_v58  ;;  %v4008_v30 = vld [vmem:[%s9958_s7 + $0x6e0] sm:$0xff] }
 0x7d0   : > { %v3868_v58 = vld [vmem:[%s9958_s7 + $0x280] sm:$0xff] }
 0x82c   : > { %v3524_v48 = vpop.f32.mrf.mxu1  ;;  %v3595_v59 = vpop.f32.mrf.mxu0 }
 0x82d   : > { %v3525_v39 = vadd.f32 %v3524_v48, %v10602_v61  ;;  %v3596_v22 = vadd.f32 %v3595_v59, %v10607_v63  ;;  %v1778_v48 = vmax.f32 %v10612_v3, %v10613_v12  ;;  %v10616_v59 = vld [vmem:[#allocation44_spill] sm:$0xff]  ;;  %v10617_v61 = vld [vmem:[#allocation43_spill] sm:$0xff]  ;;  %v4010_v12 = vld [vmem:[%s9958_s7 + $0x6f0] sm:$0xff] }
 0x82e   : > { %v3526_v10 = vpop.f32.mrf.mxu1  ;;  %v5578_v46 = vpop.f32.mrf.mxu0  ;;  %v3871_v3 = vld [vmem:[%s9958_s7 + $0x298] sm:$0xff] }
 0x82f   : > { %v3599_v33 = vadd.f32 %v3525_v39, %v10603_v54  ;;  %v3527_v41 = vadd.f32 %v3526_v10, %v10604_v18  ;;  %v2113_v39 = vmax.f32 %v1779_v35, %v10617_v61  ;;  %v2115_v10 = vadd.f32 %v10617_v61, %v1781_v7  ;;  %v10619_v18 = vld [vmem:[#allocation9_spill] sm:$0xff]  ;;  %v4007_v35 = vld [vmem:[%s9958_s7 + $0x6d8] sm:$0xff]  ;;  %v3820_v7 = vld [vmem:[%s9958_s7 + $0x100] sm:$0xff] }
 0x830   : > { %v2112_v54 = vmax.f32 %v1778_v48, %v10616_v59  ;;  %v4005_v48 = vld [vmem:[%s9958_s7 + $0x6c8] sm:$0xff] }
 0x831   : > { %v4669_v5 = vmul.f32 -1.442695, %v3599_v33  ;;  %v3606_v32 = vadd.f32 %v3527_v41, %v10605_v28  ;;  %v10618_v33 = vld [vmem:[#allocation79_spill] sm:$0xff]  ;;  %v2447_v41 = vmax.f32 %v2113_v39, %v10619_v18  ;;  %v2449_v28 = vadd.f32 %v10619_v18, %v2115_v10  ;;  %v3817_v61 = vld [vmem:[%s9958_s7 + $0xe8] sm:$0xff]  ;;  %v4002_v39 = vld [vmem:[%s9958_s7 + $0x6b0] sm:$0xff] }
 0x832   : > { %v3862_v10 = vld [vmem:[%s9958_s7 + $0x250] sm:$0xff] }
 0x833   : > { %5793 = vpow2.f32 %v4669_v5  ;;  %v4670_v62 = vmul.f32 -1.442695, %v3606_v32  ;;  %v2446_v32 = vmax.f32 %v2112_v54, %v10618_v33  ;;  %v3814_v54 = vld [vmem:[%s9958_s7 + $0xd0] sm:$0xff] }
 0x834   : > { %v3998_v18 = vld [vmem:[%s9958_s7 + $0x690] sm:$0xff] }
 0x835   : > { %5795 = vpow2.f32 %v4670_v62  ;;  %v10620_v62 = vld [vmem:[#allocation50_spill] sm:$0xff] }
 0x840   : > { %v5794_v52 = vpop.eup %5793 }
 0x841   : > { %v3603_v34 = vadd.f32 1.0, %v5794_v52 }
 0x842   : > { %v5796_v6 = vpop.eup %5795 }
 0x843   : > { %5797 = vrcp.f32 %v3603_v34  ;;  %v3610_v2 = vadd.f32 1.0, %v5796_v6  ;;  %v10621_v34 = vld [vmem:[#allocation46_spill] sm:$0xff] }
 0x844   : > { %v2781_v6 = vmax.f32 %v2447_v41, %v10621_v34  ;;  %v3811_v41 = vld [vmem:[%s9958_s7 + $0xb8] sm:$0xff] }
 0x845   : > { %5799 = vrcp.f32 %v3610_v2 }
 0x846   : > { %v3115_v63 = vmax.f32 %v2781_v6, %v10598_v29  ;;  %v3853_v6 = vld [vmem:[%s9958_s7 + $0x208] sm:$0xff] }
 0x84d   : > { %v3686_v15 = vpop.f32.mrf.mxu1  ;;  %v3757_v8 = vpop.f32.mrf.mxu0 }
 0x84e   : > { %v3687_v31 = vadd.f32 %v3686_v15, %v10606_v50  ;;  %v3758_v27 = vadd.f32 %v3757_v8, %v7320_v21  ;;  %v2114_v21 = vadd.f32 %v10616_v59, %v1780_v49  ;;  %v2783_v15 = vadd.f32 %v10621_v34, %v2449_v28  ;;  %v3823_v49 = vld [vmem:[%s9958_s7 + $0x118] sm:$0xff]  ;;  %v3865_v59 = vld [vmem:[%s9958_s7 + $0x268] sm:$0xff]  ;;  %v3996_v28 = vld [vmem:[%s9958_s7 + $0x680] sm:$0xff] }
 0x84f   : > { %v3688_v4 = vpop.f32.mrf.mxu1  ;;  %v5613_v53 = vpop.f32.mrf.mxu0  ;;  %v2780_v50 = vmax.f32 %v2446_v32, %v10620_v62  ;;  %v3856_v32 = vld [vmem:[%s9958_s7 + $0x220] sm:$0xff]  ;;  %v3993_v34 = vld [vmem:[%s9958_s7 + $0x668] sm:$0xff] }
 0x850   : > { %v5798_v26 = vpop.eup %5797  ;;  %v3761_v23 = vadd.f32 %v3687_v31, %v10608_v60  ;;  %v3689_v0 = vadd.f32 %v3688_v4, %v7300_v42  ;;  %v2448_v5 = vadd.f32 %v10618_v33, %v2114_v21  ;;  %v3117_v53 = vadd.f32 %v10598_v29, %v2783_v15  ;;  %v4004_v21 = vld [vmem:[%s9958_s7 + $0x6c0] sm:$0xff]  ;;  %v3999_v33 = vld [vmem:[%s9958_s7 + $0x698] sm:$0xff]  ;;  %v3805_v15 = vld [vmem:[%s9958_s7 + $0x88] sm:$0xff] }
 0x851   : > { %v3613_v40 = vmul.f32 %v5798_v26, %v3596_v22  ;;  %v3114_v26 = vmax.f32 %v2780_v50, %v8730_v16  ;;  %v3449_v60 = vmax.f32 %v3115_v63, %v8987_v17  ;;  %v3850_v50 = vld [vmem:[%s9958_s7 + $0x1f0] sm:$0xff] }
 0x852   : > { %v4671_v45 = vmul.f32 -1.442695, %v3761_v23  ;;  %v3768_v44 = vadd.f32 %v3689_v0, %v10610_v19  ;;  %v5800_v37 = vpop.eup %5799  ;;  %v2782_v52 = vadd.f32 %v10620_v62, %v2448_v5  ;;  %v3859_v5 = vld [vmem:[%s9958_s7 + $0x238] sm:$0xff]  ;;  %v3802_v63 = vld [vmem:[%s9958_s7 + $0x70] sm:$0xff] }
 0x853   : > { %v3614_v9 = vadd.f32 %v3613_v40, %v10609_v24  ;;  %v3616_v55 = vsub.f32 1.0, %v5800_v37  ;;  %v3618_v38 = vmul.f32 %v5800_v37, %v8918_v20  ;;  %v3451_v40 = vadd.f32 %v8987_v17, %v3117_v53  ;;  %v3835_v37 = vld [vmem:[%s9958_s7 + $0x178] sm:$0xff]  ;;  %v3986_v53 = vld [vmem:[%s9958_s7 + $0x630] sm:$0xff] }
 0x854   : > { %5801 = vpow2.f32 %v4671_v45  ;;  %v4672_v36 = vmul.f32 -1.442695, %v3768_v44  ;;  %v3116_v31 = vadd.f32 %v8730_v16, %v2782_v52  ;;  %v3448_v0 = vmax.f32 %v3114_v26, %v8918_v20  ;;  %v4025_v16 = vld [vmem:[%s9958_s7 + $0x768] sm:$0xff]  ;;  %v3995_v62 = vld [vmem:[%s9958_s7 + $0x678] sm:$0xff]  ;;  %v3808_v52 = vld [vmem:[%s9958_s7 + $0xa0] sm:$0xff] }
 0x855   : > { %5803 = vtanh.f32 %v3614_v9  ;;  %v3799_v26 = vld [vmem:[%s9958_s7 + $0x58] sm:$0xff] }
 0x856   : > { %5805 = vpow2.f32 %v4672_v36  ;;  %v3450_v45 = vadd.f32 %v8918_v20, %v3116_v31  ;;  %v4023_v20 = vld [vmem:[%s9958_s7 + $0x758] sm:$0xff]  ;;  %v3989_v31 = vld [vmem:[%s9958_s7 + $0x648] sm:$0xff] }
 0x861   : > { %v5802_v57 = vpop.eup %5801 }
 0x862   : > { %v5804_v51 = vpop.eup %5803  ;;  %v3765_v47 = vadd.f32 1.0, %v5802_v57  ;;  %v4020_v57 = vld [vmem:[%s9958_s7 + $0x740] sm:$0xff] }
 0x863   : > { %v3617_v11 = vmul.f32 %v5804_v51, %v3616_v55  ;;  %v5806_v42 = vpop.eup %5805  ;;  %v3880_v55 = vld [vmem:[%s9958_s7 + $0x2e0] sm:$0xff]  ;;  %v4019_v51 = vld [vmem:[%s9958_s7 + $0x738] sm:$0xff] }
 0x864   : > { %5807 = vrcp.f32 %v3765_v47  ;;  %v3772_v25 = vadd.f32 1.0, %v5806_v42  ;;  %v3832_v47 = vld [vmem:[%s9958_s7 + $0x160] sm:$0xff] }
 0x865   : > { %v9395_v56 = vadd.f32 %v3618_v38, %v3617_v11  ;;  %v4017_v11 = vld [vmem:[%s9958_s7 + $0x728] sm:$0xff]  ;;  %v4016_v42 = vld [vmem:[%s9958_s7 + $0x720] sm:$0xff] }
 0x866   : > { %5809 = vrcp.f32 %v3772_v25  ;;  %v3877_v38 = vld [vmem:[%s9958_s7 + $0x2c8] sm:$0xff] }
 0x867   : > { %v3784_v19 = vadd.f32 %v9395_v56, %v3450_v45  ;;  %v9434_v29 = vmax.f32 %v3448_v0, %v9395_v56  ;;  %v3829_v25 = vld [vmem:[%s9958_s7 + $0x148] sm:$0xff]  ;;  %v3983_v45 = vld [vmem:[%s9958_s7 + $0x618] sm:$0xff]  ;;  %v3796_v0 = vld [vmem:[%s9958_s7 + $0x40] sm:$0xff] }
 0x869   : > { %v9449_v36 = vmul.f32 0.125, %v3784_v19  ;;  %v3980_v19 = vld [vmem:[%s9958_s7 + $0x600] sm:$0xff] }
 0x871   : > { %v5808_v1 = vpop.eup %5807 }
 0x872   : > { %v3775_v13 = vmul.f32 %v5808_v1, %v3758_v27  ;;  %v4014_v27 = vld [vmem:[%s9958_s7 + $0x710] sm:$0xff] }
 0x873   : > { %v5810_v46 = vpop.eup %5809  ;;  %v3874_v1 = vld [vmem:[%s9958_s7 + $0x2b0] sm:$0xff] }
 0x874   : > { %v3776_v43 = vadd.f32 %v3775_v13, %v10611_v14  ;;  %v3778_v2 = vsub.f32 1.0, %v5810_v46  ;;  %v3780_v4 = vmul.f32 %v5810_v46, %v8987_v17  ;;  %v4022_v17 = vld [vmem:[%s9958_s7 + $0x750] sm:$0xff]  ;;  %v4013_v13 = vld [vmem:[%s9958_s7 + $0x708] sm:$0xff] }
 0x875   : > { %v3826_v14 = vld [vmem:[%s9958_s7 + $0x130] sm:$0xff]  ;;  %v4001_v46 = vld [vmem:[%s9958_s7 + $0x6a8] sm:$0xff] }
 0x876   : > { %5811 = vtanh.f32 %v3776_v43  ;;  %v4011_v43 = vld [vmem:[%s9958_s7 + $0x6f8] sm:$0xff] }
 0x883   : > { %v5812_v8 = vpop.eup %5811 }
 0x884   : > { %v3779_v22 = vmul.f32 %v5812_v8, %v3778_v2  ;;  %v3992_v2 = vld [vmem:[%s9958_s7 + $0x660] sm:$0xff]  ;;  %v3990_v8 = vld [vmem:[%s9958_s7 + $0x650] sm:$0xff] }
 0x886   : > { %v9425_v23 = vadd.f32 %v3780_v4, %v3779_v22  ;;  %v3987_v22 = vld [vmem:[%s9958_s7 + $0x638] sm:$0xff] }
 0x887   : > { %v3847_v4 = vld [vmem:[%s9958_s7 + $0x1d8] sm:$0xff] }
 0x888   : > { %v3783_v24 = vmax.f32 %v3449_v60, %v9425_v23  ;;  %v3785_v9 = vadd.f32 %v9425_v23, %v3451_v40  ;;  %v3984_v60 = vld [vmem:[%s9958_s7 + $0x620] sm:$0xff] }
 0x889   : > { %v3844_v40 = vld [vmem:[%s9958_s7 + $0x1c0] sm:$0xff] }
 0x88a   : > { %4157 = vmatprep.mubr.f32.mxu1 %v3783_v24  ;;  %v9439_v44 = vmul.f32 0.125, %v3785_v9  ;;  %v3841_v9 = vld [vmem:[%s9958_s7 + $0x1a8] sm:$0xff] }
 0x88b   : > { %4158 = vmatmul.mubr.f32.vlgmr.msra.gmra.mxu1 %v9434_v29 }
 0x88c   : > { %4236 = vmatpush1.msra.mxu1 %v4025_v16  ;;  %4228 = vmatprep.mubr.f32.mxu0 %v9439_v44  ;;  %v3793_v16 = vld [vmem:[%s9958_s7 + $0x28] sm:$0xff] }
 0x88d   : > { %4237 = vmatprep.subr.mxu1 %v4023_v20  ;;  %4299 = vmatprep.mubr.f32.mxu1 %v9425_v23  ;;  %v4074_v20 = vld [vmem:[%s9958_s7 + $0x8f0] sm:$0xff] }
 0x88e   : > { %4229 = vmatmul.mubr.f32.vlgmr.msra.gmra.mxu0 %v9449_v36  ;;  %4238 = vmatpush1.msra.mxu1 %v4022_v17  ;;  %v3838_v17 = vld [vmem:[%s9958_s7 + $0x190] sm:$0xff] }
 0x88f   : > { %4950 = vmatpush3.msra.mxu0 %v3835_v37  ;;  %4239 = vmatprep.subr.mxu1 %v4020_v57  ;;  %v4073_v37 = vld [vmem:[%s9958_s7 + $0x8e8] sm:$0xff]  ;;  %v3790_v57 = vld [vmem:[%s9958_s7 + $0x10] sm:$0xff] }
 0x890   : > { %4951 = vmatprep.subr.mxu0 %v3880_v55  ;;  %4370 = vmatprep.mubr.f32.mxu0 %v3783_v24  ;;  %v3981_v24 = vld [vmem:[%s9958_s7 + $0x608] sm:$0xff]  ;;  %v4071_v55 = vld [vmem:[%s9958_s7 + $0x8d8] sm:$0xff] }
 0x891   : > { %4240 = vmatpush1.msra.mxu1 %v4019_v51  ;;  %4952 = vmatpush3.msra.mxu0 %v3832_v47  ;;  %v3979_v51 = vld [vmem:[%s9958_s7 + $0x5f8] sm:$0xff]  ;;  %v4070_v47 = vld [vmem:[%s9958_s7 + $0x8d0] sm:$0xff] }
 0x892   : > { %4241 = vmatprep.subr.mxu1 %v4017_v11  ;;  %4953 = vmatprep.subr.mxu0 %v3877_v38  ;;  %v3931_v11 = vld [vmem:[%s9958_s7 + $0x478] sm:$0xff]  ;;  %v4068_v38 = vld [vmem:[%s9958_s7 + $0x8c0] sm:$0xff] }
 0x893   : > { %4242 = vmatpush1.msra.mxu1 %v4016_v42  ;;  %4954 = vmatpush3.msra.mxu0 %v3829_v25  ;;  %v3976_v42 = vld [vmem:[%s9958_s7 + $0x5e0] sm:$0xff]  ;;  %v4067_v25 = vld [vmem:[%s9958_s7 + $0x8b8] sm:$0xff] }
 0x894   : > { %4243 = vmatprep.subr.mxu1 %v4014_v27  ;;  %4955 = vmatprep.subr.mxu0 %v3874_v1  ;;  %v3928_v27 = vld [vmem:[%s9958_s7 + $0x460] sm:$0xff]  ;;  %v3973_v1 = vld [vmem:[%s9958_s7 + $0x5c8] sm:$0xff] }
 0x895   : > { %4244 = vmatpush1.msra.mxu1 %v4013_v13  ;;  %4956 = vmatpush3.msra.mxu0 %v3826_v14  ;;  %v4064_v13 = vld [vmem:[%s9958_s7 + $0x8a0] sm:$0xff]  ;;  %v3925_v14 = vld [vmem:[%s9958_s7 + $0x448] sm:$0xff] }
 0x896   : > { %4245 = vmatprep.subr.mxu1 %v4011_v43  ;;  %4957 = vmatprep.subr.mxu0 %v3871_v3  ;;  %v3970_v43 = vld [vmem:[%s9958_s7 + $0x5b0] sm:$0xff]  ;;  %v4061_v3 = vld [vmem:[%s9958_s7 + $0x888] sm:$0xff] }
 0x897   : > { %4246 = vmatpush1.msra.mxu1 %v4010_v12  ;;  %4958 = vmatpush3.msra.mxu0 %v3823_v49  ;;  %v3922_v12 = vld [vmem:[%s9958_s7 + $0x430] sm:$0xff]  ;;  %v4059_v49 = vld [vmem:[%s9958_s7 + $0x878] sm:$0xff] }
 0x898   : > { %4247 = vmatprep.subr.mxu1 %v4008_v30  ;;  %4959 = vmatprep.subr.mxu0 %v3868_v58  ;;  %v3967_v30 = vld [vmem:[%s9958_s7 + $0x598] sm:$0xff]  ;;  %v4058_v58 = vld [vmem:[%s9958_s7 + $0x870] sm:$0xff] }
 0x899   : > { %4248 = vmatpush1.msra.mxu1 %v4007_v35  ;;  %4960 = vmatpush3.msra.mxu0 %v3820_v7  ;;  %v3919_v35 = vld [vmem:[%s9958_s7 + $0x418] sm:$0xff]  ;;  %v4056_v7 = vld [vmem:[%s9958_s7 + $0x860] sm:$0xff] }
 0x89a   : > { %4249 = vmatprep.subr.mxu1 %v4005_v48  ;;  %4961 = vmatprep.subr.mxu0 %v3865_v59  ;;  %v3964_v48 = vld [vmem:[%s9958_s7 + $0x580] sm:$0xff]  ;;  %v4055_v59 = vld [vmem:[%s9958_s7 + $0x858] sm:$0xff] }
 0x89b   : > { %4250 = vmatpush1.msra.mxu1 %v4004_v21  ;;  %4962 = vmatpush3.msra.mxu0 %v3817_v61  ;;  %v3916_v21 = vld [vmem:[%s9958_s7 + $0x400] sm:$0xff]  ;;  %v4053_v61 = vld [vmem:[%s9958_s7 + $0x848] sm:$0xff] }
 0x89c   : > { %4251 = vmatprep.subr.mxu1 %v4002_v39  ;;  %4963 = vmatprep.subr.mxu0 %v3862_v10  ;;  %v3961_v39 = vld [vmem:[%s9958_s7 + $0x568] sm:$0xff]  ;;  %v4052_v10 = vld [vmem:[%s9958_s7 + $0x840] sm:$0xff] }
 0x89d   : > { %4252 = vmatpush1.msra.mxu1 %v4001_v46  ;;  %4964 = vmatpush3.msra.mxu0 %v3814_v54  ;;  %v3913_v46 = vld [vmem:[%s9958_s7 + $0x3e8] sm:$0xff]  ;;  %v4050_v54 = vld [vmem:[%s9958_s7 + $0x830] sm:$0xff] }
 0x89e   : > { %4253 = vmatprep.subr.mxu1 %v3999_v33  ;;  %4965 = vmatprep.subr.mxu0 %v3859_v5  ;;  %v3958_v33 = vld [vmem:[%s9958_s7 + $0x550] sm:$0xff]  ;;  %v4049_v5 = vld [vmem:[%s9958_s7 + $0x828] sm:$0xff] }
 0x89f   : > { %4254 = vmatpush1.msra.mxu1 %v3998_v18  ;;  %4966 = vmatpush3.msra.mxu0 %v3811_v41  ;;  %v3910_v18 = vld [vmem:[%s9958_s7 + $0x3d0] sm:$0xff]  ;;  %v4047_v41 = vld [vmem:[%s9958_s7 + $0x818] sm:$0xff] }
 0x8a0   : > { %4255 = vmatprep.subr.mxu1 %v3996_v28  ;;  %4967 = vmatprep.subr.mxu0 %v3856_v32  ;;  %v3955_v28 = vld [vmem:[%s9958_s7 + $0x538] sm:$0xff]  ;;  %v4046_v32 = vld [vmem:[%s9958_s7 + $0x810] sm:$0xff] }
 0x8a1   : > { %4256 = vmatpush1.msra.mxu1 %v3995_v62  ;;  %4968 = vmatpush3.msra.mxu0 %v3808_v52  ;;  %v3907_v62 = vld [vmem:[%s9958_s7 + $0x3b8] sm:$0xff]  ;;  %v4044_v52 = vld [vmem:[%s9958_s7 + $0x800] sm:$0xff] }
 0x8a2   : > { %4257 = vmatprep.subr.mxu1 %v3993_v34  ;;  %4969 = vmatprep.subr.mxu0 %v3853_v6  ;;  %v3952_v34 = vld [vmem:[%s9958_s7 + $0x520] sm:$0xff]  ;;  %v4043_v6 = vld [vmem:[%s9958_s7 + $0x7f8] sm:$0xff] }
 0x8a3   : > { %4258 = vmatpush1.msra.mxu1 %v3992_v2  ;;  %4970 = vmatpush3.msra.mxu0 %v3805_v15  ;;  %v3904_v2 = vld [vmem:[%s9958_s7 + $0x3a0] sm:$0xff]  ;;  %v4041_v15 = vld [vmem:[%s9958_s7 + $0x7e8] sm:$0xff] }
 0x8a4   : > { %4259 = vmatprep.subr.mxu1 %v3990_v8  ;;  %4971 = vmatprep.subr.mxu0 %v3850_v50  ;;  %v3949_v8 = vld [vmem:[%s9958_s7 + $0x508] sm:$0xff]  ;;  %v4040_v50 = vld [vmem:[%s9958_s7 + $0x7e0] sm:$0xff] }
 0x8a5   : > { %4260 = vmatpush1.msra.mxu1 %v3989_v31  ;;  %4972 = vmatpush3.msra.mxu0 %v3802_v63  ;;  %v3901_v31 = vld [vmem:[%s9958_s7 + $0x388] sm:$0xff]  ;;  %v4038_v63 = vld [vmem:[%s9958_s7 + $0x7d0] sm:$0xff] }
 0x8a6   : > { %4261 = vmatprep.subr.mxu1 %v3987_v22  ;;  %4973 = vmatprep.subr.mxu0 %v3847_v4  ;;  %v3946_v22 = vld [vmem:[%s9958_s7 + $0x4f0] sm:$0xff]  ;;  %v4037_v4 = vld [vmem:[%s9958_s7 + $0x7c8] sm:$0xff] }
 0x8a7   : > { %4262 = vmatpush1.msra.mxu1 %v3986_v53  ;;  %4974 = vmatpush3.msra.mxu0 %v3799_v26  ;;  %v3898_v53 = vld [vmem:[%s9958_s7 + $0x370] sm:$0xff]  ;;  %v4035_v26 = vld [vmem:[%s9958_s7 + $0x7b8] sm:$0xff] }
 0x8a8   : > { %4263 = vmatprep.subr.mxu1 %v3984_v60  ;;  %4975 = vmatprep.subr.mxu0 %v3844_v40  ;;  %v3943_v60 = vld [vmem:[%s9958_s7 + $0x4d8] sm:$0xff]  ;;  %v4034_v40 = vld [vmem:[%s9958_s7 + $0x7b0] sm:$0xff] }
 0x8a9   : > { %4264 = vmatpush1.msra.mxu1 %v3983_v45  ;;  %4976 = vmatpush3.msra.mxu0 %v3796_v0  ;;  %v3895_v45 = vld [vmem:[%s9958_s7 + $0x358] sm:$0xff]  ;;  %v4032_v0 = vld [vmem:[%s9958_s7 + $0x7a0] sm:$0xff] }
 0x8aa   : > { %4265 = vmatprep.subr.mxu1 %v3981_v24  ;;  %4977 = vmatprep.subr.mxu0 %v3841_v9  ;;  %v3940_v24 = vld [vmem:[%s9958_s7 + $0x4c0] sm:$0xff]  ;;  %v4031_v9 = vld [vmem:[%s9958_s7 + $0x798] sm:$0xff] }
 0x8ab   : > { %4266 = vmatpush1.msra.mxu1 %v3980_v19  ;;  %4978 = vmatpush3.msra.mxu0 %v3793_v16  ;;  %v3892_v19 = vld [vmem:[%s9958_s7 + $0x340] sm:$0xff]  ;;  %v4029_v16 = vld [vmem:[%s9958_s7 + $0x788] sm:$0xff] }
 0x8ac   : > { %4267 = vmatprep.subr.mxu1 %v4074_v20  ;;  %4979 = vmatprep.subr.mxu0 %v3838_v17  ;;  %v3937_v20 = vld [vmem:[%s9958_s7 + $0x4a8] sm:$0xff]  ;;  %v4028_v17 = vld [vmem:[%s9958_s7 + $0x780] sm:$0xff] }
 0x8ad   : > { %4268 = vmatpush2.msra.mxu1 %v4073_v37  ;;  %4980 = vmatpush3.msra.mxu0 %v3790_v57  ;;  %v3889_v37 = vld [vmem:[%s9958_s7 + $0x328] sm:$0xff]  ;;  %v3934_v57 = vld [vmem:[%s9958_s7 + $0x490] sm:$0xff] }
 0x8ae   : > { %4269 = vmatprep.subr.mxu1 %v4071_v55  ;;  %4371 = vmatmul.mubr.f32.vlgmr.msra.gmra.mxu0 %v9434_v29  ;;  %v4065_v29 = vld [vmem:[%s9958_s7 + $0x8a8] sm:$0xff]  ;;  %v4075_v55 = vld [vmem:[%s9958_s7 + $0x8f8] sm:$0xff] }
 0x8af   : > { %4984 = vmatprep.subr.mxu0 %v3979_v51  ;;  %4270 = vmatpush2.msra.mxu1 %v4070_v47  ;;  %v3886_v51 = vld [vmem:[%s9958_s7 + $0x310] sm:$0xff]  ;;  %v4027_v47 = vld [vmem:[%s9958_s7 + $0x778] sm:$0xff] }
 0x8b0   : > { %4985 = vmatpush3.msra.mxu0 %v3931_v11  ;;  %4440 = vmatprep.mubr.f32.mxu0 %v9439_v44  ;;  %v4062_v44 = vld [vmem:[%s9958_s7 + $0x890] sm:$0xff]  ;;  %v4072_v11 = vld [vmem:[%s9958_s7 + $0x8e0] sm:$0xff] }
 0x8b1   : > { %4271 = vmatprep.subr.mxu1 %v4068_v38  ;;  %4986 = vmatprep.subr.mxu0 %v3976_v42  ;;  %v4024_v38 = vld [vmem:[%s9958_s7 + $0x760] sm:$0xff]  ;;  %v4069_v42 = vld [vmem:[%s9958_s7 + $0x8c8] sm:$0xff] }
 0x8b2   : > { %4272 = vmatpush2.msra.mxu1 %v4067_v25  ;;  %4987 = vmatpush3.msra.mxu0 %v3928_v27  ;;  %v4021_v25 = vld [vmem:[%s9958_s7 + $0x748] sm:$0xff]  ;;  %v4066_v27 = vld [vmem:[%s9958_s7 + $0x8b0] sm:$0xff] }
 0x8b3   : > { %4273 = vmatprep.subr.mxu1 %v4065_v29  ;;  %4988 = vmatprep.subr.mxu0 %v3973_v1  ;;  %v4015_v29 = vld [vmem:[%s9958_s7 + $0x718] sm:$0xff]  ;;  %v4060_v1 = vld [vmem:[%s9958_s7 + $0x880] sm:$0xff] }
 0x8b4   : > { %4274 = vmatpush2.msra.mxu1 %v4064_v13  ;;  %4989 = vmatpush3.msra.mxu0 %v3925_v14  ;;  %v4012_v13 = vld [vmem:[%s9958_s7 + $0x700] sm:$0xff]  ;;  %v4057_v14 = vld [vmem:[%s9958_s7 + $0x868] sm:$0xff] }
 0x8b5   : > { %4275 = vmatprep.subr.mxu1 %v4062_v44  ;;  %4990 = vmatprep.subr.mxu0 %v3970_v43  ;;  %v4009_v44 = vld [vmem:[%s9958_s7 + $0x6e8] sm:$0xff]  ;;  %v4054_v43 = vld [vmem:[%s9958_s7 + $0x850] sm:$0xff] }
 0x8b6   : > { %4276 = vmatpush2.msra.mxu1 %v4061_v3  ;;  %4991 = vmatpush3.msra.mxu0 %v3922_v12  ;;  %v4006_v3 = vld [vmem:[%s9958_s7 + $0x6d0] sm:$0xff]  ;;  %v4051_v12 = vld [vmem:[%s9958_s7 + $0x838] sm:$0xff] }
 0x8b7   : > { %4277 = vmatprep.subr.mxu1 %v4059_v49  ;;  %4992 = vmatprep.subr.mxu0 %v3967_v30  ;;  %v4003_v49 = vld [vmem:[%s9958_s7 + $0x6b8] sm:$0xff]  ;;  %v4048_v30 = vld [vmem:[%s9958_s7 + $0x820] sm:$0xff] }
 0x8b8   : > { %4278 = vmatpush2.msra.mxu1 %v4058_v58  ;;  %4993 = vmatpush3.msra.mxu0 %v3919_v35  ;;  %v4000_v58 = vld [vmem:[%s9958_s7 + $0x6a0] sm:$0xff]  ;;  %v4045_v35 = vld [vmem:[%s9958_s7 + $0x808] sm:$0xff] }
 0x8b9   : > { %4279 = vmatprep.subr.mxu1 %v4056_v7  ;;  %4994 = vmatprep.subr.mxu0 %v3964_v48  ;;  %v3997_v7 = vld [vmem:[%s9958_s7 + $0x688] sm:$0xff]  ;;  %v4042_v48 = vld [vmem:[%s9958_s7 + $0x7f0] sm:$0xff] }
 0x8ba   : > { %4280 = vmatpush2.msra.mxu1 %v4055_v59  ;;  %4995 = vmatpush3.msra.mxu0 %v3916_v21  ;;  %v3994_v59 = vld [vmem:[%s9958_s7 + $0x670] sm:$0xff]  ;;  %v4039_v21 = vld [vmem:[%s9958_s7 + $0x7d8] sm:$0xff] }
 0x8bb   : > { %4281 = vmatprep.subr.mxu1 %v4053_v61  ;;  %4996 = vmatprep.subr.mxu0 %v3961_v39  ;;  %v3991_v61 = vld [vmem:[%s9958_s7 + $0x658] sm:$0xff]  ;;  %v4036_v39 = vld [vmem:[%s9958_s7 + $0x7c0] sm:$0xff] }
 0x8bc   : > { %4282 = vmatpush2.msra.mxu1 %v4052_v10  ;;  %4997 = vmatpush3.msra.mxu0 %v3913_v46  ;;  %v3988_v10 = vld [vmem:[%s9958_s7 + $0x640] sm:$0xff]  ;;  %v4033_v46 = vld [vmem:[%s9958_s7 + $0x7a8] sm:$0xff] }
 0x8bd   : > { %4283 = vmatprep.subr.mxu1 %v4050_v54  ;;  %4998 = vmatprep.subr.mxu0 %v3958_v33  ;;  %v3985_v54 = vld [vmem:[%s9958_s7 + $0x628] sm:$0xff]  ;;  %v4030_v33 = vld [vmem:[%s9958_s7 + $0x790] sm:$0xff] }
 0x8be   : > { %4284 = vmatpush2.msra.mxu1 %v4049_v5  ;;  %4999 = vmatpush3.msra.mxu0 %v3910_v18  ;;  %v3982_v5 = vld [vmem:[%s9958_s7 + $0x610] sm:$0xff] }
 0x8bf   : > { %4285 = vmatprep.subr.mxu1 %v4047_v41  ;;  %5000 = vmatprep.subr.mxu0 %v3955_v28 }
 0x8c0   : > { %4286 = vmatpush2.msra.mxu1 %v4046_v32  ;;  %5001 = vmatpush3.msra.mxu0 %v3907_v62  ;;  %v4076_v32 = vld [vmem:[%s9959_s8] sm:$0x7] }
 0x8c1   : > { %4287 = vmatprep.subr.mxu1 %v4044_v52  ;;  %5002 = vmatprep.subr.mxu0 %v3952_v34  ;;  %v10622_v52 = vld [vmem:[#allocation38_spill] sm:$0xff] }
 0x8c2   : > { %4288 = vmatpush2.msra.mxu1 %v4043_v6  ;;  %5003 = vmatpush3.msra.mxu0 %v3904_v2  ;;  %v4085_v34 = vrot.slane %v4076_v32, %v10622_v52  ;;  %v10623_v2 = vld [vmem:[#allocation36_spill] sm:$0xff] }
 0x8c3   : > { %4289 = vmatprep.subr.mxu1 %v4041_v15  ;;  %5004 = vmatprep.subr.mxu0 %v3949_v8  ;;  %v4081_v15 = vrot.slane %v4076_v32, %v10623_v2 }
 0x8c4   : > { %4290 = vmatpush2.msra.mxu1 %v4040_v50  ;;  %5005 = vmatpush3.msra.mxu0 %v3901_v31 }
 0x8c5   : > { %4291 = vmatprep.subr.mxu1 %v4038_v63  ;;  %5006 = vmatprep.subr.mxu0 %v3946_v22 }
 0x8c6   : > { %4292 = vmatpush2.msra.mxu1 %v4037_v4  ;;  %5007 = vmatpush3.msra.mxu0 %v3898_v53 }
 0x8c7   : > { %4293 = vmatprep.subr.mxu1 %v4035_v26  ;;  %5008 = vmatprep.subr.mxu0 %v3943_v60  ;;  %v10624_v60 = vld [vmem:[#allocation35_spill] sm:$0xff] }
 0x8c8   : > { %4294 = vmatpush2.msra.mxu1 %v4034_v40  ;;  %5009 = vmatpush3.msra.mxu0 %v3895_v45  ;;  %v4089_v40 = vrot.slane %v4076_v32, %v10624_v60 }
 0x8c9   : > { %4295 = vmatprep.subr.mxu1 %v4032_v0  ;;  %5010 = vmatprep.subr.mxu0 %v3940_v24 }
 0x8ca   : > { %4296 = vmatpush2.msra.mxu1 %v4031_v9  ;;  %5011 = vmatpush3.msra.mxu0 %v3892_v19  ;;  %v4519_v19 = vld [vmem:[%s9960_s9] sm:$0x7] }
 0x8cb   : > { %4297 = vmatprep.subr.mxu1 %v4029_v16  ;;  %5012 = vmatprep.subr.mxu0 %v3937_v20 }
 0x8cc   : > { %4298 = vmatpush2.msra.mxu1 %v4028_v17  ;;  %5013 = vmatpush3.msra.mxu0 %v3889_v37  ;;  %v4528_v37 = vrot.slane %v4519_v19, %v10622_v52 }
 0x8cd   : > { %4300 = vmatmul.mubr.f32.vlgmr.msra.gmra.mxu1 %v9395_v56  ;;  %5014 = vmatprep.subr.mxu0 %v3934_v57 }
 0x8ce   : > { %5019 = vmatprep.subr.mxu1 %v4075_v55  ;;  %5015 = vmatpush3.msra.mxu0 %v3886_v51  ;;  %v4524_v51 = vrot.slane %v4519_v19, %v10623_v2 }
 0x8cf   : > { %5020 = vmatpush3.msra.mxu1 %v4027_v47  ;;  %4510 = vmatprep.mubr.f32.mxu1 %v9425_v23  ;;  %v4018_v23 = vld [vmem:[%s9958_s7 + $0x730] sm:$0xff] }
 0x8d0   : > { %4441 = vmatmul.mubr.f32.vlgmr.msra.gmra.mxu0 %v9449_v36  ;;  %5021 = vmatprep.subr.mxu1 %v4072_v11  ;;  %v4063_v36 = vld [vmem:[%s9958_s7 + $0x898] sm:$0xff] }
 0x8d1   : > { %5022 = vmatpush3.msra.mxu1 %v4024_v38 }
 0x8d2   : > { %5023 = vmatprep.subr.mxu1 %v4069_v42 }
 0x8d3   : > { %5024 = vmatpush3.msra.mxu1 %v4021_v25  ;;  %v4532_v25 = vrot.slane %v4519_v19, %v10624_v60 }
 0x8d4   : > { %5025 = vmatprep.subr.mxu1 %v4066_v27 }
 0x8d5   : > { %5026 = vmatpush3.msra.mxu1 %v4018_v23 }
 0x8d6   : > { %5027 = vmatprep.subr.mxu1 %v4063_v36 }
 0x8d7   : > { %5028 = vmatpush3.msra.mxu1 %v4015_v29 }
 0x8d8   : > { %5029 = vmatprep.subr.mxu1 %v4060_v1 }
 0x8d9   : > { %5030 = vmatpush3.msra.mxu1 %v4012_v13  ;;  %v4673_v13 = vld [vmem:[#allocation3] ss:$0 sm:$0xff] }
 0x8da   : > { %5031 = vmatprep.subr.mxu1 %v4057_v14 }
 0x8db   : > { %5032 = vmatpush3.msra.mxu1 %v4009_v44 }
 0x8dc   : > { %5033 = vmatprep.subr.mxu1 %v4054_v43 }
 0x8dd   : > { %5034 = vmatpush3.msra.mxu1 %v4006_v3 }
 0x8de   : > { %5035 = vmatprep.subr.mxu1 %v4051_v12 }
 0x8df   : > { %5036 = vmatpush3.msra.mxu1 %v4003_v49 }
 0x8e0   : > { %5037 = vmatprep.subr.mxu1 %v4048_v30 }
 0x8e1   : > { %5038 = vmatpush3.msra.mxu1 %v4000_v58 }
 0x8e2   : > { %5039 = vmatprep.subr.mxu1 %v4045_v35 }
 0x8e3   : > { %5040 = vmatpush3.msra.mxu1 %v3997_v7 }
 0x8e4   : > { %5041 = vmatprep.subr.mxu1 %v4042_v48 }
 0x8e5   : > { %5042 = vmatpush3.msra.mxu1 %v3994_v59 }
 0x8e6   : > { %5043 = vmatprep.subr.mxu1 %v4039_v21 }
 0x8e7   : > { %5044 = vmatpush3.msra.mxu1 %v3991_v61 }
 0x8e8   : > { %5045 = vmatprep.subr.mxu1 %v4036_v39 }
 0x8e9   : > { %5046 = vmatpush3.msra.mxu1 %v3988_v10 }
 0x8ea   : > { %5047 = vmatprep.subr.mxu1 %v4033_v46 }
 0x8eb   : > { %5048 = vmatpush3.msra.mxu1 %v3985_v54 }
 0x8ec   : > { %5049 = vmatprep.subr.mxu1 %v4030_v33 }
 0x8ed   : > { %5050 = vmatpush3.msra.mxu1 %v3982_v5 }
 0x8ee   : > { %4511 = vmatmul.mubr.f32.vlgmr.msra.gmra.mxu1 %v9395_v56 }
 0x94b   : > { %v4159_v41 = vpop.f32.mrf.mxu1 }
 0x94c   : > { %v4160_v22 = vadd.f32 %v4159_v41, %v4081_v15 }
 0x94d   : > { %v4161_v6 = vpop.f32.mrf.mxu1 }
 0x94e   : > { %v4230_v18 = vpop.f32.mrf.mxu0  ;;  %v4162_v31 = vadd.f32 %v4161_v6, %v4085_v34 }
 0x94f   : > { %v4231_v26 = vadd.f32 %v4230_v18, %v4160_v22 }
 0x950   : > { %v4232_v28 = vpop.f32.mrf.mxu0 }
 0x951   : > { %v4233_v56 = vadd.f32 %v4232_v28, %v4162_v31 }
 0x96e   : > { %v4981_v62 = vpop.f32.mrf.mxu0 }
 0x970   : > { %v4982_v8 = vpop.f32.mrf.mxu0 }
 0x971   : > { %v4983_v45 = vadd.f32 %v4982_v8, %v4981_v62 }
 0x973   : > { %v4373_v20 = vadd.f32 %v4983_v45, %v4089_v40 }
 0x98d   : > { %v4301_v50 = vpop.f32.mrf.mxu1 }
 0x98e   : > { %v4302_v24 = vadd.f32 %v4301_v50, %v4231_v26 }
 0x98f   : > { %v4303_v4 = vpop.f32.mrf.mxu1 }
 0x990   : > { %v5016_v63 = vpop.f32.mrf.mxu0  ;;  %v4304_v0 = vadd.f32 %v4303_v4, %v4233_v56  ;;  %v4516_v55 = vmax.f32 %v4302_v24, 0.0 }
 0x992   : > { %v5017_v53 = vpop.f32.mrf.mxu0  ;;  %v4517_v17 = vmax.f32 %v4304_v0, 0.0  ;;  %v4536_v27 = vmul.f32 %v4524_v51, %v4516_v55 }
 0x993   : > { %v5018_v9 = vadd.f32 %v5017_v53, %v5016_v63 }
 0x994   : > { %v4537_v38 = vmul.f32 %v4528_v37, %v4517_v17 }
 0x995   : > { %v4443_v47 = vadd.f32 %v5018_v9, %v4373_v20 }
 0x996   : > { %v4539_v29 = vadd.f32 %v4537_v38, %v4536_v27 }
 0x9ae   : > { %v5051_v16 = vpop.f32.mrf.mxu1 }
 0x9b0   : > { %v5052_v57 = vpop.f32.mrf.mxu1 }
 0x9b1   : > { %v5053_v11 = vadd.f32 %v5052_v57, %v5051_v16 }
 0x9b3   : > { %v4513_v42 = vadd.f32 %v5053_v11, %v4443_v47 }
 0x9b5   : > { %v4518_v23 = vmax.f32 %v4513_v42, 0.0 }
 0x9b7   : > { %v4538_v36 = vmul.f32 %v4532_v25, %v4518_v23 }
 0x9b9   : > { %v4540_v1 = vadd.f32 %v4539_v29, %v4538_v36 }
 0x9bb   : > { %4541 = vadd.xlane.f32.xlu0 %v4540_v1 }
 0xa44   : > { %v4542_v14 = vpop.xlane.xlu0 %4541 }
 0xa45   : > { %v4550_v44 = vadd.f32 %v4673_v13, %v4542_v14 }
 0xa47   : > { %v4674_v43 = vmul.f32 -1.442695, %v4550_v44 }
 0xa49   : > { %5813 = vpow2.f32 %v4674_v43 }
 0xa56   : > { %v5814_v3 = vpop.eup %5813 }
 0xa57   : > { %v4554_v12 = vadd.f32 1.0, %v5814_v3 }
 0xa59   : > { %5815 = vrcp.f32 %v4554_v12 }
 0xa66   : > { %v5816_v49 = vpop.eup %5815 }
 0xa67   : > { %4558 = vst.msk [vmem:[%s464_s30] sm:$0xff] %vm4557_vm1, %v5816_v49 }
 0xa68 PF: > { %p21_p6 = scmp.ge.s32.totalorder %s6150_s22, 4   ;;  %s10625_s19 = smov %s6057_s20 }
 0xa69   : > { %s10626_s20 = smov %s6160_s25  ;;  %s10627_s21 = smov %s6150_s22 }
 0xa6a   :  { %23 = sbr.rel (!%p21_p6) target bundleno = 5 (0x5), region = 142 }
 0xa6f   :  { %4578 = vsyncpa [#allocation6], 1 }
 0xa70   :  { %4580 = vsyncpa [#allocation6 + $0x1], 1 }

</bundles_post_ra>
